<compile_context>
chip_gen: v5e
topology: v5e:2x2
jax: 0.10.0
libtpu: 0.0.40
codegen_flags: <defaults>
</compile_context>

<pallas_src>
import functools

import jax
import jax.numpy as jnp
from jax.experimental import pallas as pl
from jax.experimental.pallas import tpu as pltpu

BN_EPS = 1e-5


def _round_up(x, m):
    return ((x + m - 1) // m) * m


# ---------------------------------------------------------------------------
# Kernel 1: rows-tiled pointwise (1x1) conv [+ BN affine] [+ ReLU]
# ---------------------------------------------------------------------------
def _pointwise_kernel(relu, affine, *refs):
    if affine:
        x_ref, w_ref, s_ref, b_ref, o_ref = refs
    else:
        x_ref, w_ref, o_ref = refs
    y = jnp.dot(x_ref[...].astype(jnp.bfloat16), w_ref[...],
                preferred_element_type=jnp.float32)
    if affine:
        y = y * s_ref[...] + b_ref[...]
    if relu:
        y = jnp.maximum(y, 0.0)
    o_ref[...] = y.astype(o_ref.dtype)


def pointwise_conv(x2d, w_bf16, scale=None, bias=None, relu=False,
                   out_dtype=jnp.float32, tile_rows=1024):
    """x2d: (rows, Cin); w_bf16: (Cin, Cout) bf16; scale/bias: (Cout,) f32."""
    rows, cin = x2d.shape
    cout = w_bf16.shape[1]
    affine = scale is not None
    tm = min(tile_rows, _round_up(rows, 8))
    grid = (pl.cdiv(rows, tm),)

    in_specs = [pl.BlockSpec((tm, cin), lambda i: (i, 0)),
                pl.BlockSpec((cin, cout), lambda i: (0, 0))]
    args = [x2d, w_bf16]
    if affine:
        in_specs += [pl.BlockSpec((1, cout), lambda i: (0, 0)),
                     pl.BlockSpec((1, cout), lambda i: (0, 0))]
        args += [scale.reshape(1, cout).astype(jnp.float32),
                 bias.reshape(1, cout).astype(jnp.float32)]

    return pl.pallas_call(
        functools.partial(_pointwise_kernel, relu, affine),
        grid=grid,
        in_specs=in_specs,
        out_specs=pl.BlockSpec((tm, cout), lambda i: (i, 0)),
        out_shape=jax.ShapeDtypeStruct((rows, cout), out_dtype),
        compiler_params=pltpu.CompilerParams(
            dimension_semantics=("parallel",)),
    )(*args)


# ---------------------------------------------------------------------------
# Kernel 2: fused 3x3 conv (stride 1/2) + BN2 + ReLU + 1x1 conv3 + BN3
#           + skip-add + ReLU
# ---------------------------------------------------------------------------
def _conv2_conv3_kernel(stride, x_ref, w2_ref, s2_ref, b2_ref,
                        w3_ref, s3_ref, b3_ref, skip_ref, o_ref):
    _, th, wout, cout = o_ref.shape
    mid = w2_ref.shape[-1]
    row0 = pl.program_id(1) * th

    acc = jnp.zeros((th * wout, mid), jnp.float32)
    for ky in range(3):
        for kx in range(3):
            if stride == 1:
                plane, r_off, c_off = 0, ky, kx
            else:  # stride 2: taps live on (row,col)-parity planes -> contiguous slices
                plane, r_off, c_off = (ky % 2) * 2 + (kx % 2), ky // 2, kx // 2
            patch = x_ref[:, plane, pl.ds(row0 + r_off, th),
                          pl.ds(c_off, wout), :]                     # (1, th, wout, mid)
            acc = acc + jnp.dot(patch.reshape(th * wout, mid), w2_ref[ky, kx],
                                preferred_element_type=jnp.float32)

    h = jnp.maximum(acc * s2_ref[...] + b2_ref[...], 0.0)            # BN2 + ReLU (f32)
    y = jnp.dot(h.astype(jnp.bfloat16), w3_ref[...],
                preferred_element_type=jnp.float32)                   # conv3 (1x1)
    y = y * s3_ref[...] + b3_ref[...]                                 # BN3
    y = y + skip_ref[...].reshape(th * wout, cout)                    # skip add
    y = jnp.maximum(y, 0.0)                                           # ReLU
    o_ref[...] = y.reshape(1, th, wout, cout).astype(o_ref.dtype)


def conv3x3_bn_relu_conv1x1_skip(y1, w2_bf16, s2, b2, w3_bf16, s3, b3,
                                 skip, stride, out_dtype=jnp.float32):
    """y1: (N,H,W,mid) bf16; returns relu(bn3(conv3(relu(bn2(conv2(y1))))) + skip)."""
    n, h, w, mid = y1.shape
    cout = w3_bf16.shape[1]
    hout, wout = h // stride, w // stride

    # TODO(synk): the pad / parity split below cost one extra HBM copy of the
    # mid activation; a halo-aware BlockSpec would avoid it entirely.
    xpad = jnp.pad(y1, ((0, 0), (1, 1), (1, 1), (0, 0)))
    if stride == 1:
        xprep = xpad[:, None]                                # (N, 1, H+2,   W+2,   mid)
    else:
        planes = [xpad[:, p::2, q::2, :] for p in (0, 1) for q in (0, 1)]
        xprep = jnp.stack(planes, axis=1)                    # (N, 4, H/2+1, W/2+1, mid)
    n_pl, h_pl, w_pl = xprep.shape[1], xprep.shape[2], xprep.shape[3]

    # output-row tile: largest divisor of hout <= 16 (window reads of the
    # per-batch-resident input block always stay in bounds).
    th = 1
    for cand in range(min(hout, 16), 0, -1):
        if hout % cand == 0:
            th = cand
            break
    grid = (n, hout // th)

    in_specs = [
        # whole padded (parity-split) input per batch item; stays VMEM-resident
        # across all row tiles of that batch (block index depends only on b).
        pl.BlockSpec((1, n_pl, h_pl, w_pl, mid), lambda b, i: (b, 0, 0, 0, 0)),
        pl.BlockSpec((3, 3, mid, mid), lambda b, i: (0, 0, 0, 0)),
        pl.BlockSpec((1, mid), lambda b, i: (0, 0)),
        pl.BlockSpec((1, mid), lambda b, i: (0, 0)),
        pl.BlockSpec((mid, cout), lambda b, i: (0, 0)),
        pl.BlockSpec((1, cout), lambda b, i: (0, 0)),
        pl.BlockSpec((1, cout), lambda b, i: (0, 0)),
        pl.BlockSpec((1, th, wout, cout), lambda b, i: (b, i, 0, 0)),
    ]
    return pl.pallas_call(
        functools.partial(_conv2_conv3_kernel, stride),
        grid=grid,
        in_specs=in_specs,
        out_specs=pl.BlockSpec((1, th, wout, cout), lambda b, i: (b, i, 0, 0)),
        out_shape=jax.ShapeDtypeStruct((n, hout, wout, cout), out_dtype),
        compiler_params=pltpu.CompilerParams(
            dimension_semantics=("parallel", "parallel")),
    )(xprep, w2_bf16,
      s2.reshape(1, mid).astype(jnp.float32), b2.reshape(1, mid).astype(jnp.float32),
      w3_bf16,
      s3.reshape(1, cout).astype(jnp.float32), b3.reshape(1, cout).astype(jnp.float32),
      skip.astype(jnp.float32))


# ---------------------------------------------------------------------------
# Parameters (deterministic synthetic init) and forward pass
# ---------------------------------------------------------------------------
def _bn_fold(gamma, beta, mean, var):
    scale = gamma / jnp.sqrt(var + BN_EPS)
    return scale, beta - mean * scale


def init_params(key, in_channels, out_channels, times, scale_factor=4):
    mid = out_channels * scale_factor
    keys = jax.random.split(key, 6 + 3 * times)

    def conv_w(k, cin, cout, kh=1, kw=1):
        fan_in = cin * kh * kw
        bound = 1.0 / jnp.sqrt(float(fan_in))
        shape = (cin, cout) if kh == 1 else (kh, kw, cin, cout)  # 1x1: (Cin,Cout); 3x3: HWIO
        return jax.random.uniform(k, shape, jnp.float32, -bound, bound)

    def bn_p(k, c):
        k1, k2, k3 = jax.random.split(k, 3)
        gamma = 1.0 + 0.1 * jax.random.normal(k1, (c,), jnp.float32)
        beta = 0.1 * jax.random.normal(k2, (c,), jnp.float32)
        mean = 0.1 * jax.random.normal(k3, (c,), jnp.float32)
        var = 0.9 * jnp.ones((c,), jnp.float32)
        return _bn_fold(gamma, beta, mean, var)

    params = {
        "w_input": conv_w(keys[0], in_channels, out_channels),
        "w_skip": conv_w(keys[1], out_channels, out_channels),
        "norm_skip": bn_p(keys[2], out_channels),
        "w_conv1": conv_w(keys[3], out_channels, mid),
        "w_conv2": conv_w(keys[4], mid, mid, 3, 3),
        "w_conv3": conv_w(keys[5], mid, out_channels),
        "norm1": [], "norm2": [], "norm3": [],
    }
    for t in range(times):
        params["norm1"].append(bn_p(keys[6 + 3 * t], mid))
        params["norm2"].append(bn_p(keys[7 + 3 * t], mid))
        params["norm3"].append(bn_p(keys[8 + 3 * t], out_channels))
    return params


def corblock_s_forward(inp_nchw, params, times):
    """CORblock_S.forward. Input NCHW f32, output NCHW f32 (spatial halved)."""
    x = jnp.transpose(inp_nchw.astype(jnp.float32), (0, 2, 3, 1))   # -> NHWC
    n, h, w, cin = x.shape
    cout = params["w_input"].shape[1]
    mid = params["w_conv1"].shape[1]

    bf = lambda a: a.astype(jnp.bfloat16)
    w_in, w_sk = bf(params["w_input"]), bf(params["w_skip"])
    w1, w2, w3 = bf(params["w_conv1"]), bf(params["w_conv2"]), bf(params["w_conv3"])

    # conv_input: 1x1, no bias, no BN, no ReLU.
    # TODO(synk): Cin (3/4) is far below the MXU contraction width; could pad
    #             Cin / pack spatial into lanes for better MXU utilization.
    x = pointwise_conv(x.reshape(n * h * w, cin), w_in,
                       relu=False, out_dtype=jnp.float32).reshape(n, h, w, cout)

    for t in range(times):
        if t == 0:
            stride = 2
            hout, wout = h // 2, w // 2
            # skip = norm_skip(1x1 stride-2 conv); stride-2 1x1 == subsample then 1x1.
            # TODO(synk): could be fused into the iteration kernel to avoid one
            #             extra read of x at t==0.
            xs = x[:, ::2, ::2, :].reshape(n * hout * wout, cout)
            sk_s, sk_b = params["norm_skip"]
            skip = pointwise_conv(xs, w_sk, sk_s, sk_b, relu=False,
                                  out_dtype=jnp.float32
                                  ).reshape(n, hout, wout, cout)
        else:
            stride = 1
            hout, wout = h, w
            skip = x

        n1_s, n1_b = params["norm1"][t]
        y1 = pointwise_conv(x.reshape(n * h * w, cout), w1, n1_s, n1_b,
                            relu=True, out_dtype=jnp.bfloat16
                            ).reshape(n, h, w, mid)

        n2_s, n2_b = params["norm2"][t]
        n3_s, n3_b = params["norm3"][t]
        x = conv3x3_bn_relu_conv1x1_skip(y1, w2, n2_s, n2_b, w3, n3_s, n3_b,
                                         skip, stride, out_dtype=jnp.float32)
        h, w = hout, wout

    return jnp.transpose(x, (0, 3, 1, 2))   # -> NCHW


# ---------------------------------------------------------------------------
# Pure-JAX reference mirroring the kernels' bf16-matmul / f32-epilogue numerics
# ---------------------------------------------------------------------------
def _ref_forward(inp_nchw, params, times):
    bf = jnp.bfloat16

    def conv(x, w_hwio, stride, padding):
        return jax.lax.conv_general_dilated(
            x.astype(bf), w_hwio.astype(bf), (stride, stride), padding,
            dimension_numbers=("NHWC", "HWIO", "NHWC"),
            preferred_element_type=jnp.float32)

    def conv1x1(x, w, stride=1):
        return conv(x, w[None, None], stride, "VALID")

    def bn(x, sb):
        s, b = sb
        return x * s + b

    x = conv1x1(jnp.transpose(inp_nchw, (0, 2, 3, 1)), params["w_input"])
    for t in range(times):
        if t == 0:
            skip = bn(conv1x1(x, params["w_skip"], stride=2), params["norm_skip"])
            stride = 2
        else:
            skip = x
            stride = 1
        y = jax.nn.relu(bn(conv1x1(x, params["w_conv1"]), params["norm1"][t]))
        y = jax.nn.relu(bn(conv(y, params["w_conv2"], stride, ((1, 1), (1, 1))),
                           params["norm2"][t]))
        x = jax.nn.relu(bn(conv1x1(y, params["w_conv3"]), params["norm3"][t]) + skip)
    return jnp.transpose(x, (0, 3, 1, 2))


if __name__ == "__main__":
    key = jax.random.PRNGKey(0)
    kp, kx = jax.random.split(key)

    in_channels, out_channels, times = 4, 8, 2
    N, H, W = 2, 16, 16

    params = init_params(kp, in_channels, out_channels, times)
    x = jax.random.normal(kx, (N, in_channels, H, W), jnp.float32)

    fwd = jax.jit(functools.partial(corblock_s_forward, times=times))
    out = jax.block_until_ready(fwd(x, params))

    assert out.shape == (N, out_channels, H // 2, W // 2), out.shape
    assert bool(jnp.all(jnp.isfinite(out)))

    ref = jax.block_until_ready(_ref_forward(x, params, times))
    max_err = float(jnp.max(jnp.abs(out - ref)))
    # bf16 matmul inputs / f32 accumulation on both sides -> tight agreement.
    assert bool(jnp.allclose(out, ref, rtol=1e-2, atol=1e-2)), max_err

    print("KERNEL_OK")
</pallas_src>

<mosaic_0001>
module attributes {stable_mosaic.version = 11 : i64} {
  func.func @_pointwise_kernel(%arg0: i32, %arg1: memref<512x8xf32, #tpu.memory_space<vmem>>, %arg2: memref<8x32xbf16, #tpu.memory_space<vmem>>, %arg3: memref<1x32xf32, #tpu.memory_space<vmem>>, %arg4: memref<1x32xf32, #tpu.memory_space<vmem>>, %arg5: memref<512x32xbf16, #tpu.memory_space<vmem>>) attributes {dimension_semantics = [#tpu.dimension_semantics<parallel>], iteration_bounds = array<i64: 1>, scalar_prefetch = 0 : i64, scratch_operands = 0 : i64, tpu.core_type = #tpu.core_type<tc>, window_params = [{transform_indices = @transform_0, window_bounds = array<i64: 512, 8>}, {pipeline_mode = #tpu.pipeline_mode<synchronous>, transform_indices = @transform_1, window_bounds = array<i64: 8, 32>}, {pipeline_mode = #tpu.pipeline_mode<synchronous>, transform_indices = @transform_2, window_bounds = array<i64: 1, 32>}, {pipeline_mode = #tpu.pipeline_mode<synchronous>, transform_indices = @transform_3, window_bounds = array<i64: 1, 32>}, {transform_indices = @transform_4, window_bounds = array<i64: 512, 32>}]} {
    %c0 = arith.constant 0 : index
    %c0_0 = arith.constant 0 : index
    %0 = vector.load %arg1[%c0, %c0_0] : memref<512x8xf32, #tpu.memory_space<vmem>>, vector<512x8xf32>
    %1 = arith.truncf %0 : vector<512x8xf32> to vector<512x8xbf16>
    %c0_1 = arith.constant 0 : index
    %c0_2 = arith.constant 0 : index
    %2 = vector.load %arg2[%c0_1, %c0_2] : memref<8x32xbf16, #tpu.memory_space<vmem>>, vector<8x32xbf16>
    %cst = arith.constant dense<0.000000e+00> : vector<512x32xf32>
    %3 = tpu.matmul %1, %2, %cst {dimension_numbers = #tpu.dot_dimension_numbers<[1], [0], [0], [1], [0, 0, 1, 1], [], []>} : vector<512x8xbf16>, vector<8x32xbf16>, vector<512x32xf32> -> vector<512x32xf32>
    %c0_3 = arith.constant 0 : index
    %c0_4 = arith.constant 0 : index
    %4 = vector.load %arg3[%c0_3, %c0_4] : memref<1x32xf32, #tpu.memory_space<vmem>>, vector<1x32xf32>
    %5 = vector.broadcast %4 : vector<1x32xf32> to vector<512x32xf32>
    %6 = arith.mulf %3, %5 : vector<512x32xf32>
    %c0_5 = arith.constant 0 : index
    %c0_6 = arith.constant 0 : index
    %7 = vector.load %arg4[%c0_5, %c0_6] : memref<1x32xf32, #tpu.memory_space<vmem>>, vector<1x32xf32>
    %8 = vector.broadcast %7 : vector<1x32xf32> to vector<512x32xf32>
    %9 = arith.addf %6, %8 : vector<512x32xf32>
    %cst_7 = arith.constant 0.000000e+00 : f32
    %10 = vector.broadcast %cst_7 : f32 to vector<512x32xf32>
    %11 = arith.maximumf %9, %10 : vector<512x32xf32>
    %12 = arith.truncf %11 : vector<512x32xf32> to vector<512x32xbf16>
    %c0_8 = arith.constant 0 : index
    %c0_9 = arith.constant 0 : index
    %13 = vector.load %arg5[%c0_8, %c0_9] : memref<512x32xbf16, #tpu.memory_space<vmem>>, vector<512x32xbf16>
    tpu.vector_store %arg5[%c0_8, %c0_9], %12 {strides = array<i32>} : memref<512x32xbf16, #tpu.memory_space<vmem>>, vector<512x32xbf16>,
    return
  }
  func.func @transform_0(%arg0: i32) -> (i32, i32) {
    %c0_i32 = arith.constant 0 : i32
    %c0_i32_0 = arith.constant 0 : i32
    return %arg0, %c0_i32 : i32, i32
  }
  func.func @transform_1(%arg0: i32) -> (i32, i32) {
    %c0_i32 = arith.constant 0 : i32
    %c0_i32_0 = arith.constant 0 : i32
    %c0_i32_1 = arith.constant 0 : i32
    return %c0_i32, %c0_i32_0 : i32, i32
  }
  func.func @transform_2(%arg0: i32) -> (i32, i32) {
    %c0_i32 = arith.constant 0 : i32
    %c0_i32_0 = arith.constant 0 : i32
    %c0_i32_1 = arith.constant 0 : i32
    return %c0_i32, %c0_i32_0 : i32, i32
  }
  func.func @transform_3(%arg0: i32) -> (i32, i32) {
    %c0_i32 = arith.constant 0 : i32
    %c0_i32_0 = arith.constant 0 : i32
    %c0_i32_1 = arith.constant 0 : i32
    return %c0_i32, %c0_i32_0 : i32, i32
  }
  func.func @transform_4(%arg0: i32) -> (i32, i32) {
    %c0_i32 = arith.constant 0 : i32
    %c0_i32_0 = arith.constant 0 : i32
    return %arg0, %c0_i32 : i32, i32
  }
}

module attributes {stable_mosaic.version = 11 : i64} {
  func.func @_pointwise_kernel(%arg0: i32, %arg1: memref<512x4xf32, #tpu.memory_space<vmem>>, %arg2: memref<4x8xbf16, #tpu.memory_space<vmem>>, %arg3: memref<512x8xf32, #tpu.memory_space<vmem>>) attributes {dimension_semantics = [#tpu.dimension_semantics<parallel>], iteration_bounds = array<i64: 1>, scalar_prefetch = 0 : i64, scratch_operands = 0 : i64, tpu.core_type = #tpu.core_type<tc>, window_params = [{transform_indices = @transform_0, window_bounds = array<i64: 512, 4>}, {pipeline_mode = #tpu.pipeline_mode<synchronous>, transform_indices = @transform_1, window_bounds = array<i64: 4, 8>}, {transform_indices = @transform_2, window_bounds = array<i64: 512, 8>}]} {
    %c0 = arith.constant 0 : index
    %c0_0 = arith.constant 0 : index
    %0 = vector.load %arg1[%c0, %c0_0] : memref<512x4xf32, #tpu.memory_space<vmem>>, vector<512x4xf32>
    %1 = arith.truncf %0 : vector<512x4xf32> to vector<512x4xbf16>
    %c0_1 = arith.constant 0 : index
    %c0_2 = arith.constant 0 : index
    %2 = vector.load %arg2[%c0_1, %c0_2] : memref<4x8xbf16, #tpu.memory_space<vmem>>, vector<4x8xbf16>
    %cst = arith.constant dense<0.000000e+00> : vector<512x8xf32>
    %3 = tpu.matmul %1, %2, %cst {dimension_numbers = #tpu.dot_dimension_numbers<[1], [0], [0], [1], [0, 0, 1, 1], [], []>} : vector<512x4xbf16>, vector<4x8xbf16>, vector<512x8xf32> -> vector<512x8xf32>
    %c0_3 = arith.constant 0 : index
    %c0_4 = arith.constant 0 : index
    %4 = vector.load %arg3[%c0_3, %c0_4] : memref<512x8xf32, #tpu.memory_space<vmem>>, vector<512x8xf32>
    tpu.vector_store %arg3[%c0_3, %c0_4], %3 {strides = array<i32>} : memref<512x8xf32, #tpu.memory_space<vmem>>, vector<512x8xf32>,
    return
  }
  func.func @transform_0(%arg0: i32) -> (i32, i32) {
    %c0_i32 = arith.constant 0 : i32
    %c0_i32_0 = arith.constant 0 : i32
    return %arg0, %c0_i32 : i32, i32
  }
  func.func @transform_1(%arg0: i32) -> (i32, i32) {
    %c0_i32 = arith.constant 0 : i32
    %c0_i32_0 = arith.constant 0 : i32
    %c0_i32_1 = arith.constant 0 : i32
    return %c0_i32, %c0_i32_0 : i32, i32
  }
  func.func @transform_2(%arg0: i32) -> (i32, i32) {
    %c0_i32 = arith.constant 0 : i32
    %c0_i32_0 = arith.constant 0 : i32
    return %arg0, %c0_i32 : i32, i32
  }
}

module attributes {stable_mosaic.version = 11 : i64} {
  func.func @_pointwise_kernel(%arg0: i32, %arg1: memref<128x8xf32, #tpu.memory_space<vmem>>, %arg2: memref<8x8xbf16, #tpu.memory_space<vmem>>, %arg3: memref<1x8xf32, #tpu.memory_space<vmem>>, %arg4: memref<1x8xf32, #tpu.memory_space<vmem>>, %arg5: memref<128x8xf32, #tpu.memory_space<vmem>>) attributes {dimension_semantics = [#tpu.dimension_semantics<parallel>], iteration_bounds = array<i64: 1>, scalar_prefetch = 0 : i64, scratch_operands = 0 : i64, tpu.core_type = #tpu.core_type<tc>, window_params = [{transform_indices = @transform_0, window_bounds = array<i64: 128, 8>}, {pipeline_mode = #tpu.pipeline_mode<synchronous>, transform_indices = @transform_1, window_bounds = array<i64: 8, 8>}, {pipeline_mode = #tpu.pipeline_mode<synchronous>, transform_indices = @transform_2, window_bounds = array<i64: 1, 8>}, {pipeline_mode = #tpu.pipeline_mode<synchronous>, transform_indices = @transform_3, window_bounds = array<i64: 1, 8>}, {transform_indices = @transform_4, window_bounds = array<i64: 128, 8>}]} {
    %c0 = arith.constant 0 : index
    %c0_0 = arith.constant 0 : index
    %0 = vector.load %arg1[%c0, %c0_0] : memref<128x8xf32, #tpu.memory_space<vmem>>, vector<128x8xf32>
    %1 = arith.truncf %0 : vector<128x8xf32> to vector<128x8xbf16>
    %c0_1 = arith.constant 0 : index
    %c0_2 = arith.constant 0 : index
    %2 = vector.load %arg2[%c0_1, %c0_2] : memref<8x8xbf16, #tpu.memory_space<vmem>>, vector<8x8xbf16>
    %cst = arith.constant dense<0.000000e+00> : vector<128x8xf32>
    %3 = tpu.matmul %1, %2, %cst {dimension_numbers = #tpu.dot_dimension_numbers<[1], [0], [0], [1], [0, 0, 1, 1], [], []>} : vector<128x8xbf16>, vector<8x8xbf16>, vector<128x8xf32> -> vector<128x8xf32>
    %c0_3 = arith.constant 0 : index
    %c0_4 = arith.constant 0 : index
    %4 = vector.load %arg3[%c0_3, %c0_4] : memref<1x8xf32, #tpu.memory_space<vmem>>, vector<1x8xf32>
    %5 = vector.broadcast %4 : vector<1x8xf32> to vector<128x8xf32>
    %6 = arith.mulf %3, %5 : vector<128x8xf32>
    %c0_5 = arith.constant 0 : index
    %c0_6 = arith.constant 0 : index
    %7 = vector.load %arg4[%c0_5, %c0_6] : memref<1x8xf32, #tpu.memory_space<vmem>>, vector<1x8xf32>
    %8 = vector.broadcast %7 : vector<1x8xf32> to vector<128x8xf32>
    %9 = arith.addf %6, %8 : vector<128x8xf32>
    %c0_7 = arith.constant 0 : index
    %c0_8 = arith.constant 0 : index
    %10 = vector.load %arg5[%c0_7, %c0_8] : memref<128x8xf32, #tpu.memory_space<vmem>>, vector<128x8xf32>
    tpu.vector_store %arg5[%c0_7, %c0_8], %9 {strides = array<i32>} : memref<128x8xf32, #tpu.memory_space<vmem>>, vector<128x8xf32>,
    return
  }
  func.func @transform_0(%arg0: i32) -> (i32, i32) {
    %c0_i32 = arith.constant 0 : i32
    %c0_i32_0 = arith.constant 0 : i32
    return %arg0, %c0_i32 : i32, i32
  }
  func.func @transform_1(%arg0: i32) -> (i32, i32) {
    %c0_i32 = arith.constant 0 : i32
    %c0_i32_0 = arith.constant 0 : i32
    %c0_i32_1 = arith.constant 0 : i32
    return %c0_i32, %c0_i32_0 : i32, i32
  }
  func.func @transform_2(%arg0: i32) -> (i32, i32) {
    %c0_i32 = arith.constant 0 : i32
    %c0_i32_0 = arith.constant 0 : i32
    %c0_i32_1 = arith.constant 0 : i32
    return %c0_i32, %c0_i32_0 : i32, i32
  }
  func.func @transform_3(%arg0: i32) -> (i32, i32) {
    %c0_i32 = arith.constant 0 : i32
    %c0_i32_0 = arith.constant 0 : i32
    %c0_i32_1 = arith.constant 0 : i32
    return %c0_i32, %c0_i32_0 : i32, i32
  }
  func.func @transform_4(%arg0: i32) -> (i32, i32) {
    %c0_i32 = arith.constant 0 : i32
    %c0_i32_0 = arith.constant 0 : i32
    return %arg0, %c0_i32 : i32, i32
  }
}

module attributes {stable_mosaic.version = 11 : i64} {
  func.func @_pointwise_kernel(%arg0: i32, %arg1: memref<128x8xf32, #tpu.memory_space<vmem>>, %arg2: memref<8x32xbf16, #tpu.memory_space<vmem>>, %arg3: memref<1x32xf32, #tpu.memory_space<vmem>>, %arg4: memref<1x32xf32, #tpu.memory_space<vmem>>, %arg5: memref<128x32xbf16, #tpu.memory_space<vmem>>) attributes {dimension_semantics = [#tpu.dimension_semantics<parallel>], iteration_bounds = array<i64: 1>, scalar_prefetch = 0 : i64, scratch_operands = 0 : i64, tpu.core_type = #tpu.core_type<tc>, window_params = [{transform_indices = @transform_0, window_bounds = array<i64: 128, 8>}, {pipeline_mode = #tpu.pipeline_mode<synchronous>, transform_indices = @transform_1, window_bounds = array<i64: 8, 32>}, {pipeline_mode = #tpu.pipeline_mode<synchronous>, transform_indices = @transform_2, window_bounds = array<i64: 1, 32>}, {pipeline_mode = #tpu.pipeline_mode<synchronous>, transform_indices = @transform_3, window_bounds = array<i64: 1, 32>}, {transform_indices = @transform_4, window_bounds = array<i64: 128, 32>}]} {
    %c0 = arith.constant 0 : index
    %c0_0 = arith.constant 0 : index
    %0 = vector.load %arg1[%c0, %c0_0] : memref<128x8xf32, #tpu.memory_space<vmem>>, vector<128x8xf32>
    %1 = arith.truncf %0 : vector<128x8xf32> to vector<128x8xbf16>
    %c0_1 = arith.constant 0 : index
    %c0_2 = arith.constant 0 : index
    %2 = vector.load %arg2[%c0_1, %c0_2] : memref<8x32xbf16, #tpu.memory_space<vmem>>, vector<8x32xbf16>
    %cst = arith.constant dense<0.000000e+00> : vector<128x32xf32>
    %3 = tpu.matmul %1, %2, %cst {dimension_numbers = #tpu.dot_dimension_numbers<[1], [0], [0], [1], [0, 0, 1, 1], [], []>} : vector<128x8xbf16>, vector<8x32xbf16>, vector<128x32xf32> -> vector<128x32xf32>
    %c0_3 = arith.constant 0 : index
    %c0_4 = arith.constant 0 : index
    %4 = vector.load %arg3[%c0_3, %c0_4] : memref<1x32xf32, #tpu.memory_space<vmem>>, vector<1x32xf32>
    %5 = vector.broadcast %4 : vector<1x32xf32> to vector<128x32xf32>
    %6 = arith.mulf %3, %5 : vector<128x32xf32>
    %c0_5 = arith.constant 0 : index
    %c0_6 = arith.constant 0 : index
    %7 = vector.load %arg4[%c0_5, %c0_6] : memref<1x32xf32, #tpu.memory_space<vmem>>, vector<1x32xf32>
    %8 = vector.broadcast %7 : vector<1x32xf32> to vector<128x32xf32>
    %9 = arith.addf %6, %8 : vector<128x32xf32>
    %cst_7 = arith.constant 0.000000e+00 : f32
    %10 = vector.broadcast %cst_7 : f32 to vector<128x32xf32>
    %11 = arith.maximumf %9, %10 : vector<128x32xf32>
    %12 = arith.truncf %11 : vector<128x32xf32> to vector<128x32xbf16>
    %c0_8 = arith.constant 0 : index
    %c0_9 = arith.constant 0 : index
    %13 = vector.load %arg5[%c0_8, %c0_9] : memref<128x32xbf16, #tpu.memory_space<vmem>>, vector<128x32xbf16>
    tpu.vector_store %arg5[%c0_8, %c0_9], %12 {strides = array<i32>} : memref<128x32xbf16, #tpu.memory_space<vmem>>, vector<128x32xbf16>,
    return
  }
  func.func @transform_0(%arg0: i32) -> (i32, i32) {
    %c0_i32 = arith.constant 0 : i32
    %c0_i32_0 = arith.constant 0 : i32
    return %arg0, %c0_i32 : i32, i32
  }
  func.func @transform_1(%arg0: i32) -> (i32, i32) {
    %c0_i32 = arith.constant 0 : i32
    %c0_i32_0 = arith.constant 0 : i32
    %c0_i32_1 = arith.constant 0 : i32
    return %c0_i32, %c0_i32_0 : i32, i32
  }
  func.func @transform_2(%arg0: i32) -> (i32, i32) {
    %c0_i32 = arith.constant 0 : i32
    %c0_i32_0 = arith.constant 0 : i32
    %c0_i32_1 = arith.constant 0 : i32
    return %c0_i32, %c0_i32_0 : i32, i32
  }
  func.func @transform_3(%arg0: i32) -> (i32, i32) {
    %c0_i32 = arith.constant 0 : i32
    %c0_i32_0 = arith.constant 0 : i32
    %c0_i32_1 = arith.constant 0 : i32
    return %c0_i32, %c0_i32_0 : i32, i32
  }
  func.func @transform_4(%arg0: i32) -> (i32, i32) {
    %c0_i32 = arith.constant 0 : i32
    %c0_i32_0 = arith.constant 0 : i32
    return %arg0, %c0_i32 : i32, i32
  }
}

module attributes {stable_mosaic.version = 11 : i64} {
  func.func @_conv2_conv3_kernel(%arg0: i32, %arg1: i32, %arg2: memref<1x4x9x9x32xbf16, #tpu.memory_space<vmem>>, %arg3: memref<3x3x32x32xbf16, #tpu.memory_space<vmem>>, %arg4: memref<1x32xf32, #tpu.memory_space<vmem>>, %arg5: memref<1x32xf32, #tpu.memory_space<vmem>>, %arg6: memref<32x8xbf16, #tpu.memory_space<vmem>>, %arg7: memref<1x8xf32, #tpu.memory_space<vmem>>, %arg8: memref<1x8xf32, #tpu.memory_space<vmem>>, %arg9: memref<1x8x8x8xf32, #tpu.memory_space<vmem>>, %arg10: memref<1x8x8x8xf32, #tpu.memory_space<vmem>>) attributes {dimension_semantics = [#tpu.dimension_semantics<parallel>, #tpu.dimension_semantics<parallel>], iteration_bounds = array<i64: 2, 1>, scalar_prefetch = 0 : i64, scratch_operands = 0 : i64, tpu.core_type = #tpu.core_type<tc>, window_params = [{transform_indices = @transform_0, window_bounds = array<i64: 1, 4, 9, 9, 32>}, {pipeline_mode = #tpu.pipeline_mode<synchronous>, transform_indices = @transform_1, window_bounds = array<i64: 3, 3, 32, 32>}, {pipeline_mode = #tpu.pipeline_mode<synchronous>, transform_indices = @transform_2, window_bounds = array<i64: 1, 32>}, {pipeline_mode = #tpu.pipeline_mode<synchronous>, transform_indices = @transform_3, window_bounds = array<i64: 1, 32>}, {pipeline_mode = #tpu.pipeline_mode<synchronous>, transform_indices = @transform_4, window_bounds = array<i64: 32, 8>}, {pipeline_mode = #tpu.pipeline_mode<synchronous>, transform_indices = @transform_5, window_bounds = array<i64: 1, 8>}, {pipeline_mode = #tpu.pipeline_mode<synchronous>, transform_indices = @transform_6, window_bounds = array<i64: 1, 8>}, {transform_indices = @transform_7, window_bounds = array<i64: 1, 8, 8, 8>}, {transform_indices = @transform_8, window_bounds = array<i64: 1, 8, 8, 8>}]} {
    %c8_i32 = arith.constant 8 : i32
    %0 = arith.muli %arg1, %c8_i32 : i32
    %cst = arith.constant 0.000000e+00 : f32
    %1 = vector.broadcast %cst : f32 to vector<64x32xf32>
    %c0_i32 = arith.constant 0 : i32
    %2 = arith.addi %0, %c0_i32 : i32
    %c0 = arith.constant 0 : index
    %c0_0 = arith.constant 0 : index
    %3 = arith.index_cast %2 : i32 to index
    %c0_1 = arith.constant 0 : index
    %c0_2 = arith.constant 0 : index
    %4 = vector.load %arg2[%c0, %c0_0, %3, %c0_1, %c0_2] : memref<1x4x9x9x32xbf16, #tpu.memory_space<vmem>>, vector<1x1x8x8x32xbf16>
    %5 = vector.shape_cast %4 : vector<1x1x8x8x32xbf16> to vector<1x8x8x32xbf16>
    %6 = vector.shape_cast %5 : vector<1x8x8x32xbf16> to vector<64x32xbf16>
    %c0_3 = arith.constant 0 : index
    %c0_4 = arith.constant 0 : index
    %c0_5 = arith.constant 0 : index
    %c0_6 = arith.constant 0 : index
    %7 = vector.load %arg3[%c0_3, %c0_4, %c0_5, %c0_6] : memref<3x3x32x32xbf16, #tpu.memory_space<vmem>>, vector<1x1x32x32xbf16>
    %8 = vector.shape_cast %7 : vector<1x1x32x32xbf16> to vector<32x32xbf16>
    %cst_7 = arith.constant dense<0.000000e+00> : vector<64x32xf32>
    %9 = tpu.matmul %6, %8, %cst_7 {dimension_numbers = #tpu.dot_dimension_numbers<[1], [0], [0], [1], [0, 0, 1, 1], [], []>} : vector<64x32xbf16>, vector<32x32xbf16>, vector<64x32xf32> -> vector<64x32xf32>
    %10 = arith.addf %1, %9 : vector<64x32xf32>
    %c0_i32_8 = arith.constant 0 : i32
    %11 = arith.addi %0, %c0_i32_8 : i32
    %c0_9 = arith.constant 0 : index
    %c1 = arith.constant 1 : index
    %12 = arith.index_cast %11 : i32 to index
    %c0_10 = arith.constant 0 : index
    %c0_11 = arith.constant 0 : index
    %13 = vector.load %arg2[%c0_9, %c1, %12, %c0_10, %c0_11] : memref<1x4x9x9x32xbf16, #tpu.memory_space<vmem>>, vector<1x1x8x8x32xbf16>
    %14 = vector.shape_cast %13 : vector<1x1x8x8x32xbf16> to vector<1x8x8x32xbf16>
    %15 = vector.shape_cast %14 : vector<1x8x8x32xbf16> to vector<64x32xbf16>
    %c0_12 = arith.constant 0 : index
    %c1_13 = arith.constant 1 : index
    %c0_14 = arith.constant 0 : index
    %c0_15 = arith.constant 0 : index
    %16 = vector.load %arg3[%c0_12, %c1_13, %c0_14, %c0_15] : memref<3x3x32x32xbf16, #tpu.memory_space<vmem>>, vector<1x1x32x32xbf16>
    %17 = vector.shape_cast %16 : vector<1x1x32x32xbf16> to vector<32x32xbf16>
    %cst_16 = arith.constant dense<0.000000e+00> : vector<64x32xf32>
    %18 = tpu.matmul %15, %17, %cst_16 {dimension_numbers = #tpu.dot_dimension_numbers<[1], [0], [0], [1], [0, 0, 1, 1], [], []>} : vector<64x32xbf16>, vector<32x32xbf16>, vector<64x32xf32> -> vector<64x32xf32>
    %19 = arith.addf %10, %18 : vector<64x32xf32>
    %c0_i32_17 = arith.constant 0 : i32
    %20 = arith.addi %0, %c0_i32_17 : i32
    %c0_18 = arith.constant 0 : index
    %c0_19 = arith.constant 0 : index
    %21 = arith.index_cast %20 : i32 to index
    %c1_20 = arith.constant 1 : index
    %c0_21 = arith.constant 0 : index
    %22 = vector.load %arg2[%c0_18, %c0_19, %21, %c1_20, %c0_21] : memref<1x4x9x9x32xbf16, #tpu.memory_space<vmem>>, vector<1x1x8x8x32xbf16>
    %23 = vector.shape_cast %22 : vector<1x1x8x8x32xbf16> to vector<1x8x8x32xbf16>
    %24 = vector.shape_cast %23 : vector<1x8x8x32xbf16> to vector<64x32xbf16>
    %c0_22 = arith.constant 0 : index
    %c2 = arith.constant 2 : index
    %c0_23 = arith.constant 0 : index
    %c0_24 = arith.constant 0 : index
    %25 = vector.load %arg3[%c0_22, %c2, %c0_23, %c0_24] : memref<3x3x32x32xbf16, #tpu.memory_space<vmem>>, vector<1x1x32x32xbf16>
    %26 = vector.shape_cast %25 : vector<1x1x32x32xbf16> to vector<32x32xbf16>
    %cst_25 = arith.constant dense<0.000000e+00> : vector<64x32xf32>
    %27 = tpu.matmul %24, %26, %cst_25 {dimension_numbers = #tpu.dot_dimension_numbers<[1], [0], [0], [1], [0, 0, 1, 1], [], []>} : vector<64x32xbf16>, vector<32x32xbf16>, vector<64x32xf32> -> vector<64x32xf32>
    %28 = arith.addf %19, %27 : vector<64x32xf32>
    %c0_i32_26 = arith.constant 0 : i32
    %29 = arith.addi %0, %c0_i32_26 : i32
    %c0_27 = arith.constant 0 : index
    %c2_28 = arith.constant 2 : index
    %30 = arith.index_cast %29 : i32 to index
    %c0_29 = arith.constant 0 : index
    %c0_30 = arith.constant 0 : index
    %31 = vector.load %arg2[%c0_27, %c2_28, %30, %c0_29, %c0_30] : memref<1x4x9x9x32xbf16, #tpu.memory_space<vmem>>, vector<1x1x8x8x32xbf16>
    %32 = vector.shape_cast %31 : vector<1x1x8x8x32xbf16> to vector<1x8x8x32xbf16>
    %33 = vector.shape_cast %32 : vector<1x8x8x32xbf16> to vector<64x32xbf16>
    %c1_31 = arith.constant 1 : index
    %c0_32 = arith.constant 0 : index
    %c0_33 = arith.constant 0 : index
    %c0_34 = arith.constant 0 : index
    %34 = vector.load %arg3[%c1_31, %c0_32, %c0_33, %c0_34] : memref<3x3x32x32xbf16, #tpu.memory_space<vmem>>, vector<1x1x32x32xbf16>
    %35 = vector.shape_cast %34 : vector<1x1x32x32xbf16> to vector<32x32xbf16>
    %cst_35 = arith.constant dense<0.000000e+00> : vector<64x32xf32>
    %36 = tpu.matmul %33, %35, %cst_35 {dimension_numbers = #tpu.dot_dimension_numbers<[1], [0], [0], [1], [0, 0, 1, 1], [], []>} : vector<64x32xbf16>, vector<32x32xbf16>, vector<64x32xf32> -> vector<64x32xf32>
    %37 = arith.addf %28, %36 : vector<64x32xf32>
    %c0_i32_36 = arith.constant 0 : i32
    %38 = arith.addi %0, %c0_i32_36 : i32
    %c0_37 = arith.constant 0 : index
    %c3 = arith.constant 3 : index
    %39 = arith.index_cast %38 : i32 to index
    %c0_38 = arith.constant 0 : index
    %c0_39 = arith.constant 0 : index
    %40 = vector.load %arg2[%c0_37, %c3, %39, %c0_38, %c0_39] : memref<1x4x9x9x32xbf16, #tpu.memory_space<vmem>>, vector<1x1x8x8x32xbf16>
    %41 = vector.shape_cast %40 : vector<1x1x8x8x32xbf16> to vector<1x8x8x32xbf16>
    %42 = vector.shape_cast %41 : vector<1x8x8x32xbf16> to vector<64x32xbf16>
    %c1_40 = arith.constant 1 : index
    %c1_41 = arith.constant 1 : index
    %c0_42 = arith.constant 0 : index
    %c0_43 = arith.constant 0 : index
    %43 = vector.load %arg3[%c1_40, %c1_41, %c0_42, %c0_43] : memref<3x3x32x32xbf16, #tpu.memory_space<vmem>>, vector<1x1x32x32xbf16>
    %44 = vector.shape_cast %43 : vector<1x1x32x32xbf16> to vector<32x32xbf16>
    %cst_44 = arith.constant dense<0.000000e+00> : vector<64x32xf32>
    %45 = tpu.matmul %42, %44, %cst_44 {dimension_numbers = #tpu.dot_dimension_numbers<[1], [0], [0], [1], [0, 0, 1, 1], [], []>} : vector<64x32xbf16>, vector<32x32xbf16>, vector<64x32xf32> -> vector<64x32xf32>
    %46 = arith.addf %37, %45 : vector<64x32xf32>
    %c0_i32_45 = arith.constant 0 : i32
    %47 = arith.addi %0, %c0_i32_45 : i32
    %c0_46 = arith.constant 0 : index
    %c2_47 = arith.constant 2 : index
    %48 = arith.index_cast %47 : i32 to index
    %c1_48 = arith.constant 1 : index
    %c0_49 = arith.constant 0 : index
    %49 = vector.load %arg2[%c0_46, %c2_47, %48, %c1_48, %c0_49] : memref<1x4x9x9x32xbf16, #tpu.memory_space<vmem>>, vector<1x1x8x8x32xbf16>
    %50 = vector.shape_cast %49 : vector<1x1x8x8x32xbf16> to vector<1x8x8x32xbf16>
    %51 = vector.shape_cast %50 : vector<1x8x8x32xbf16> to vector<64x32xbf16>
    %c1_50 = arith.constant 1 : index
    %c2_51 = arith.constant 2 : index
    %c0_52 = arith.constant 0 : index
    %c0_53 = arith.constant 0 : index
    %52 = vector.load %arg3[%c1_50, %c2_51, %c0_52, %c0_53] : memref<3x3x32x32xbf16, #tpu.memory_space<vmem>>, vector<1x1x32x32xbf16>
    %53 = vector.shape_cast %52 : vector<1x1x32x32xbf16> to vector<32x32xbf16>
    %cst_54 = arith.constant dense<0.000000e+00> : vector<64x32xf32>
    %54 = tpu.matmul %51, %53, %cst_54 {dimension_numbers = #tpu.dot_dimension_numbers<[1], [0], [0], [1], [0, 0, 1, 1], [], []>} : vector<64x32xbf16>, vector<32x32xbf16>, vector<64x32xf32> -> vector<64x32xf32>
    %55 = arith.addf %46, %54 : vector<64x32xf32>
    %c1_i32 = arith.constant 1 : i32
    %56 = arith.addi %0, %c1_i32 : i32
    %c0_55 = arith.constant 0 : index
    %c0_56 = arith.constant 0 : index
    %57 = arith.index_cast %56 : i32 to index
    %c0_57 = arith.constant 0 : index
    %c0_58 = arith.constant 0 : index
    %58 = vector.load %arg2[%c0_55, %c0_56, %57, %c0_57, %c0_58] : memref<1x4x9x9x32xbf16, #tpu.memory_space<vmem>>, vector<1x1x8x8x32xbf16>
    %59 = vector.shape_cast %58 : vector<1x1x8x8x32xbf16> to vector<1x8x8x32xbf16>
    %60 = vector.shape_cast %59 : vector<1x8x8x32xbf16> to vector<64x32xbf16>
    %c2_59 = arith.constant 2 : index
    %c0_60 = arith.constant 0 : index
    %c0_61 = arith.constant 0 : index
    %c0_62 = arith.constant 0 : index
    %61 = vector.load %arg3[%c2_59, %c0_60, %c0_61, %c0_62] : memref<3x3x32x32xbf16, #tpu.memory_space<vmem>>, vector<1x1x32x32xbf16>
    %62 = vector.shape_cast %61 : vector<1x1x32x32xbf16> to vector<32x32xbf16>
    %cst_63 = arith.constant dense<0.000000e+00> : vector<64x32xf32>
    %63 = tpu.matmul %60, %62, %cst_63 {dimension_numbers = #tpu.dot_dimension_numbers<[1], [0], [0], [1], [0, 0, 1, 1], [], []>} : vector<64x32xbf16>, vector<32x32xbf16>, vector<64x32xf32> -> vector<64x32xf32>
    %64 = arith.addf %55, %63 : vector<64x32xf32>
    %c1_i32_64 = arith.constant 1 : i32
    %65 = arith.addi %0, %c1_i32_64 : i32
    %c0_65 = arith.constant 0 : index
    %c1_66 = arith.constant 1 : index
    %66 = arith.index_cast %65 : i32 to index
    %c0_67 = arith.constant 0 : index
    %c0_68 = arith.constant 0 : index
    %67 = vector.load %arg2[%c0_65, %c1_66, %66, %c0_67, %c0_68] : memref<1x4x9x9x32xbf16, #tpu.memory_space<vmem>>, vector<1x1x8x8x32xbf16>
    %68 = vector.shape_cast %67 : vector<1x1x8x8x32xbf16> to vector<1x8x8x32xbf16>
    %69 = vector.shape_cast %68 : vector<1x8x8x32xbf16> to vector<64x32xbf16>
    %c2_69 = arith.constant 2 : index
    %c1_70 = arith.constant 1 : index
    %c0_71 = arith.constant 0 : index
    %c0_72 = arith.constant 0 : index
    %70 = vector.load %arg3[%c2_69, %c1_70, %c0_71, %c0_72] : memref<3x3x32x32xbf16, #tpu.memory_space<vmem>>, vector<1x1x32x32xbf16>
    %71 = vector.shape_cast %70 : vector<1x1x32x32xbf16> to vector<32x32xbf16>
    %cst_73 = arith.constant dense<0.000000e+00> : vector<64x32xf32>
    %72 = tpu.matmul %69, %71, %cst_73 {dimension_numbers = #tpu.dot_dimension_numbers<[1], [0], [0], [1], [0, 0, 1, 1], [], []>} : vector<64x32xbf16>, vector<32x32xbf16>, vector<64x32xf32> -> vector<64x32xf32>
    %73 = arith.addf %64, %72 : vector<64x32xf32>
    %c1_i32_74 = arith.constant 1 : i32
    %74 = arith.addi %0, %c1_i32_74 : i32
    %c0_75 = arith.constant 0 : index
    %c0_76 = arith.constant 0 : index
    %75 = arith.index_cast %74 : i32 to index
    %c1_77 = arith.constant 1 : index
    %c0_78 = arith.constant 0 : index
    %76 = vector.load %arg2[%c0_75, %c0_76, %75, %c1_77, %c0_78] : memref<1x4x9x9x32xbf16, #tpu.memory_space<vmem>>, vector<1x1x8x8x32xbf16>
    %77 = vector.shape_cast %76 : vector<1x1x8x8x32xbf16> to vector<1x8x8x32xbf16>
    %78 = vector.shape_cast %77 : vector<1x8x8x32xbf16> to vector<64x32xbf16>
    %c2_79 = arith.constant 2 : index
    %c2_80 = arith.constant 2 : index
    %c0_81 = arith.constant 0 : index
    %c0_82 = arith.constant 0 : index
    %79 = vector.load %arg3[%c2_79, %c2_80, %c0_81, %c0_82] : memref<3x3x32x32xbf16, #tpu.memory_space<vmem>>, vector<1x1x32x32xbf16>
    %80 = vector.shape_cast %79 : vector<1x1x32x32xbf16> to vector<32x32xbf16>
    %cst_83 = arith.constant dense<0.000000e+00> : vector<64x32xf32>
    %81 = tpu.matmul %78, %80, %cst_83 {dimension_numbers = #tpu.dot_dimension_numbers<[1], [0], [0], [1], [0, 0, 1, 1], [], []>} : vector<64x32xbf16>, vector<32x32xbf16>, vector<64x32xf32> -> vector<64x32xf32>
    %82 = arith.addf %73, %81 : vector<64x32xf32>
    %c0_84 = arith.constant 0 : index
    %c0_85 = arith.constant 0 : index
    %83 = vector.load %arg4[%c0_84, %c0_85] : memref<1x32xf32, #tpu.memory_space<vmem>>, vector<1x32xf32>
    %84 = vector.broadcast %83 : vector<1x32xf32> to vector<64x32xf32>
    %85 = arith.mulf %82, %84 : vector<64x32xf32>
    %c0_86 = arith.constant 0 : index
    %c0_87 = arith.constant 0 : index
    %86 = vector.load %arg5[%c0_86, %c0_87] : memref<1x32xf32, #tpu.memory_space<vmem>>, vector<1x32xf32>
    %87 = vector.broadcast %86 : vector<1x32xf32> to vector<64x32xf32>
    %88 = arith.addf %85, %87 : vector<64x32xf32>
    %cst_88 = arith.constant 0.000000e+00 : f32
    %89 = vector.broadcast %cst_88 : f32 to vector<64x32xf32>
    %90 = arith.maximumf %88, %89 : vector<64x32xf32>
    %91 = arith.truncf %90 : vector<64x32xf32> to vector<64x32xbf16>
    %c0_89 = arith.constant 0 : index
    %c0_90 = arith.constant 0 : index
    %92 = vector.load %arg6[%c0_89, %c0_90] : memref<32x8xbf16, #tpu.memory_space<vmem>>, vector<32x8xbf16>
    %cst_91 = arith.constant dense<0.000000e+00> : vector<64x8xf32>
    %93 = tpu.matmul %91, %92, %cst_91 {dimension_numbers = #tpu.dot_dimension_numbers<[1], [0], [0], [1], [0, 0, 1, 1], [], []>} : vector<64x32xbf16>, vector<32x8xbf16>, vector<64x8xf32> -> vector<64x8xf32>
    %c0_92 = arith.constant 0 : index
    %c0_93 = arith.constant 0 : index
    %94 = vector.load %arg7[%c0_92, %c0_93] : memref<1x8xf32, #tpu.memory_space<vmem>>, vector<1x8xf32>
    %95 = vector.broadcast %94 : vector<1x8xf32> to vector<64x8xf32>
    %96 = arith.mulf %93, %95 : vector<64x8xf32>
    %c0_94 = arith.constant 0 : index
    %c0_95 = arith.constant 0 : index
    %97 = vector.load %arg8[%c0_94, %c0_95] : memref<1x8xf32, #tpu.memory_space<vmem>>, vector<1x8xf32>
    %98 = vector.broadcast %97 : vector<1x8xf32> to vector<64x8xf32>
    %99 = arith.addf %96, %98 : vector<64x8xf32>
    %c0_96 = arith.constant 0 : index
    %c0_97 = arith.constant 0 : index
    %c0_98 = arith.constant 0 : index
    %c0_99 = arith.constant 0 : index
    %100 = vector.load %arg9[%c0_96, %c0_97, %c0_98, %c0_99] : memref<1x8x8x8xf32, #tpu.memory_space<vmem>>, vector<1x8x8x8xf32>
    %101 = vector.shape_cast %100 : vector<1x8x8x8xf32> to vector<64x8xf32>
    %102 = arith.addf %99, %101 : vector<64x8xf32>
    %cst_100 = arith.constant 0.000000e+00 : f32
    %103 = vector.broadcast %cst_100 : f32 to vector<64x8xf32>
    %104 = arith.maximumf %102, %103 : vector<64x8xf32>
    %105 = vector.shape_cast %104 : vector<64x8xf32> to vector<1x8x8x8xf32>
    %c0_101 = arith.constant 0 : index
    %c0_102 = arith.constant 0 : index
    %c0_103 = arith.constant 0 : index
    %c0_104 = arith.constant 0 : index
    %106 = vector.load %arg10[%c0_101, %c0_102, %c0_103, %c0_104] : memref<1x8x8x8xf32, #tpu.memory_space<vmem>>, vector<1x8x8x8xf32>
    tpu.vector_store %arg10[%c0_101, %c0_102, %c0_103, %c0_104], %105 {strides = array<i32>} : memref<1x8x8x8xf32, #tpu.memory_space<vmem>>, vector<1x8x8x8xf32>,
    return
  }
  func.func @transform_0(%arg0: i32, %arg1: i32) -> (i32, i32, i32, i32, i32) {
    %c0_i32 = arith.constant 0 : i32
    %c0_i32_0 = arith.constant 0 : i32
    %c0_i32_1 = arith.constant 0 : i32
    %c0_i32_2 = arith.constant 0 : i32
    %c0_i32_3 = arith.constant 0 : i32
    return %arg0, %c0_i32, %c0_i32_0, %c0_i32_1, %c0_i32_2 : i32, i32, i32, i32, i32
  }
  func.func @transform_1(%arg0: i32, %arg1: i32) -> (i32, i32, i32, i32) {
    %c0_i32 = arith.constant 0 : i32
    %c0_i32_0 = arith.constant 0 : i32
    %c0_i32_1 = arith.constant 0 : i32
    %c0_i32_2 = arith.constant 0 : i32
    %c0_i32_3 = arith.constant 0 : i32
    return %c0_i32, %c0_i32_0, %c0_i32_1, %c0_i32_2 : i32, i32, i32, i32
  }
  func.func @transform_2(%arg0: i32, %arg1: i32) -> (i32, i32) {
    %c0_i32 = arith.constant 0 : i32
    %c0_i32_0 = arith.constant 0 : i32
    %c0_i32_1 = arith.constant 0 : i32
    return %c0_i32, %c0_i32_0 : i32, i32
  }
  func.func @transform_3(%arg0: i32, %arg1: i32) -> (i32, i32) {
    %c0_i32 = arith.constant 0 : i32
    %c0_i32_0 = arith.constant 0 : i32
    %c0_i32_1 = arith.constant 0 : i32
    return %c0_i32, %c0_i32_0 : i32, i32
  }
  func.func @transform_4(%arg0: i32, %arg1: i32) -> (i32, i32) {
    %c0_i32 = arith.constant 0 : i32
    %c0_i32_0 = arith.constant 0 : i32
    %c0_i32_1 = arith.constant 0 : i32
    return %c0_i32, %c0_i32_0 : i32, i32
  }
  func.func @transform_5(%arg0: i32, %arg1: i32) -> (i32, i32) {
    %c0_i32 = arith.constant 0 : i32
    %c0_i32_0 = arith.constant 0 : i32
    %c0_i32_1 = arith.constant 0 : i32
    return %c0_i32, %c0_i32_0 : i32, i32
  }
  func.func @transform_6(%arg0: i32, %arg1: i32) -> (i32, i32) {
    %c0_i32 = arith.constant 0 : i32
    %c0_i32_0 = arith.constant 0 : i32
    %c0_i32_1 = arith.constant 0 : i32
    return %c0_i32, %c0_i32_0 : i32, i32
  }
  func.func @transform_7(%arg0: i32, %arg1: i32) -> (i32, i32, i32, i32) {
    %c0_i32 = arith.constant 0 : i32
    %c0_i32_0 = arith.constant 0 : i32
    %c0_i32_1 = arith.constant 0 : i32
    return %arg0, %arg1, %c0_i32, %c0_i32_0 : i32, i32, i32, i32
  }
  func.func @transform_8(%arg0: i32, %arg1: i32) -> (i32, i32, i32, i32) {
    %c0_i32 = arith.constant 0 : i32
    %c0_i32_0 = arith.constant 0 : i32
    %c0_i32_1 = arith.constant 0 : i32
    return %arg0, %arg1, %c0_i32, %c0_i32_0 : i32, i32, i32, i32
  }
}

module attributes {stable_mosaic.version = 11 : i64} {
  func.func @_conv2_conv3_kernel(%arg0: i32, %arg1: i32, %arg2: memref<1x1x10x10x32xbf16, #tpu.memory_space<vmem>>, %arg3: memref<3x3x32x32xbf16, #tpu.memory_space<vmem>>, %arg4: memref<1x32xf32, #tpu.memory_space<vmem>>, %arg5: memref<1x32xf32, #tpu.memory_space<vmem>>, %arg6: memref<32x8xbf16, #tpu.memory_space<vmem>>, %arg7: memref<1x8xf32, #tpu.memory_space<vmem>>, %arg8: memref<1x8xf32, #tpu.memory_space<vmem>>, %arg9: memref<1x8x8x8xf32, #tpu.memory_space<vmem>>, %arg10: memref<1x8x8x8xf32, #tpu.memory_space<vmem>>) attributes {dimension_semantics = [#tpu.dimension_semantics<parallel>, #tpu.dimension_semantics<parallel>], iteration_bounds = array<i64: 2, 1>, scalar_prefetch = 0 : i64, scratch_operands = 0 : i64, tpu.core_type = #tpu.core_type<tc>, window_params = [{transform_indices = @transform_0, window_bounds = array<i64: 1, 1, 10, 10, 32>}, {pipeline_mode = #tpu.pipeline_mode<synchronous>, transform_indices = @transform_1, window_bounds = array<i64: 3, 3, 32, 32>}, {pipeline_mode = #tpu.pipeline_mode<synchronous>, transform_indices = @transform_2, window_bounds = array<i64: 1, 32>}, {pipeline_mode = #tpu.pipeline_mode<synchronous>, transform_indices = @transform_3, window_bounds = array<i64: 1, 32>}, {pipeline_mode = #tpu.pipeline_mode<synchronous>, transform_indices = @transform_4, window_bounds = array<i64: 32, 8>}, {pipeline_mode = #tpu.pipeline_mode<synchronous>, transform_indices = @transform_5, window_bounds = array<i64: 1, 8>}, {pipeline_mode = #tpu.pipeline_mode<synchronous>, transform_indices = @transform_6, window_bounds = array<i64: 1, 8>}, {transform_indices = @transform_7, window_bounds = array<i64: 1, 8, 8, 8>}, {transform_indices = @transform_8, window_bounds = array<i64: 1, 8, 8, 8>}]} {
    %c8_i32 = arith.constant 8 : i32
    %0 = arith.muli %arg1, %c8_i32 : i32
    %cst = arith.constant 0.000000e+00 : f32
    %1 = vector.broadcast %cst : f32 to vector<64x32xf32>
    %c0_i32 = arith.constant 0 : i32
    %2 = arith.addi %0, %c0_i32 : i32
    %c0 = arith.constant 0 : index
    %c0_0 = arith.constant 0 : index
    %3 = arith.index_cast %2 : i32 to index
    %c0_1 = arith.constant 0 : index
    %c0_2 = arith.constant 0 : index
    %4 = vector.load %arg2[%c0, %c0_0, %3, %c0_1, %c0_2] : memref<1x1x10x10x32xbf16, #tpu.memory_space<vmem>>, vector<1x1x8x8x32xbf16>
    %5 = vector.shape_cast %4 : vector<1x1x8x8x32xbf16> to vector<1x8x8x32xbf16>
    %6 = vector.shape_cast %5 : vector<1x8x8x32xbf16> to vector<64x32xbf16>
    %c0_3 = arith.constant 0 : index
    %c0_4 = arith.constant 0 : index
    %c0_5 = arith.constant 0 : index
    %c0_6 = arith.constant 0 : index
    %7 = vector.load %arg3[%c0_3, %c0_4, %c0_5, %c0_6] : memref<3x3x32x32xbf16, #tpu.memory_space<vmem>>, vector<1x1x32x32xbf16>
    %8 = vector.shape_cast %7 : vector<1x1x32x32xbf16> to vector<32x32xbf16>
    %cst_7 = arith.constant dense<0.000000e+00> : vector<64x32xf32>
    %9 = tpu.matmul %6, %8, %cst_7 {dimension_numbers = #tpu.dot_dimension_numbers<[1], [0], [0], [1], [0, 0, 1, 1], [], []>} : vector<64x32xbf16>, vector<32x32xbf16>, vector<64x32xf32> -> vector<64x32xf32>
    %10 = arith.addf %1, %9 : vector<64x32xf32>
    %c0_i32_8 = arith.constant 0 : i32
    %11 = arith.addi %0, %c0_i32_8 : i32
    %c0_9 = arith.constant 0 : index
    %c0_10 = arith.constant 0 : index
    %12 = arith.index_cast %11 : i32 to index
    %c1 = arith.constant 1 : index
    %c0_11 = arith.constant 0 : index
    %13 = vector.load %arg2[%c0_9, %c0_10, %12, %c1, %c0_11] : memref<1x1x10x10x32xbf16, #tpu.memory_space<vmem>>, vector<1x1x8x8x32xbf16>
    %14 = vector.shape_cast %13 : vector<1x1x8x8x32xbf16> to vector<1x8x8x32xbf16>
    %15 = vector.shape_cast %14 : vector<1x8x8x32xbf16> to vector<64x32xbf16>
    %c0_12 = arith.constant 0 : index
    %c1_13 = arith.constant 1 : index
    %c0_14 = arith.constant 0 : index
    %c0_15 = arith.constant 0 : index
    %16 = vector.load %arg3[%c0_12, %c1_13, %c0_14, %c0_15] : memref<3x3x32x32xbf16, #tpu.memory_space<vmem>>, vector<1x1x32x32xbf16>
    %17 = vector.shape_cast %16 : vector<1x1x32x32xbf16> to vector<32x32xbf16>
    %cst_16 = arith.constant dense<0.000000e+00> : vector<64x32xf32>
    %18 = tpu.matmul %15, %17, %cst_16 {dimension_numbers = #tpu.dot_dimension_numbers<[1], [0], [0], [1], [0, 0, 1, 1], [], []>} : vector<64x32xbf16>, vector<32x32xbf16>, vector<64x32xf32> -> vector<64x32xf32>
    %19 = arith.addf %10, %18 : vector<64x32xf32>
    %c0_i32_17 = arith.constant 0 : i32
    %20 = arith.addi %0, %c0_i32_17 : i32
    %c0_18 = arith.constant 0 : index
    %c0_19 = arith.constant 0 : index
    %21 = arith.index_cast %20 : i32 to index
    %c2 = arith.constant 2 : index
    %c0_20 = arith.constant 0 : index
    %22 = vector.load %arg2[%c0_18, %c0_19, %21, %c2, %c0_20] : memref<1x1x10x10x32xbf16, #tpu.memory_space<vmem>>, vector<1x1x8x8x32xbf16>
    %23 = vector.shape_cast %22 : vector<1x1x8x8x32xbf16> to vector<1x8x8x32xbf16>
    %24 = vector.shape_cast %23 : vector<1x8x8x32xbf16> to vector<64x32xbf16>
    %c0_21 = arith.constant 0 : index
    %c2_22 = arith.constant 2 : index
    %c0_23 = arith.constant 0 : index
    %c0_24 = arith.constant 0 : index
    %25 = vector.load %arg3[%c0_21, %c2_22, %c0_23, %c0_24] : memref<3x3x32x32xbf16, #tpu.memory_space<vmem>>, vector<1x1x32x32xbf16>
    %26 = vector.shape_cast %25 : vector<1x1x32x32xbf16> to vector<32x32xbf16>
    %cst_25 = arith.constant dense<0.000000e+00> : vector<64x32xf32>
    %27 = tpu.matmul %24, %26, %cst_25 {dimension_numbers = #tpu.dot_dimension_numbers<[1], [0], [0], [1], [0, 0, 1, 1], [], []>} : vector<64x32xbf16>, vector<32x32xbf16>, vector<64x32xf32> -> vector<64x32xf32>
    %28 = arith.addf %19, %27 : vector<64x32xf32>
    %c1_i32 = arith.constant 1 : i32
    %29 = arith.addi %0, %c1_i32 : i32
    %c0_26 = arith.constant 0 : index
    %c0_27 = arith.constant 0 : index
    %30 = arith.index_cast %29 : i32 to index
    %c0_28 = arith.constant 0 : index
    %c0_29 = arith.constant 0 : index
    %31 = vector.load %arg2[%c0_26, %c0_27, %30, %c0_28, %c0_29] : memref<1x1x10x10x32xbf16, #tpu.memory_space<vmem>>, vector<1x1x8x8x32xbf16>
    %32 = vector.shape_cast %31 : vector<1x1x8x8x32xbf16> to vector<1x8x8x32xbf16>
    %33 = vector.shape_cast %32 : vector<1x8x8x32xbf16> to vector<64x32xbf16>
    %c1_30 = arith.constant 1 : index
    %c0_31 = arith.constant 0 : index
    %c0_32 = arith.constant 0 : index
    %c0_33 = arith.constant 0 : index
    %34 = vector.load %arg3[%c1_30, %c0_31, %c0_32, %c0_33] : memref<3x3x32x32xbf16, #tpu.memory_space<vmem>>, vector<1x1x32x32xbf16>
    %35 = vector.shape_cast %34 : vector<1x1x32x32xbf16> to vector<32x32xbf16>
    %cst_34 = arith.constant dense<0.000000e+00> : vector<64x32xf32>
    %36 = tpu.matmul %33, %35, %cst_34 {dimension_numbers = #tpu.dot_dimension_numbers<[1], [0], [0], [1], [0, 0, 1, 1], [], []>} : vector<64x32xbf16>, vector<32x32xbf16>, vector<64x32xf32> -> vector<64x32xf32>
    %37 = arith.addf %28, %36 : vector<64x32xf32>
    %c1_i32_35 = arith.constant 1 : i32
    %38 = arith.addi %0, %c1_i32_35 : i32
    %c0_36 = arith.constant 0 : index
    %c0_37 = arith.constant 0 : index
    %39 = arith.index_cast %38 : i32 to index
    %c1_38 = arith.constant 1 : index
    %c0_39 = arith.constant 0 : index
    %40 = vector.load %arg2[%c0_36, %c0_37, %39, %c1_38, %c0_39] : memref<1x1x10x10x32xbf16, #tpu.memory_space<vmem>>, vector<1x1x8x8x32xbf16>
    %41 = vector.shape_cast %40 : vector<1x1x8x8x32xbf16> to vector<1x8x8x32xbf16>
    %42 = vector.shape_cast %41 : vector<1x8x8x32xbf16> to vector<64x32xbf16>
    %c1_40 = arith.constant 1 : index
    %c1_41 = arith.constant 1 : index
    %c0_42 = arith.constant 0 : index
    %c0_43 = arith.constant 0 : index
    %43 = vector.load %arg3[%c1_40, %c1_41, %c0_42, %c0_43] : memref<3x3x32x32xbf16, #tpu.memory_space<vmem>>, vector<1x1x32x32xbf16>
    %44 = vector.shape_cast %43 : vector<1x1x32x32xbf16> to vector<32x32xbf16>
    %cst_44 = arith.constant dense<0.000000e+00> : vector<64x32xf32>
    %45 = tpu.matmul %42, %44, %cst_44 {dimension_numbers = #tpu.dot_dimension_numbers<[1], [0], [0], [1], [0, 0, 1, 1], [], []>} : vector<64x32xbf16>, vector<32x32xbf16>, vector<64x32xf32> -> vector<64x32xf32>
    %46 = arith.addf %37, %45 : vector<64x32xf32>
    %c1_i32_45 = arith.constant 1 : i32
    %47 = arith.addi %0, %c1_i32_45 : i32
    %c0_46 = arith.constant 0 : index
    %c0_47 = arith.constant 0 : index
    %48 = arith.index_cast %47 : i32 to index
    %c2_48 = arith.constant 2 : index
    %c0_49 = arith.constant 0 : index
    %49 = vector.load %arg2[%c0_46, %c0_47, %48, %c2_48, %c0_49] : memref<1x1x10x10x32xbf16, #tpu.memory_space<vmem>>, vector<1x1x8x8x32xbf16>
    %50 = vector.shape_cast %49 : vector<1x1x8x8x32xbf16> to vector<1x8x8x32xbf16>
    %51 = vector.shape_cast %50 : vector<1x8x8x32xbf16> to vector<64x32xbf16>
    %c1_50 = arith.constant 1 : index
    %c2_51 = arith.constant 2 : index
    %c0_52 = arith.constant 0 : index
    %c0_53 = arith.constant 0 : index
    %52 = vector.load %arg3[%c1_50, %c2_51, %c0_52, %c0_53] : memref<3x3x32x32xbf16, #tpu.memory_space<vmem>>, vector<1x1x32x32xbf16>
    %53 = vector.shape_cast %52 : vector<1x1x32x32xbf16> to vector<32x32xbf16>
    %cst_54 = arith.constant dense<0.000000e+00> : vector<64x32xf32>
    %54 = tpu.matmul %51, %53, %cst_54 {dimension_numbers = #tpu.dot_dimension_numbers<[1], [0], [0], [1], [0, 0, 1, 1], [], []>} : vector<64x32xbf16>, vector<32x32xbf16>, vector<64x32xf32> -> vector<64x32xf32>
    %55 = arith.addf %46, %54 : vector<64x32xf32>
    %c2_i32 = arith.constant 2 : i32
    %56 = arith.addi %0, %c2_i32 : i32
    %c0_55 = arith.constant 0 : index
    %c0_56 = arith.constant 0 : index
    %57 = arith.index_cast %56 : i32 to index
    %c0_57 = arith.constant 0 : index
    %c0_58 = arith.constant 0 : index
    %58 = vector.load %arg2[%c0_55, %c0_56, %57, %c0_57, %c0_58] : memref<1x1x10x10x32xbf16, #tpu.memory_space<vmem>>, vector<1x1x8x8x32xbf16>
    %59 = vector.shape_cast %58 : vector<1x1x8x8x32xbf16> to vector<1x8x8x32xbf16>
    %60 = vector.shape_cast %59 : vector<1x8x8x32xbf16> to vector<64x32xbf16>
    %c2_59 = arith.constant 2 : index
    %c0_60 = arith.constant 0 : index
    %c0_61 = arith.constant 0 : index
    %c0_62 = arith.constant 0 : index
    %61 = vector.load %arg3[%c2_59, %c0_60, %c0_61, %c0_62] : memref<3x3x32x32xbf16, #tpu.memory_space<vmem>>, vector<1x1x32x32xbf16>
    %62 = vector.shape_cast %61 : vector<1x1x32x32xbf16> to vector<32x32xbf16>
    %cst_63 = arith.constant dense<0.000000e+00> : vector<64x32xf32>
    %63 = tpu.matmul %60, %62, %cst_63 {dimension_numbers = #tpu.dot_dimension_numbers<[1], [0], [0], [1], [0, 0, 1, 1], [], []>} : vector<64x32xbf16>, vector<32x32xbf16>, vector<64x32xf32> -> vector<64x32xf32>
    %64 = arith.addf %55, %63 : vector<64x32xf32>
    %c2_i32_64 = arith.constant 2 : i32
    %65 = arith.addi %0, %c2_i32_64 : i32
    %c0_65 = arith.constant 0 : index
    %c0_66 = arith.constant 0 : index
    %66 = arith.index_cast %65 : i32 to index
    %c1_67 = arith.constant 1 : index
    %c0_68 = arith.constant 0 : index
    %67 = vector.load %arg2[%c0_65, %c0_66, %66, %c1_67, %c0_68] : memref<1x1x10x10x32xbf16, #tpu.memory_space<vmem>>, vector<1x1x8x8x32xbf16>
    %68 = vector.shape_cast %67 : vector<1x1x8x8x32xbf16> to vector<1x8x8x32xbf16>
    %69 = vector.shape_cast %68 : vector<1x8x8x32xbf16> to vector<64x32xbf16>
    %c2_69 = arith.constant 2 : index
    %c1_70 = arith.constant 1 : index
    %c0_71 = arith.constant 0 : index
    %c0_72 = arith.constant 0 : index
    %70 = vector.load %arg3[%c2_69, %c1_70, %c0_71, %c0_72] : memref<3x3x32x32xbf16, #tpu.memory_space<vmem>>, vector<1x1x32x32xbf16>
    %71 = vector.shape_cast %70 : vector<1x1x32x32xbf16> to vector<32x32xbf16>
    %cst_73 = arith.constant dense<0.000000e+00> : vector<64x32xf32>
    %72 = tpu.matmul %69, %71, %cst_73 {dimension_numbers = #tpu.dot_dimension_numbers<[1], [0], [0], [1], [0, 0, 1, 1], [], []>} : vector<64x32xbf16>, vector<32x32xbf16>, vector<64x32xf32> -> vector<64x32xf32>
    %73 = arith.addf %64, %72 : vector<64x32xf32>
    %c2_i32_74 = arith.constant 2 : i32
    %74 = arith.addi %0, %c2_i32_74 : i32
    %c0_75 = arith.constant 0 : index
    %c0_76 = arith.constant 0 : index
    %75 = arith.index_cast %74 : i32 to index
    %c2_77 = arith.constant 2 : index
    %c0_78 = arith.constant 0 : index
    %76 = vector.load %arg2[%c0_75, %c0_76, %75, %c2_77, %c0_78] : memref<1x1x10x10x32xbf16, #tpu.memory_space<vmem>>, vector<1x1x8x8x32xbf16>
    %77 = vector.shape_cast %76 : vector<1x1x8x8x32xbf16> to vector<1x8x8x32xbf16>
    %78 = vector.shape_cast %77 : vector<1x8x8x32xbf16> to vector<64x32xbf16>
    %c2_79 = arith.constant 2 : index
    %c2_80 = arith.constant 2 : index
    %c0_81 = arith.constant 0 : index
    %c0_82 = arith.constant 0 : index
    %79 = vector.load %arg3[%c2_79, %c2_80, %c0_81, %c0_82] : memref<3x3x32x32xbf16, #tpu.memory_space<vmem>>, vector<1x1x32x32xbf16>
    %80 = vector.shape_cast %79 : vector<1x1x32x32xbf16> to vector<32x32xbf16>
    %cst_83 = arith.constant dense<0.000000e+00> : vector<64x32xf32>
    %81 = tpu.matmul %78, %80, %cst_83 {dimension_numbers = #tpu.dot_dimension_numbers<[1], [0], [0], [1], [0, 0, 1, 1], [], []>} : vector<64x32xbf16>, vector<32x32xbf16>, vector<64x32xf32> -> vector<64x32xf32>
    %82 = arith.addf %73, %81 : vector<64x32xf32>
    %c0_84 = arith.constant 0 : index
    %c0_85 = arith.constant 0 : index
    %83 = vector.load %arg4[%c0_84, %c0_85] : memref<1x32xf32, #tpu.memory_space<vmem>>, vector<1x32xf32>
    %84 = vector.broadcast %83 : vector<1x32xf32> to vector<64x32xf32>
    %85 = arith.mulf %82, %84 : vector<64x32xf32>
    %c0_86 = arith.constant 0 : index
    %c0_87 = arith.constant 0 : index
    %86 = vector.load %arg5[%c0_86, %c0_87] : memref<1x32xf32, #tpu.memory_space<vmem>>, vector<1x32xf32>
    %87 = vector.broadcast %86 : vector<1x32xf32> to vector<64x32xf32>
    %88 = arith.addf %85, %87 : vector<64x32xf32>
    %cst_88 = arith.constant 0.000000e+00 : f32
    %89 = vector.broadcast %cst_88 : f32 to vector<64x32xf32>
    %90 = arith.maximumf %88, %89 : vector<64x32xf32>
    %91 = arith.truncf %90 : vector<64x32xf32> to vector<64x32xbf16>
    %c0_89 = arith.constant 0 : index
    %c0_90 = arith.constant 0 : index
    %92 = vector.load %arg6[%c0_89, %c0_90] : memref<32x8xbf16, #tpu.memory_space<vmem>>, vector<32x8xbf16>
    %cst_91 = arith.constant dense<0.000000e+00> : vector<64x8xf32>
    %93 = tpu.matmul %91, %92, %cst_91 {dimension_numbers = #tpu.dot_dimension_numbers<[1], [0], [0], [1], [0, 0, 1, 1], [], []>} : vector<64x32xbf16>, vector<32x8xbf16>, vector<64x8xf32> -> vector<64x8xf32>
    %c0_92 = arith.constant 0 : index
    %c0_93 = arith.constant 0 : index
    %94 = vector.load %arg7[%c0_92, %c0_93] : memref<1x8xf32, #tpu.memory_space<vmem>>, vector<1x8xf32>
    %95 = vector.broadcast %94 : vector<1x8xf32> to vector<64x8xf32>
    %96 = arith.mulf %93, %95 : vector<64x8xf32>
    %c0_94 = arith.constant 0 : index
    %c0_95 = arith.constant 0 : index
    %97 = vector.load %arg8[%c0_94, %c0_95] : memref<1x8xf32, #tpu.memory_space<vmem>>, vector<1x8xf32>
    %98 = vector.broadcast %97 : vector<1x8xf32> to vector<64x8xf32>
    %99 = arith.addf %96, %98 : vector<64x8xf32>
    %c0_96 = arith.constant 0 : index
    %c0_97 = arith.constant 0 : index
    %c0_98 = arith.constant 0 : index
    %c0_99 = arith.constant 0 : index
    %100 = vector.load %arg9[%c0_96, %c0_97, %c0_98, %c0_99] : memref<1x8x8x8xf32, #tpu.memory_space<vmem>>, vector<1x8x8x8xf32>
    %101 = vector.shape_cast %100 : vector<1x8x8x8xf32> to vector<64x8xf32>
    %102 = arith.addf %99, %101 : vector<64x8xf32>
    %cst_100 = arith.constant 0.000000e+00 : f32
    %103 = vector.broadcast %cst_100 : f32 to vector<64x8xf32>
    %104 = arith.maximumf %102, %103 : vector<64x8xf32>
    %105 = vector.shape_cast %104 : vector<64x8xf32> to vector<1x8x8x8xf32>
    %c0_101 = arith.constant 0 : index
    %c0_102 = arith.constant 0 : index
    %c0_103 = arith.constant 0 : index
    %c0_104 = arith.constant 0 : index
    %106 = vector.load %arg10[%c0_101, %c0_102, %c0_103, %c0_104] : memref<1x8x8x8xf32, #tpu.memory_space<vmem>>, vector<1x8x8x8xf32>
    tpu.vector_store %arg10[%c0_101, %c0_102, %c0_103, %c0_104], %105 {strides = array<i32>} : memref<1x8x8x8xf32, #tpu.memory_space<vmem>>, vector<1x8x8x8xf32>,
    return
  }
  func.func @transform_0(%arg0: i32, %arg1: i32) -> (i32, i32, i32, i32, i32) {
    %c0_i32 = arith.constant 0 : i32
    %c0_i32_0 = arith.constant 0 : i32
    %c0_i32_1 = arith.constant 0 : i32
    %c0_i32_2 = arith.constant 0 : i32
    %c0_i32_3 = arith.constant 0 : i32
    return %arg0, %c0_i32, %c0_i32_0, %c0_i32_1, %c0_i32_2 : i32, i32, i32, i32, i32
  }
  func.func @transform_1(%arg0: i32, %arg1: i32) -> (i32, i32, i32, i32) {
    %c0_i32 = arith.constant 0 : i32
    %c0_i32_0 = arith.constant 0 : i32
    %c0_i32_1 = arith.constant 0 : i32
    %c0_i32_2 = arith.constant 0 : i32
    %c0_i32_3 = arith.constant 0 : i32
    return %c0_i32, %c0_i32_0, %c0_i32_1, %c0_i32_2 : i32, i32, i32, i32
  }
  func.func @transform_2(%arg0: i32, %arg1: i32) -> (i32, i32) {
    %c0_i32 = arith.constant 0 : i32
    %c0_i32_0 = arith.constant 0 : i32
    %c0_i32_1 = arith.constant 0 : i32
    return %c0_i32, %c0_i32_0 : i32, i32
  }
  func.func @transform_3(%arg0: i32, %arg1: i32) -> (i32, i32) {
    %c0_i32 = arith.constant 0 : i32
    %c0_i32_0 = arith.constant 0 : i32
    %c0_i32_1 = arith.constant 0 : i32
    return %c0_i32, %c0_i32_0 : i32, i32
  }
  func.func @transform_4(%arg0: i32, %arg1: i32) -> (i32, i32) {
    %c0_i32 = arith.constant 0 : i32
    %c0_i32_0 = arith.constant 0 : i32
    %c0_i32_1 = arith.constant 0 : i32
    return %c0_i32, %c0_i32_0 : i32, i32
  }
  func.func @transform_5(%arg0: i32, %arg1: i32) -> (i32, i32) {
    %c0_i32 = arith.constant 0 : i32
    %c0_i32_0 = arith.constant 0 : i32
    %c0_i32_1 = arith.constant 0 : i32
    return %c0_i32, %c0_i32_0 : i32, i32
  }
  func.func @transform_6(%arg0: i32, %arg1: i32) -> (i32, i32) {
    %c0_i32 = arith.constant 0 : i32
    %c0_i32_0 = arith.constant 0 : i32
    %c0_i32_1 = arith.constant 0 : i32
    return %c0_i32, %c0_i32_0 : i32, i32
  }
  func.func @transform_7(%arg0: i32, %arg1: i32) -> (i32, i32, i32, i32) {
    %c0_i32 = arith.constant 0 : i32
    %c0_i32_0 = arith.constant 0 : i32
    %c0_i32_1 = arith.constant 0 : i32
    return %arg0, %arg1, %c0_i32, %c0_i32_0 : i32, i32, i32, i32
  }
  func.func @transform_8(%arg0: i32, %arg1: i32) -> (i32, i32, i32, i32) {
    %c0_i32 = arith.constant 0 : i32
    %c0_i32_0 = arith.constant 0 : i32
    %c0_i32_1 = arith.constant 0 : i32
    return %arg0, %arg1, %c0_i32, %c0_i32_0 : i32, i32, i32, i32
  }
}

</mosaic_0001>

<bundles_post_ra>
// kernel: corblock_s_forward.7
= control target key start
LH: loop header
LB: loop body
LE: loop exit
PB: predicated region body
PF: predicated region fallthrough
CT: control target
= control target key end

     0   :  { %vm68_vm0 = vcmask 1043456   ;;  %vm43_vm1 = vcmask 64512   ;;  %s366_s1 = inlined_call_operand.vmem [shape: bf16[8,8], index: 1, kind: input, shape index: {}]   ;;  %s367_s0 = inlined_call_operand.vmem [shape: f32[128,8], index: 0, kind: input, shape index: {}]   ;;  %s368_s2 = inlined_call_operand.vmem [shape: f32[1,8], index: 2, kind: input, shape index: {}]   ;;  %s369_s3 = inlined_call_operand.vmem [shape: f32[1,8], index: 3, kind: input, shape index: {}]   ;;  %s370_s4 = inlined_call_operand.vmem [shape: f32[128,8], index: 4, kind: output, shape index: {}]  }
   0x1   :  { %v42_v0 = vld [vmem:[%s366_s1] sm:$0xf]  ;;  %v19_v2 = vld [vmem:[%s367_s0 + $0x8] sm:$0xff]  ;;  %v20_v14 = vld [vmem:[%s367_s0 + $0x10] sm:$0xff] }
   0x2   :  { %v18_v1 = vld [vmem:[%s367_s0] sm:$0xff]  ;;  %v70_v3 = vsel %vm68_vm0, %v42_v0, 0  ;;  %v23_v6 = vld [vmem:[%s367_s0 + $0x28] sm:$0xff]  ;;  %v21_v15 = vld [vmem:[%s367_s0 + $0x18] sm:$0xff] }
   0x3   :  { %v34_v4 = vpack.c.bf16 %v19_v2, %v18_v1  ;;  %v22_v5 = vld [vmem:[%s367_s0 + $0x20] sm:$0xff]  ;;  %79 = vmatpush.bf16.msra.mxu0 %v70_v3  ;;  %189 = vmatpush.bf16.msra.mxu1 %v70_v3  ;;  %v27_v9 = vld [vmem:[%s367_s0 + $0x48] sm:$0xff]  ;;  %v24_v16 = vld [vmem:[%s367_s0 + $0x30] sm:$0xff]  ;;  %v35_v22 = vpack.c.bf16 %v21_v15, %v20_v14 }
   0x4   :  { %v26_v7 = vld [vmem:[%s367_s0 + $0x40] sm:$0xff]  ;;  %v36_v8 = vpack.c.bf16 %v23_v6, %v22_v5  ;;  %v31_v11 = vld [vmem:[%s367_s0 + $0x68] sm:$0xff]  ;;  %190 = vmatpush.bf16.msra.mxu2 %v70_v3  ;;  %191 = vmatpush.bf16.msra.mxu3 %v70_v3  ;;  %v25_v17 = vld [vmem:[%s367_s0 + $0x38] sm:$0xff] }
   0x5   :  { %v30_v10 = vld [vmem:[%s367_s0 + $0x60] sm:$0xff]  ;;  %v38_v12 = vpack.c.bf16 %v27_v9, %v26_v7  ;;  %v28_v18 = vld [vmem:[%s367_s0 + $0x50] sm:$0xff]  ;;  %v29_v19 = vld [vmem:[%s367_s0 + $0x58] sm:$0xff]  ;;  %v37_v23 = vpack.c.bf16 %v25_v17, %v24_v16 }
   0x6   :  { %v40_v13 = vpack.c.bf16 %v31_v11, %v30_v10  ;;  %181 = vmatmul.msk.bf16.vlgmr.msra.gmra.mxu0 %vm43_vm1, %v34_v4  ;;  %183 = vmatmul.msk.bf16.vlgmr.msra.gmra.mxu1 %vm43_vm1, %v36_v8  ;;  %v32_v20 = vld [vmem:[%s367_s0 + $0x70] sm:$0xff]  ;;  %v33_v21 = vld [vmem:[%s367_s0 + $0x78] sm:$0xff]  ;;  %v39_v24 = vpack.c.bf16 %v29_v19, %v28_v18  ;;  %v192_v26 = vld [vmem:[%s368_s2] ss:$0 sm:$0xff] }
   0x7   :  { %185 = vmatmul.msk.bf16.vlgmr.msra.gmra.mxu2 %vm43_vm1, %v38_v12  ;;  %v41_v25 = vpack.c.bf16 %v33_v21, %v32_v20  ;;  %v284_v27 = vld [vmem:[%s369_s3] ss:$0 sm:$0xff] }
   0x8   :  { %187 = vmatmul.msk.bf16.vlgmr.msra.gmra.mxu3 %vm43_vm1, %v40_v13 }
  0x16   :  { %182 = vmatmul.msk.bf16.gmra.mxu0 %vm43_vm1, %v35_v22  ;;  %184 = vmatmul.msk.bf16.gmra.mxu1 %vm43_vm1, %v37_v23 }
  0x17   :  { %186 = vmatmul.msk.bf16.gmra.mxu2 %vm43_vm1, %v39_v24 }
  0x18   :  { %188 = vmatmul.msk.bf16.gmra.mxu3 %vm43_vm1, %v41_v25 }
  0x83   :  { %v81_v28 = vpop.f32.mrf.mxu0  ;;  %v91_v29 = vpop.f32.mrf.mxu1 }
  0x84   :  { %v125_v30 = vmul.f32 %v192_v26, %v81_v28  ;;  %v129_v31 = vmul.f32 %v192_v26, %v91_v29 }
  0x86   :  { %v145_v32 = vadd.f32 %v284_v27, %v125_v30  ;;  %v149_v33 = vadd.f32 %v284_v27, %v129_v31 }
  0x88   :  { %161 = vst.msk [vmem:[%s370_s4] sm:$0xff] %vm43_vm1, %v145_v32 }
  0x89   :  { %165 = vst.msk [vmem:[%s370_s4 + $0x20] sm:$0xff] %vm43_vm1, %v149_v33 }
  0x8a   :  { %v101_v34 = vpop.f32.mrf.mxu2 }
  0x8b   :  { %v111_v35 = vpop.f32.mrf.mxu3  ;;  %v133_v36 = vmul.f32 %v192_v26, %v101_v34  ;;  %v83_v38 = vpop.f32.mrf.mxu0 }
  0x8c   :  { %v137_v37 = vmul.f32 %v192_v26, %v111_v35  ;;  %v93_v39 = vpop.f32.mrf.mxu1  ;;  %v126_v40 = vmul.f32 %v192_v26, %v83_v38 }
  0x8d   :  { %v130_v41 = vmul.f32 %v192_v26, %v93_v39  ;;  %v153_v42 = vadd.f32 %v284_v27, %v133_v36 }
  0x8e   :  { %v157_v43 = vadd.f32 %v284_v27, %v137_v37  ;;  %v146_v44 = vadd.f32 %v284_v27, %v126_v40 }
  0x8f   :  { %v150_v45 = vadd.f32 %v284_v27, %v130_v41  ;;  %169 = vst.msk [vmem:[%s370_s4 + $0x40] sm:$0xff] %vm43_vm1, %v153_v42 }
  0x90   :  { %173 = vst.msk [vmem:[%s370_s4 + $0x60] sm:$0xff] %vm43_vm1, %v157_v43 }
  0x91   :  { %162 = vst.msk [vmem:[%s370_s4 + $0x8] sm:$0xff] %vm43_vm1, %v146_v44 }
  0x92   :  { %166 = vst.msk [vmem:[%s370_s4 + $0x28] sm:$0xff] %vm43_vm1, %v150_v45  ;;  %v103_v46 = vpop.f32.mrf.mxu2 }
  0x93   :  { %v113_v47 = vpop.f32.mrf.mxu3  ;;  %v134_v48 = vmul.f32 %v192_v26, %v103_v46  ;;  %v86_v50 = vpop.f32.mrf.mxu0 }
  0x94   :  { %v138_v49 = vmul.f32 %v192_v26, %v113_v47  ;;  %v96_v51 = vpop.f32.mrf.mxu1  ;;  %v127_v52 = vmul.f32 %v192_v26, %v86_v50 }
  0x95   :  { %v131_v53 = vmul.f32 %v192_v26, %v96_v51  ;;  %v154_v54 = vadd.f32 %v284_v27, %v134_v48 }
  0x96   :  { %v158_v55 = vadd.f32 %v284_v27, %v138_v49  ;;  %v147_v56 = vadd.f32 %v284_v27, %v127_v52 }
  0x97   :  { %v151_v57 = vadd.f32 %v284_v27, %v131_v53  ;;  %170 = vst.msk [vmem:[%s370_s4 + $0x48] sm:$0xff] %vm43_vm1, %v154_v54 }
  0x98   :  { %174 = vst.msk [vmem:[%s370_s4 + $0x68] sm:$0xff] %vm43_vm1, %v158_v55 }
  0x99   :  { %163 = vst.msk [vmem:[%s370_s4 + $0x10] sm:$0xff] %vm43_vm1, %v147_v56 }
  0x9a   :  { %167 = vst.msk [vmem:[%s370_s4 + $0x30] sm:$0xff] %vm43_vm1, %v151_v57  ;;  %v106_v58 = vpop.f32.mrf.mxu2 }
  0x9b   :  { %v116_v59 = vpop.f32.mrf.mxu3  ;;  %v135_v60 = vmul.f32 %v192_v26, %v106_v58  ;;  %v88_v62 = vpop.f32.mrf.mxu0 }
  0x9c   :  { %v139_v61 = vmul.f32 %v192_v26, %v116_v59  ;;  %v98_v63 = vpop.f32.mrf.mxu1  ;;  %v128_v0 = vmul.f32 %v192_v26, %v88_v62 }
  0x9d   :  { %v132_v1 = vmul.f32 %v192_v26, %v98_v63  ;;  %v155_v2 = vadd.f32 %v284_v27, %v135_v60 }
  0x9e   :  { %v159_v3 = vadd.f32 %v284_v27, %v139_v61  ;;  %v148_v4 = vadd.f32 %v284_v27, %v128_v0 }
  0x9f   :  { %v152_v5 = vadd.f32 %v284_v27, %v132_v1  ;;  %171 = vst.msk [vmem:[%s370_s4 + $0x50] sm:$0xff] %vm43_vm1, %v155_v2 }
  0xa0   :  { %175 = vst.msk [vmem:[%s370_s4 + $0x70] sm:$0xff] %vm43_vm1, %v159_v3 }
  0xa1   :  { %164 = vst.msk [vmem:[%s370_s4 + $0x18] sm:$0xff] %vm43_vm1, %v148_v4 }
  0xa2   :  { %168 = vst.msk [vmem:[%s370_s4 + $0x38] sm:$0xff] %vm43_vm1, %v152_v5  ;;  %v108_v6 = vpop.f32.mrf.mxu2 }
  0xa3   :  { %v118_v7 = vpop.f32.mrf.mxu3  ;;  %v136_v8 = vmul.f32 %v192_v26, %v108_v6 }
  0xa4   :  { %v140_v9 = vmul.f32 %v192_v26, %v118_v7 }
  0xa5   :  { %v156_v10 = vadd.f32 %v284_v27, %v136_v8 }
  0xa6   :  { %v160_v11 = vadd.f32 %v284_v27, %v140_v9 }
  0xa7   :  { %172 = vst.msk [vmem:[%s370_s4 + $0x58] sm:$0xff] %vm43_vm1, %v156_v10 }
  0xa8   :  { %176 = vst.msk [vmem:[%s370_s4 + $0x78] sm:$0xff] %vm43_vm1, %v160_v11 }

// kernel: corblock_s_forward.6
= control target key start
LH: loop header
LB: loop body
LE: loop exit
PB: predicated region body
PF: predicated region fallthrough
CT: control target
= control target key end

     0   :  { %vm206_vm0 = vcmask 1041408   ;;  %vm109_vm1 = vcmask 31744   ;;  %vm379_vm2 = vcmask 64512   ;;  %s981_s1 = inlined_call_operand.vmem [shape: bf16[4,8], index: 1, kind: input, shape index: {}]   ;;  %s982_s0 = inlined_call_operand.vmem [shape: f32[512,4], index: 0, kind: input, shape index: {}]   ;;  %s983_s2 = inlined_call_operand.vmem [shape: f32[512,8], index: 2, kind: output, shape index: {}]  }
   0x1   :  { %v108_v0 = vld [vmem:[%s981_s1] sm:$0x3]  ;;  %v13_v2 = vld [vmem:[%s982_s0 + $0x8] sm:$0xff]  ;;  %v14_v14 = vld [vmem:[%s982_s0 + $0x10] sm:$0xff] }
   0x2   :  { %v12_v1 = vld [vmem:[%s982_s0] sm:$0xff]  ;;  %v208_v3 = vsel %vm206_vm0, %v108_v0, 0  ;;  %v29_v6 = vld [vmem:[%s982_s0 + $0x88] sm:$0xff]  ;;  %v15_v15 = vld [vmem:[%s982_s0 + $0x18] sm:$0xff] }
   0x3   :  { %v76_v4 = vpack.c.bf16 %v13_v2, %v12_v1  ;;  %v28_v5 = vld [vmem:[%s982_s0 + $0x80] sm:$0xff]  ;;  %217 = vmatpush.bf16.msra.mxu0 %v208_v3  ;;  %480 = vmatpush.bf16.msra.mxu1 %v208_v3  ;;  %v45_v9 = vld [vmem:[%s982_s0 + $0x108] sm:$0xff]  ;;  %v30_v16 = vld [vmem:[%s982_s0 + $0x90] sm:$0xff]  ;;  %v77_v22 = vpack.c.bf16 %v15_v15, %v14_v14 }
   0x4   :  { %v44_v7 = vld [vmem:[%s982_s0 + $0x100] sm:$0xff]  ;;  %v84_v8 = vpack.c.bf16 %v29_v6, %v28_v5  ;;  %v61_v11 = vld [vmem:[%s982_s0 + $0x188] sm:$0xff]  ;;  %481 = vmatpush.bf16.msra.mxu2 %v208_v3  ;;  %482 = vmatpush.bf16.msra.mxu3 %v208_v3  ;;  %v31_v17 = vld [vmem:[%s982_s0 + $0x98] sm:$0xff] }
   0x5   :  { %v60_v10 = vld [vmem:[%s982_s0 + $0x180] sm:$0xff]  ;;  %v92_v12 = vpack.c.bf16 %v45_v9, %v44_v7  ;;  %v46_v18 = vld [vmem:[%s982_s0 + $0x110] sm:$0xff]  ;;  %v47_v19 = vld [vmem:[%s982_s0 + $0x118] sm:$0xff]  ;;  %v85_v23 = vpack.c.bf16 %v31_v17, %v30_v16 }
   0x6   :  { %v100_v13 = vpack.c.bf16 %v61_v11, %v60_v10  ;;  %448 = vmatmul.msk.bf16.vlgmr.msra.gmra.mxu0 %vm109_vm1, %v76_v4  ;;  %456 = vmatmul.msk.bf16.vlgmr.msra.gmra.mxu1 %vm109_vm1, %v84_v8  ;;  %v62_v20 = vld [vmem:[%s982_s0 + $0x190] sm:$0xff]  ;;  %v63_v21 = vld [vmem:[%s982_s0 + $0x198] sm:$0xff]  ;;  %v93_v24 = vpack.c.bf16 %v47_v19, %v46_v18  ;;  %v16_v26 = vld [vmem:[%s982_s0 + $0x20] sm:$0xff] }
   0x7   :  { %464 = vmatmul.msk.bf16.vlgmr.msra.gmra.mxu2 %vm109_vm1, %v92_v12  ;;  %v101_v25 = vpack.c.bf16 %v63_v21, %v62_v20  ;;  %v17_v27 = vld [vmem:[%s982_s0 + $0x28] sm:$0xff]  ;;  %v32_v28 = vld [vmem:[%s982_s0 + $0xa0] sm:$0xff]  ;;  %v18_v38 = vld [vmem:[%s982_s0 + $0x30] sm:$0xff] }
   0x8   :  { %472 = vmatmul.msk.bf16.vlgmr.msra.gmra.mxu3 %vm109_vm1, %v100_v13  ;;  %v33_v29 = vld [vmem:[%s982_s0 + $0xa8] sm:$0xff]  ;;  %v48_v30 = vld [vmem:[%s982_s0 + $0x120] sm:$0xff]  ;;  %v78_v34 = vpack.c.bf16 %v17_v27, %v16_v26  ;;  %v19_v39 = vld [vmem:[%s982_s0 + $0x38] sm:$0xff] }
   0x9   :  { %v49_v31 = vld [vmem:[%s982_s0 + $0x128] sm:$0xff]  ;;  %v64_v32 = vld [vmem:[%s982_s0 + $0x1a0] sm:$0xff]  ;;  %v86_v35 = vpack.c.bf16 %v33_v29, %v32_v28  ;;  %v34_v40 = vld [vmem:[%s982_s0 + $0xb0] sm:$0xff]  ;;  %v79_v46 = vpack.c.bf16 %v19_v39, %v18_v38 }
   0xa   :  { %v65_v33 = vld [vmem:[%s982_s0 + $0x1a8] sm:$0xff]  ;;  %v94_v36 = vpack.c.bf16 %v49_v31, %v48_v30  ;;  %v35_v41 = vld [vmem:[%s982_s0 + $0xb8] sm:$0xff]  ;;  %v50_v42 = vld [vmem:[%s982_s0 + $0x130] sm:$0xff] }
   0xb   :  { %v102_v37 = vpack.c.bf16 %v65_v33, %v64_v32  ;;  %v51_v43 = vld [vmem:[%s982_s0 + $0x138] sm:$0xff]  ;;  %v66_v44 = vld [vmem:[%s982_s0 + $0x1b0] sm:$0xff]  ;;  %v87_v47 = vpack.c.bf16 %v35_v41, %v34_v40  ;;  %v20_v50 = vld [vmem:[%s982_s0 + $0x40] sm:$0xff] }
   0xc   :  { %v67_v45 = vld [vmem:[%s982_s0 + $0x1b8] sm:$0xff]  ;;  %v95_v48 = vpack.c.bf16 %v51_v43, %v50_v42  ;;  %v21_v51 = vld [vmem:[%s982_s0 + $0x48] sm:$0xff]  ;;  %v36_v52 = vld [vmem:[%s982_s0 + $0xc0] sm:$0xff] }
   0xd   :  { %v103_v49 = vpack.c.bf16 %v67_v45, %v66_v44  ;;  %v37_v53 = vld [vmem:[%s982_s0 + $0xc8] sm:$0xff]  ;;  %v52_v54 = vld [vmem:[%s982_s0 + $0x140] sm:$0xff]  ;;  %v80_v58 = vpack.c.bf16 %v21_v51, %v20_v50  ;;  %v22_v62 = vld [vmem:[%s982_s0 + $0x50] sm:$0xff] }
   0xe   :  { %v53_v55 = vld [vmem:[%s982_s0 + $0x148] sm:$0xff]  ;;  %v68_v56 = vld [vmem:[%s982_s0 + $0x1c0] sm:$0xff]  ;;  %v88_v59 = vpack.c.bf16 %v37_v53, %v36_v52  ;;  %v23_v63 = vld [vmem:[%s982_s0 + $0x58] sm:$0xff] }
   0xf   :  { %v69_v57 = vld [vmem:[%s982_s0 + $0x1c8] sm:$0xff]  ;;  %v96_v60 = vpack.c.bf16 %v53_v55, %v52_v54  ;;  %v38_v0 = vld [vmem:[%s982_s0 + $0xd0] sm:$0xff]  ;;  %v39_v1 = vld [vmem:[%s982_s0 + $0xd8] sm:$0xff]  ;;  %v81_v6 = vpack.c.bf16 %v23_v63, %v22_v62 }
  0x10   :  { %v104_v61 = vpack.c.bf16 %v69_v57, %v68_v56  ;;  %v54_v2 = vld [vmem:[%s982_s0 + $0x150] sm:$0xff]  ;;  %v55_v3 = vld [vmem:[%s982_s0 + $0x158] sm:$0xff]  ;;  %v89_v7 = vpack.c.bf16 %v39_v1, %v38_v0  ;;  %v24_v10 = vld [vmem:[%s982_s0 + $0x60] sm:$0xff] }
  0x11   :  { %v70_v4 = vld [vmem:[%s982_s0 + $0x1d0] sm:$0xff]  ;;  %v71_v5 = vld [vmem:[%s982_s0 + $0x1d8] sm:$0xff]  ;;  %v97_v8 = vpack.c.bf16 %v55_v3, %v54_v2  ;;  %v25_v11 = vld [vmem:[%s982_s0 + $0x68] sm:$0xff] }
  0x12   :  { %v105_v9 = vpack.c.bf16 %v71_v5, %v70_v4  ;;  %v40_v12 = vld [vmem:[%s982_s0 + $0xe0] sm:$0xff]  ;;  %v41_v13 = vld [vmem:[%s982_s0 + $0xe8] sm:$0xff]  ;;  %v82_v18 = vpack.c.bf16 %v25_v11, %v24_v10  ;;  %v58_v26 = vld [vmem:[%s982_s0 + $0x170] sm:$0xff] }
  0x13   :  { %v56_v14 = vld [vmem:[%s982_s0 + $0x160] sm:$0xff]  ;;  %v57_v15 = vld [vmem:[%s982_s0 + $0x168] sm:$0xff]  ;;  %v90_v19 = vpack.c.bf16 %v41_v13, %v40_v12  ;;  %v59_v27 = vld [vmem:[%s982_s0 + $0x178] sm:$0xff] }
  0x14   :  { %v72_v16 = vld [vmem:[%s982_s0 + $0x1e0] sm:$0xff]  ;;  %v73_v17 = vld [vmem:[%s982_s0 + $0x1e8] sm:$0xff]  ;;  %v98_v20 = vpack.c.bf16 %v57_v15, %v56_v14  ;;  %v74_v28 = vld [vmem:[%s982_s0 + $0x1f0] sm:$0xff]  ;;  %v99_v32 = vpack.c.bf16 %v59_v27, %v58_v26 }
  0x15   :  { %v106_v21 = vpack.c.bf16 %v73_v17, %v72_v16  ;;  %v75_v29 = vld [vmem:[%s982_s0 + $0x1f8] sm:$0xff] }
  0x16   :  { %449 = vmatmul.msk.bf16.gmra.mxu0 %vm109_vm1, %v77_v22  ;;  %457 = vmatmul.msk.bf16.gmra.mxu1 %vm109_vm1, %v85_v23  ;;  %v26_v22 = vld [vmem:[%s982_s0 + $0x70] sm:$0xff]  ;;  %v27_v23 = vld [vmem:[%s982_s0 + $0x78] sm:$0xff]  ;;  %v107_v33 = vpack.c.bf16 %v75_v29, %v74_v28 }
  0x17   :  { %465 = vmatmul.msk.bf16.gmra.mxu2 %vm109_vm1, %v93_v24  ;;  %v42_v24 = vld [vmem:[%s982_s0 + $0xf0] sm:$0xff]  ;;  %v83_v30 = vpack.c.bf16 %v27_v23, %v26_v22 }
  0x18   :  { %473 = vmatmul.msk.bf16.gmra.mxu3 %vm109_vm1, %v101_v25  ;;  %v43_v25 = vld [vmem:[%s982_s0 + $0xf8] sm:$0xff] }
  0x19   :  { %v91_v31 = vpack.c.bf16 %v43_v25, %v42_v24 }
  0x26   :  { %450 = vmatmul.msk.bf16.gmra.mxu0 %vm109_vm1, %v78_v34  ;;  %458 = vmatmul.msk.bf16.gmra.mxu1 %vm109_vm1, %v86_v35 }
  0x27   :  { %466 = vmatmul.msk.bf16.gmra.mxu2 %vm109_vm1, %v94_v36 }
  0x28   :  { %474 = vmatmul.msk.bf16.gmra.mxu3 %vm109_vm1, %v102_v37 }
  0x36   :  { %451 = vmatmul.msk.bf16.gmra.mxu0 %vm109_vm1, %v79_v46  ;;  %459 = vmatmul.msk.bf16.gmra.mxu1 %vm109_vm1, %v87_v47 }
  0x37   :  { %467 = vmatmul.msk.bf16.gmra.mxu2 %vm109_vm1, %v95_v48 }
  0x38   :  { %475 = vmatmul.msk.bf16.gmra.mxu3 %vm109_vm1, %v103_v49 }
  0x46   :  { %452 = vmatmul.msk.bf16.gmra.mxu0 %vm109_vm1, %v80_v58  ;;  %460 = vmatmul.msk.bf16.gmra.mxu1 %vm109_vm1, %v88_v59 }
  0x47   :  { %468 = vmatmul.msk.bf16.gmra.mxu2 %vm109_vm1, %v96_v60 }
  0x48   :  { %476 = vmatmul.msk.bf16.gmra.mxu3 %vm109_vm1, %v104_v61 }
  0x56   :  { %453 = vmatmul.msk.bf16.gmra.mxu0 %vm109_vm1, %v81_v6  ;;  %461 = vmatmul.msk.bf16.gmra.mxu1 %vm109_vm1, %v89_v7 }
  0x57   :  { %469 = vmatmul.msk.bf16.gmra.mxu2 %vm109_vm1, %v97_v8 }
  0x58   :  { %477 = vmatmul.msk.bf16.gmra.mxu3 %vm109_vm1, %v105_v9 }
  0x66   :  { %454 = vmatmul.msk.bf16.gmra.mxu0 %vm109_vm1, %v82_v18  ;;  %462 = vmatmul.msk.bf16.gmra.mxu1 %vm109_vm1, %v90_v19 }
  0x67   :  { %470 = vmatmul.msk.bf16.gmra.mxu2 %vm109_vm1, %v98_v20 }
  0x68   :  { %478 = vmatmul.msk.bf16.gmra.mxu3 %vm109_vm1, %v106_v21 }
  0x76   :  { %455 = vmatmul.msk.bf16.gmra.mxu0 %vm109_vm1, %v83_v30  ;;  %463 = vmatmul.msk.bf16.gmra.mxu1 %vm109_vm1, %v91_v31 }
  0x77   :  { %471 = vmatmul.msk.bf16.gmra.mxu2 %vm109_vm1, %v99_v32 }
  0x78   :  { %479 = vmatmul.msk.bf16.gmra.mxu3 %vm109_vm1, %v107_v33 }
  0x83   :  { %v219_v34 = vpop.f32.mrf.mxu0  ;;  %v259_v35 = vpop.f32.mrf.mxu1 }
  0x84   :  { %380 = vst.msk [vmem:[%s983_s2] sm:$0xff] %vm379_vm2, %v219_v34 }
  0x85   :  { %396 = vst.msk [vmem:[%s983_s2 + $0x80] sm:$0xff] %vm379_vm2, %v259_v35 }
  0x8a   :  { %v299_v36 = vpop.f32.mrf.mxu2 }
  0x8b   :  { %v339_v37 = vpop.f32.mrf.mxu3  ;;  %412 = vst.msk [vmem:[%s983_s2 + $0x100] sm:$0xff] %vm379_vm2, %v299_v36  ;;  %v221_v38 = vpop.f32.mrf.mxu0 }
  0x8c   :  { %v261_v39 = vpop.f32.mrf.mxu1  ;;  %428 = vst.msk [vmem:[%s983_s2 + $0x180] sm:$0xff] %vm379_vm2, %v339_v37 }
  0x8d   :  { %381 = vst.msk [vmem:[%s983_s2 + $0x8] sm:$0xff] %vm379_vm2, %v221_v38 }
  0x8e   :  { %397 = vst.msk [vmem:[%s983_s2 + $0x88] sm:$0xff] %vm379_vm2, %v261_v39 }
  0x92   :  { %v301_v40 = vpop.f32.mrf.mxu2 }
  0x93   :  { %v341_v41 = vpop.f32.mrf.mxu3  ;;  %413 = vst.msk [vmem:[%s983_s2 + $0x108] sm:$0xff] %vm379_vm2, %v301_v40  ;;  %v224_v42 = vpop.f32.mrf.mxu0 }
  0x94   :  { %v264_v43 = vpop.f32.mrf.mxu1  ;;  %429 = vst.msk [vmem:[%s983_s2 + $0x188] sm:$0xff] %vm379_vm2, %v341_v41 }
  0x95   :  { %382 = vst.msk [vmem:[%s983_s2 + $0x10] sm:$0xff] %vm379_vm2, %v224_v42 }
  0x96   :  { %398 = vst.msk [vmem:[%s983_s2 + $0x90] sm:$0xff] %vm379_vm2, %v264_v43 }
  0x9a   :  { %v304_v44 = vpop.f32.mrf.mxu2 }
  0x9b   :  { %v344_v45 = vpop.f32.mrf.mxu3  ;;  %414 = vst.msk [vmem:[%s983_s2 + $0x110] sm:$0xff] %vm379_vm2, %v304_v44  ;;  %v226_v46 = vpop.f32.mrf.mxu0 }
  0x9c   :  { %v266_v47 = vpop.f32.mrf.mxu1  ;;  %430 = vst.msk [vmem:[%s983_s2 + $0x190] sm:$0xff] %vm379_vm2, %v344_v45 }
  0x9d   :  { %383 = vst.msk [vmem:[%s983_s2 + $0x18] sm:$0xff] %vm379_vm2, %v226_v46 }
  0x9e   :  { %399 = vst.msk [vmem:[%s983_s2 + $0x98] sm:$0xff] %vm379_vm2, %v266_v47 }
  0xa2   :  { %v306_v48 = vpop.f32.mrf.mxu2 }
  0xa3   :  { %v346_v49 = vpop.f32.mrf.mxu3  ;;  %415 = vst.msk [vmem:[%s983_s2 + $0x118] sm:$0xff] %vm379_vm2, %v306_v48  ;;  %v229_v50 = vpop.f32.mrf.mxu0 }
  0xa4   :  { %v269_v51 = vpop.f32.mrf.mxu1  ;;  %431 = vst.msk [vmem:[%s983_s2 + $0x198] sm:$0xff] %vm379_vm2, %v346_v49 }
  0xa5   :  { %384 = vst.msk [vmem:[%s983_s2 + $0x20] sm:$0xff] %vm379_vm2, %v229_v50 }
  0xa6   :  { %400 = vst.msk [vmem:[%s983_s2 + $0xa0] sm:$0xff] %vm379_vm2, %v269_v51 }
  0xaa   :  { %v309_v52 = vpop.f32.mrf.mxu2 }
  0xab   :  { %v349_v53 = vpop.f32.mrf.mxu3  ;;  %416 = vst.msk [vmem:[%s983_s2 + $0x120] sm:$0xff] %vm379_vm2, %v309_v52  ;;  %v231_v54 = vpop.f32.mrf.mxu0 }
  0xac   :  { %v271_v55 = vpop.f32.mrf.mxu1  ;;  %432 = vst.msk [vmem:[%s983_s2 + $0x1a0] sm:$0xff] %vm379_vm2, %v349_v53 }
  0xad   :  { %385 = vst.msk [vmem:[%s983_s2 + $0x28] sm:$0xff] %vm379_vm2, %v231_v54 }
  0xae   :  { %401 = vst.msk [vmem:[%s983_s2 + $0xa8] sm:$0xff] %vm379_vm2, %v271_v55 }
  0xb2   :  { %v311_v56 = vpop.f32.mrf.mxu2 }
  0xb3   :  { %v351_v57 = vpop.f32.mrf.mxu3  ;;  %417 = vst.msk [vmem:[%s983_s2 + $0x128] sm:$0xff] %vm379_vm2, %v311_v56  ;;  %v234_v58 = vpop.f32.mrf.mxu0 }
  0xb4   :  { %v274_v59 = vpop.f32.mrf.mxu1  ;;  %433 = vst.msk [vmem:[%s983_s2 + $0x1a8] sm:$0xff] %vm379_vm2, %v351_v57 }
  0xb5   :  { %386 = vst.msk [vmem:[%s983_s2 + $0x30] sm:$0xff] %vm379_vm2, %v234_v58 }
  0xb6   :  { %402 = vst.msk [vmem:[%s983_s2 + $0xb0] sm:$0xff] %vm379_vm2, %v274_v59 }
  0xba   :  { %v314_v60 = vpop.f32.mrf.mxu2 }
  0xbb   :  { %v354_v61 = vpop.f32.mrf.mxu3  ;;  %418 = vst.msk [vmem:[%s983_s2 + $0x130] sm:$0xff] %vm379_vm2, %v314_v60  ;;  %v236_v62 = vpop.f32.mrf.mxu0 }
  0xbc   :  { %v276_v63 = vpop.f32.mrf.mxu1  ;;  %434 = vst.msk [vmem:[%s983_s2 + $0x1b0] sm:$0xff] %vm379_vm2, %v354_v61 }
  0xbd   :  { %387 = vst.msk [vmem:[%s983_s2 + $0x38] sm:$0xff] %vm379_vm2, %v236_v62 }
  0xbe   :  { %403 = vst.msk [vmem:[%s983_s2 + $0xb8] sm:$0xff] %vm379_vm2, %v276_v63 }
  0xc2   :  { %v316_v0 = vpop.f32.mrf.mxu2 }
  0xc3   :  { %v356_v1 = vpop.f32.mrf.mxu3  ;;  %419 = vst.msk [vmem:[%s983_s2 + $0x138] sm:$0xff] %vm379_vm2, %v316_v0  ;;  %v239_v2 = vpop.f32.mrf.mxu0 }
  0xc4   :  { %v279_v3 = vpop.f32.mrf.mxu1  ;;  %435 = vst.msk [vmem:[%s983_s2 + $0x1b8] sm:$0xff] %vm379_vm2, %v356_v1 }
  0xc5   :  { %388 = vst.msk [vmem:[%s983_s2 + $0x40] sm:$0xff] %vm379_vm2, %v239_v2 }
  0xc6   :  { %404 = vst.msk [vmem:[%s983_s2 + $0xc0] sm:$0xff] %vm379_vm2, %v279_v3 }
  0xca   :  { %v319_v4 = vpop.f32.mrf.mxu2 }
  0xcb   :  { %v359_v5 = vpop.f32.mrf.mxu3  ;;  %420 = vst.msk [vmem:[%s983_s2 + $0x140] sm:$0xff] %vm379_vm2, %v319_v4  ;;  %v241_v6 = vpop.f32.mrf.mxu0 }
  0xcc   :  { %v281_v7 = vpop.f32.mrf.mxu1  ;;  %436 = vst.msk [vmem:[%s983_s2 + $0x1c0] sm:$0xff] %vm379_vm2, %v359_v5 }
  0xcd   :  { %389 = vst.msk [vmem:[%s983_s2 + $0x48] sm:$0xff] %vm379_vm2, %v241_v6 }
  0xce   :  { %405 = vst.msk [vmem:[%s983_s2 + $0xc8] sm:$0xff] %vm379_vm2, %v281_v7 }
  0xd2   :  { %v321_v8 = vpop.f32.mrf.mxu2 }
  0xd3   :  { %v361_v9 = vpop.f32.mrf.mxu3  ;;  %421 = vst.msk [vmem:[%s983_s2 + $0x148] sm:$0xff] %vm379_vm2, %v321_v8  ;;  %v244_v10 = vpop.f32.mrf.mxu0 }
  0xd4   :  { %v284_v11 = vpop.f32.mrf.mxu1  ;;  %437 = vst.msk [vmem:[%s983_s2 + $0x1c8] sm:$0xff] %vm379_vm2, %v361_v9 }
  0xd5   :  { %390 = vst.msk [vmem:[%s983_s2 + $0x50] sm:$0xff] %vm379_vm2, %v244_v10 }
  0xd6   :  { %406 = vst.msk [vmem:[%s983_s2 + $0xd0] sm:$0xff] %vm379_vm2, %v284_v11 }
  0xda   :  { %v324_v12 = vpop.f32.mrf.mxu2 }
  0xdb   :  { %v364_v13 = vpop.f32.mrf.mxu3  ;;  %422 = vst.msk [vmem:[%s983_s2 + $0x150] sm:$0xff] %vm379_vm2, %v324_v12  ;;  %v246_v14 = vpop.f32.mrf.mxu0 }
  0xdc   :  { %v286_v15 = vpop.f32.mrf.mxu1  ;;  %438 = vst.msk [vmem:[%s983_s2 + $0x1d0] sm:$0xff] %vm379_vm2, %v364_v13 }
  0xdd   :  { %391 = vst.msk [vmem:[%s983_s2 + $0x58] sm:$0xff] %vm379_vm2, %v246_v14 }
  0xde   :  { %407 = vst.msk [vmem:[%s983_s2 + $0xd8] sm:$0xff] %vm379_vm2, %v286_v15 }
  0xe2   :  { %v326_v16 = vpop.f32.mrf.mxu2 }
  0xe3   :  { %v366_v17 = vpop.f32.mrf.mxu3  ;;  %423 = vst.msk [vmem:[%s983_s2 + $0x158] sm:$0xff] %vm379_vm2, %v326_v16  ;;  %v249_v18 = vpop.f32.mrf.mxu0 }
  0xe4   :  { %v289_v19 = vpop.f32.mrf.mxu1  ;;  %439 = vst.msk [vmem:[%s983_s2 + $0x1d8] sm:$0xff] %vm379_vm2, %v366_v17 }
  0xe5   :  { %392 = vst.msk [vmem:[%s983_s2 + $0x60] sm:$0xff] %vm379_vm2, %v249_v18 }
  0xe6   :  { %408 = vst.msk [vmem:[%s983_s2 + $0xe0] sm:$0xff] %vm379_vm2, %v289_v19 }
  0xea   :  { %v329_v20 = vpop.f32.mrf.mxu2 }
  0xeb   :  { %v369_v21 = vpop.f32.mrf.mxu3  ;;  %424 = vst.msk [vmem:[%s983_s2 + $0x160] sm:$0xff] %vm379_vm2, %v329_v20  ;;  %v251_v22 = vpop.f32.mrf.mxu0 }
  0xec   :  { %v291_v23 = vpop.f32.mrf.mxu1  ;;  %440 = vst.msk [vmem:[%s983_s2 + $0x1e0] sm:$0xff] %vm379_vm2, %v369_v21 }
  0xed   :  { %393 = vst.msk [vmem:[%s983_s2 + $0x68] sm:$0xff] %vm379_vm2, %v251_v22 }
  0xee   :  { %409 = vst.msk [vmem:[%s983_s2 + $0xe8] sm:$0xff] %vm379_vm2, %v291_v23 }
  0xf2   :  { %v331_v24 = vpop.f32.mrf.mxu2 }
  0xf3   :  { %v371_v25 = vpop.f32.mrf.mxu3  ;;  %425 = vst.msk [vmem:[%s983_s2 + $0x168] sm:$0xff] %vm379_vm2, %v331_v24  ;;  %v254_v26 = vpop.f32.mrf.mxu0 }
  0xf4   :  { %v294_v27 = vpop.f32.mrf.mxu1  ;;  %441 = vst.msk [vmem:[%s983_s2 + $0x1e8] sm:$0xff] %vm379_vm2, %v371_v25 }
  0xf5   :  { %394 = vst.msk [vmem:[%s983_s2 + $0x70] sm:$0xff] %vm379_vm2, %v254_v26 }
  0xf6   :  { %410 = vst.msk [vmem:[%s983_s2 + $0xf0] sm:$0xff] %vm379_vm2, %v294_v27 }
  0xfa   :  { %v334_v28 = vpop.f32.mrf.mxu2 }
  0xfb   :  { %v374_v29 = vpop.f32.mrf.mxu3  ;;  %426 = vst.msk [vmem:[%s983_s2 + $0x170] sm:$0xff] %vm379_vm2, %v334_v28  ;;  %v256_v30 = vpop.f32.mrf.mxu0 }
  0xfc   :  { %v296_v31 = vpop.f32.mrf.mxu1  ;;  %442 = vst.msk [vmem:[%s983_s2 + $0x1f0] sm:$0xff] %vm379_vm2, %v374_v29 }
  0xfd   :  { %395 = vst.msk [vmem:[%s983_s2 + $0x78] sm:$0xff] %vm379_vm2, %v256_v30 }
  0xfe   :  { %411 = vst.msk [vmem:[%s983_s2 + $0xf8] sm:$0xff] %vm379_vm2, %v296_v31 }
 0x102   :  { %v336_v32 = vpop.f32.mrf.mxu2 }
 0x103   :  { %v376_v33 = vpop.f32.mrf.mxu3  ;;  %427 = vst.msk [vmem:[%s983_s2 + $0x178] sm:$0xff] %vm379_vm2, %v336_v32 }
 0x104   :  { %443 = vst.msk [vmem:[%s983_s2 + $0x1f8] sm:$0xff] %vm379_vm2, %v376_v33 }

// kernel: corblock_s_forward.8
= control target key start
LH: loop header
LB: loop body
LE: loop exit
PB: predicated region body
PF: predicated region fallthrough
CT: control target
= control target key end

     0   :  { %vm212_vm0 = vcmask 1043456   ;;  %vm115_vm1 = vcmask 64512   ;;  %vm649_vm2 = vcmask 257024   ;;  %s1401_s1 = inlined_call_operand.vmem [shape: bf16[8,32], index: 1, kind: input, shape index: {}]   ;;  %s1402_s0 = inlined_call_operand.vmem [shape: f32[512,8], index: 0, kind: input, shape index: {}]   ;;  %s1403_s2 = inlined_call_operand.vmem [shape: f32[1,32], index: 2, kind: input, shape index: {}]   ;;  %s1404_s3 = inlined_call_operand.vmem [shape: f32[1,32], index: 3, kind: input, shape index: {}]   ;;  %s1405_s4 = inlined_call_operand.vmem [shape: bf16[512,32], index: 4, kind: output, shape index: {}]  }
   0x1   :  { %v114_v0 = vld [vmem:[%s1401_s1] sm:$0xf]  ;;  %v19_v2 = vld [vmem:[%s1402_s0 + $0x8] sm:$0xff]  ;;  %v20_v14 = vld [vmem:[%s1402_s0 + $0x10] sm:$0xff] }
   0x2   :  { %v18_v1 = vld [vmem:[%s1402_s0] sm:$0xff]  ;;  %v214_v3 = vsel %vm212_vm0, %v114_v0, 0  ;;  %v35_v6 = vld [vmem:[%s1402_s0 + $0x88] sm:$0xff]  ;;  %v21_v15 = vld [vmem:[%s1402_s0 + $0x18] sm:$0xff] }
   0x3   :  { %v82_v4 = vpack.c.bf16 %v19_v2, %v18_v1  ;;  %v34_v5 = vld [vmem:[%s1402_s0 + $0x80] sm:$0xff]  ;;  %223 = vmatpush.bf16.msra.mxu0 %v214_v3  ;;  %750 = vmatpush.bf16.msra.mxu1 %v214_v3  ;;  %v51_v9 = vld [vmem:[%s1402_s0 + $0x108] sm:$0xff]  ;;  %v36_v16 = vld [vmem:[%s1402_s0 + $0x90] sm:$0xff]  ;;  %v83_v22 = vpack.c.bf16 %v21_v15, %v20_v14 }
   0x4   :  { %v50_v7 = vld [vmem:[%s1402_s0 + $0x100] sm:$0xff]  ;;  %v90_v8 = vpack.c.bf16 %v35_v6, %v34_v5  ;;  %v67_v11 = vld [vmem:[%s1402_s0 + $0x188] sm:$0xff]  ;;  %751 = vmatpush.bf16.msra.mxu2 %v214_v3  ;;  %752 = vmatpush.bf16.msra.mxu3 %v214_v3  ;;  %v37_v17 = vld [vmem:[%s1402_s0 + $0x98] sm:$0xff] }
   0x5   :  { %v66_v10 = vld [vmem:[%s1402_s0 + $0x180] sm:$0xff]  ;;  %v98_v12 = vpack.c.bf16 %v51_v9, %v50_v7  ;;  %v52_v18 = vld [vmem:[%s1402_s0 + $0x110] sm:$0xff]  ;;  %v53_v19 = vld [vmem:[%s1402_s0 + $0x118] sm:$0xff]  ;;  %v91_v23 = vpack.c.bf16 %v37_v17, %v36_v16 }
   0x6   :  { %v106_v13 = vpack.c.bf16 %v67_v11, %v66_v10  ;;  %718 = vmatmul.msk.bf16.vlgmr.msra.gmra.mxu0 %vm115_vm1, %v82_v4  ;;  %726 = vmatmul.msk.bf16.vlgmr.msra.gmra.mxu1 %vm115_vm1, %v90_v8  ;;  %v68_v20 = vld [vmem:[%s1402_s0 + $0x190] sm:$0xff]  ;;  %v69_v21 = vld [vmem:[%s1402_s0 + $0x198] sm:$0xff]  ;;  %v99_v24 = vpack.c.bf16 %v53_v19, %v52_v18  ;;  %v22_v26 = vld [vmem:[%s1402_s0 + $0x20] sm:$0xff] }
   0x7   :  { %734 = vmatmul.msk.bf16.vlgmr.msra.gmra.mxu2 %vm115_vm1, %v98_v12  ;;  %v107_v25 = vpack.c.bf16 %v69_v21, %v68_v20  ;;  %v23_v27 = vld [vmem:[%s1402_s0 + $0x28] sm:$0xff]  ;;  %v38_v28 = vld [vmem:[%s1402_s0 + $0xa0] sm:$0xff]  ;;  %v24_v38 = vld [vmem:[%s1402_s0 + $0x30] sm:$0xff] }
   0x8   :  { %742 = vmatmul.msk.bf16.vlgmr.msra.gmra.mxu3 %vm115_vm1, %v106_v13  ;;  %v39_v29 = vld [vmem:[%s1402_s0 + $0xa8] sm:$0xff]  ;;  %v54_v30 = vld [vmem:[%s1402_s0 + $0x120] sm:$0xff]  ;;  %v84_v34 = vpack.c.bf16 %v23_v27, %v22_v26  ;;  %v25_v39 = vld [vmem:[%s1402_s0 + $0x38] sm:$0xff] }
   0x9   :  { %v55_v31 = vld [vmem:[%s1402_s0 + $0x128] sm:$0xff]  ;;  %v70_v32 = vld [vmem:[%s1402_s0 + $0x1a0] sm:$0xff]  ;;  %v92_v35 = vpack.c.bf16 %v39_v29, %v38_v28  ;;  %v40_v40 = vld [vmem:[%s1402_s0 + $0xb0] sm:$0xff]  ;;  %v85_v46 = vpack.c.bf16 %v25_v39, %v24_v38 }
   0xa   :  { %v71_v33 = vld [vmem:[%s1402_s0 + $0x1a8] sm:$0xff]  ;;  %v100_v36 = vpack.c.bf16 %v55_v31, %v54_v30  ;;  %v41_v41 = vld [vmem:[%s1402_s0 + $0xb8] sm:$0xff]  ;;  %v56_v42 = vld [vmem:[%s1402_s0 + $0x130] sm:$0xff] }
   0xb   :  { %v108_v37 = vpack.c.bf16 %v71_v33, %v70_v32  ;;  %v57_v43 = vld [vmem:[%s1402_s0 + $0x138] sm:$0xff]  ;;  %v72_v44 = vld [vmem:[%s1402_s0 + $0x1b0] sm:$0xff]  ;;  %v93_v47 = vpack.c.bf16 %v41_v41, %v40_v40  ;;  %v26_v50 = vld [vmem:[%s1402_s0 + $0x40] sm:$0xff] }
   0xc   :  { %v73_v45 = vld [vmem:[%s1402_s0 + $0x1b8] sm:$0xff]  ;;  %v101_v48 = vpack.c.bf16 %v57_v43, %v56_v42  ;;  %v27_v51 = vld [vmem:[%s1402_s0 + $0x48] sm:$0xff]  ;;  %v42_v52 = vld [vmem:[%s1402_s0 + $0xc0] sm:$0xff] }
   0xd   :  { %v109_v49 = vpack.c.bf16 %v73_v45, %v72_v44  ;;  %v43_v53 = vld [vmem:[%s1402_s0 + $0xc8] sm:$0xff]  ;;  %v58_v54 = vld [vmem:[%s1402_s0 + $0x140] sm:$0xff]  ;;  %v86_v58 = vpack.c.bf16 %v27_v51, %v26_v50  ;;  %v28_v62 = vld [vmem:[%s1402_s0 + $0x50] sm:$0xff] }
   0xe   :  { %v59_v55 = vld [vmem:[%s1402_s0 + $0x148] sm:$0xff]  ;;  %v74_v56 = vld [vmem:[%s1402_s0 + $0x1c0] sm:$0xff]  ;;  %v94_v59 = vpack.c.bf16 %v43_v53, %v42_v52  ;;  %v29_v63 = vld [vmem:[%s1402_s0 + $0x58] sm:$0xff] }
   0xf   :  { %v75_v57 = vld [vmem:[%s1402_s0 + $0x1c8] sm:$0xff]  ;;  %v102_v60 = vpack.c.bf16 %v59_v55, %v58_v54  ;;  %v44_v0 = vld [vmem:[%s1402_s0 + $0xd0] sm:$0xff]  ;;  %v45_v1 = vld [vmem:[%s1402_s0 + $0xd8] sm:$0xff]  ;;  %v87_v6 = vpack.c.bf16 %v29_v63, %v28_v62 }
  0x10   :  { %v110_v61 = vpack.c.bf16 %v75_v57, %v74_v56  ;;  %v60_v2 = vld [vmem:[%s1402_s0 + $0x150] sm:$0xff]  ;;  %v61_v3 = vld [vmem:[%s1402_s0 + $0x158] sm:$0xff]  ;;  %v95_v7 = vpack.c.bf16 %v45_v1, %v44_v0  ;;  %v30_v10 = vld [vmem:[%s1402_s0 + $0x60] sm:$0xff] }
  0x11   :  { %v76_v4 = vld [vmem:[%s1402_s0 + $0x1d0] sm:$0xff]  ;;  %v77_v5 = vld [vmem:[%s1402_s0 + $0x1d8] sm:$0xff]  ;;  %v103_v8 = vpack.c.bf16 %v61_v3, %v60_v2  ;;  %v31_v11 = vld [vmem:[%s1402_s0 + $0x68] sm:$0xff] }
  0x12   :  { %v111_v9 = vpack.c.bf16 %v77_v5, %v76_v4  ;;  %v46_v12 = vld [vmem:[%s1402_s0 + $0xe0] sm:$0xff]  ;;  %v47_v13 = vld [vmem:[%s1402_s0 + $0xe8] sm:$0xff]  ;;  %v88_v18 = vpack.c.bf16 %v31_v11, %v30_v10  ;;  %v64_v26 = vld [vmem:[%s1402_s0 + $0x170] sm:$0xff] }
  0x13   :  { %v62_v14 = vld [vmem:[%s1402_s0 + $0x160] sm:$0xff]  ;;  %v63_v15 = vld [vmem:[%s1402_s0 + $0x168] sm:$0xff]  ;;  %v96_v19 = vpack.c.bf16 %v47_v13, %v46_v12  ;;  %v65_v27 = vld [vmem:[%s1402_s0 + $0x178] sm:$0xff] }
  0x14   :  { %v78_v16 = vld [vmem:[%s1402_s0 + $0x1e0] sm:$0xff]  ;;  %v79_v17 = vld [vmem:[%s1402_s0 + $0x1e8] sm:$0xff]  ;;  %v104_v20 = vpack.c.bf16 %v63_v15, %v62_v14  ;;  %v80_v28 = vld [vmem:[%s1402_s0 + $0x1f0] sm:$0xff]  ;;  %v105_v32 = vpack.c.bf16 %v65_v27, %v64_v26 }
  0x15   :  { %v112_v21 = vpack.c.bf16 %v79_v17, %v78_v16  ;;  %v81_v29 = vld [vmem:[%s1402_s0 + $0x1f8] sm:$0xff] }
  0x16   :  { %719 = vmatmul.msk.bf16.gmra.mxu0 %vm115_vm1, %v83_v22  ;;  %727 = vmatmul.msk.bf16.gmra.mxu1 %vm115_vm1, %v91_v23  ;;  %v32_v22 = vld [vmem:[%s1402_s0 + $0x70] sm:$0xff]  ;;  %v33_v23 = vld [vmem:[%s1402_s0 + $0x78] sm:$0xff]  ;;  %v113_v33 = vpack.c.bf16 %v81_v29, %v80_v28 }
  0x17   :  { %735 = vmatmul.msk.bf16.gmra.mxu2 %vm115_vm1, %v99_v24  ;;  %v48_v24 = vld [vmem:[%s1402_s0 + $0xf0] sm:$0xff]  ;;  %v89_v30 = vpack.c.bf16 %v33_v23, %v32_v22 }
  0x18   :  { %743 = vmatmul.msk.bf16.gmra.mxu3 %vm115_vm1, %v107_v25  ;;  %v49_v25 = vld [vmem:[%s1402_s0 + $0xf8] sm:$0xff] }
  0x19   :  { %v97_v31 = vpack.c.bf16 %v49_v25, %v48_v24 }
  0x26   :  { %720 = vmatmul.msk.bf16.gmra.mxu0 %vm115_vm1, %v84_v34  ;;  %728 = vmatmul.msk.bf16.gmra.mxu1 %vm115_vm1, %v92_v35  ;;  %v1010_v34 = vld [vmem:[%s1403_s2] ss:$0 sm:$0xff] }
  0x27   :  { %736 = vmatmul.msk.bf16.gmra.mxu2 %vm115_vm1, %v100_v36  ;;  %v1015_v35 = vld [vmem:[%s1404_s3] ss:$0 sm:$0xff] }
  0x28   :  { %744 = vmatmul.msk.bf16.gmra.mxu3 %vm115_vm1, %v108_v37 }
  0x36   :  { %721 = vmatmul.msk.bf16.gmra.mxu0 %vm115_vm1, %v85_v46  ;;  %729 = vmatmul.msk.bf16.gmra.mxu1 %vm115_vm1, %v93_v47 }
  0x37   :  { %737 = vmatmul.msk.bf16.gmra.mxu2 %vm115_vm1, %v101_v48 }
  0x38   :  { %745 = vmatmul.msk.bf16.gmra.mxu3 %vm115_vm1, %v109_v49 }
  0x46   :  { %722 = vmatmul.msk.bf16.gmra.mxu0 %vm115_vm1, %v86_v58  ;;  %730 = vmatmul.msk.bf16.gmra.mxu1 %vm115_vm1, %v94_v59 }
  0x47   :  { %738 = vmatmul.msk.bf16.gmra.mxu2 %vm115_vm1, %v102_v60 }
  0x48   :  { %746 = vmatmul.msk.bf16.gmra.mxu3 %vm115_vm1, %v110_v61 }
  0x56   :  { %723 = vmatmul.msk.bf16.gmra.mxu0 %vm115_vm1, %v87_v6  ;;  %731 = vmatmul.msk.bf16.gmra.mxu1 %vm115_vm1, %v95_v7 }
  0x57   :  { %739 = vmatmul.msk.bf16.gmra.mxu2 %vm115_vm1, %v103_v8 }
  0x58   :  { %747 = vmatmul.msk.bf16.gmra.mxu3 %vm115_vm1, %v111_v9 }
  0x66   :  { %724 = vmatmul.msk.bf16.gmra.mxu0 %vm115_vm1, %v88_v18  ;;  %732 = vmatmul.msk.bf16.gmra.mxu1 %vm115_vm1, %v96_v19 }
  0x67   :  { %740 = vmatmul.msk.bf16.gmra.mxu2 %vm115_vm1, %v104_v20 }
  0x68   :  { %748 = vmatmul.msk.bf16.gmra.mxu3 %vm115_vm1, %v112_v21 }
  0x76   :  { %725 = vmatmul.msk.bf16.gmra.mxu0 %vm115_vm1, %v89_v30  ;;  %733 = vmatmul.msk.bf16.gmra.mxu1 %vm115_vm1, %v97_v31 }
  0x77   :  { %741 = vmatmul.msk.bf16.gmra.mxu2 %vm115_vm1, %v105_v32 }
  0x78   :  { %749 = vmatmul.msk.bf16.gmra.mxu3 %vm115_vm1, %v113_v33 }
  0x83   :  { %v225_v36 = vpop.f32.mrf.mxu0  ;;  %v265_v37 = vpop.f32.mrf.mxu1 }
  0x84   :  { %v389_v38 = vmul.f32 %v1010_v34, %v225_v36  ;;  %v405_v39 = vmul.f32 %v1010_v34, %v265_v37 }
  0x86   :  { %v457_v40 = vadd.f32 %v1015_v35, %v389_v38  ;;  %v473_v41 = vadd.f32 %v1015_v35, %v405_v39 }
  0x88   :  { %v521_v42 = vmax.f32 %v457_v40, 0.0  ;;  %v537_v43 = vmax.f32 %v473_v41, 0.0 }
  0x8a   :  { %v585_v44 = vpack.c.bf16 %v521_v42, %v521_v42  ;;  %v601_v45 = vpack.c.bf16 %v537_v43, %v537_v43  ;;  %v305_v46 = vpop.f32.mrf.mxu2 }
  0x8b   :  { %v345_v47 = vpop.f32.mrf.mxu3  ;;  %v421_v48 = vmul.f32 %v1010_v34, %v305_v46  ;;  %v227_v50 = vpop.f32.mrf.mxu0 }
  0x8c   :  { %v437_v49 = vmul.f32 %v1010_v34, %v345_v47  ;;  %v267_v51 = vpop.f32.mrf.mxu1  ;;  %650 = vst.msk [vmem:[%s1405_s4] sm:$0xf] %vm649_vm2, %v585_v44  ;;  %v390_v52 = vmul.f32 %v1010_v34, %v227_v50 }
  0x8d   :  { %v406_v53 = vmul.f32 %v1010_v34, %v267_v51  ;;  %666 = vst.msk [vmem:[%s1405_s4 + $0x40] sm:$0xf] %vm649_vm2, %v601_v45  ;;  %v489_v54 = vadd.f32 %v1015_v35, %v421_v48 }
  0x8e   :  { %v505_v55 = vadd.f32 %v1015_v35, %v437_v49  ;;  %v458_v56 = vadd.f32 %v1015_v35, %v390_v52 }
  0x8f   :  { %v474_v57 = vadd.f32 %v1015_v35, %v406_v53  ;;  %v553_v58 = vmax.f32 %v489_v54, 0.0 }
  0x90   :  { %v569_v59 = vmax.f32 %v505_v55, 0.0  ;;  %v522_v60 = vmax.f32 %v458_v56, 0.0 }
  0x91   :  { %v538_v61 = vmax.f32 %v474_v57, 0.0  ;;  %v617_v62 = vpack.c.bf16 %v553_v58, %v553_v58 }
  0x92   :  { %v633_v63 = vpack.c.bf16 %v569_v59, %v569_v59  ;;  %v586_v0 = vpack.c.bf16 %v522_v60, %v522_v60  ;;  %v307_v2 = vpop.f32.mrf.mxu2 }
  0x93   :  { %v602_v1 = vpack.c.bf16 %v538_v61, %v538_v61  ;;  %v347_v3 = vpop.f32.mrf.mxu3  ;;  %682 = vst.msk [vmem:[%s1405_s4 + $0x80] sm:$0xf] %vm649_vm2, %v617_v62  ;;  %v422_v4 = vmul.f32 %v1010_v34, %v307_v2  ;;  %v230_v6 = vpop.f32.mrf.mxu0 }
  0x94   :  { %v438_v5 = vmul.f32 %v1010_v34, %v347_v3  ;;  %v270_v7 = vpop.f32.mrf.mxu1  ;;  %698 = vst.msk [vmem:[%s1405_s4 + $0xc0] sm:$0xf] %vm649_vm2, %v633_v63  ;;  %v391_v8 = vmul.f32 %v1010_v34, %v230_v6 }
  0x95   :  { %v407_v9 = vmul.f32 %v1010_v34, %v270_v7  ;;  %651 = vst.msk [vmem:[%s1405_s4 + $0x4] sm:$0xf] %vm649_vm2, %v586_v0  ;;  %v490_v10 = vadd.f32 %v1015_v35, %v422_v4 }
  0x96   :  { %v506_v11 = vadd.f32 %v1015_v35, %v438_v5  ;;  %667 = vst.msk [vmem:[%s1405_s4 + $0x44] sm:$0xf] %vm649_vm2, %v602_v1  ;;  %v459_v12 = vadd.f32 %v1015_v35, %v391_v8 }
  0x97   :  { %v475_v13 = vadd.f32 %v1015_v35, %v407_v9  ;;  %v554_v14 = vmax.f32 %v490_v10, 0.0 }
  0x98   :  { %v570_v15 = vmax.f32 %v506_v11, 0.0  ;;  %v523_v16 = vmax.f32 %v459_v12, 0.0 }
  0x99   :  { %v539_v17 = vmax.f32 %v475_v13, 0.0  ;;  %v618_v18 = vpack.c.bf16 %v554_v14, %v554_v14 }
  0x9a   :  { %v634_v19 = vpack.c.bf16 %v570_v15, %v570_v15  ;;  %v587_v20 = vpack.c.bf16 %v523_v16, %v523_v16  ;;  %v310_v22 = vpop.f32.mrf.mxu2 }
  0x9b   :  { %v603_v21 = vpack.c.bf16 %v539_v17, %v539_v17  ;;  %v350_v23 = vpop.f32.mrf.mxu3  ;;  %683 = vst.msk [vmem:[%s1405_s4 + $0x84] sm:$0xf] %vm649_vm2, %v618_v18  ;;  %v423_v24 = vmul.f32 %v1010_v34, %v310_v22  ;;  %v232_v26 = vpop.f32.mrf.mxu0 }
  0x9c   :  { %v439_v25 = vmul.f32 %v1010_v34, %v350_v23  ;;  %v272_v27 = vpop.f32.mrf.mxu1  ;;  %699 = vst.msk [vmem:[%s1405_s4 + $0xc4] sm:$0xf] %vm649_vm2, %v634_v19  ;;  %v392_v28 = vmul.f32 %v1010_v34, %v232_v26 }
  0x9d   :  { %v408_v29 = vmul.f32 %v1010_v34, %v272_v27  ;;  %652 = vst.msk [vmem:[%s1405_s4 + $0x8] sm:$0xf] %vm649_vm2, %v587_v20  ;;  %v491_v30 = vadd.f32 %v1015_v35, %v423_v24 }
  0x9e   :  { %v507_v31 = vadd.f32 %v1015_v35, %v439_v25  ;;  %668 = vst.msk [vmem:[%s1405_s4 + $0x48] sm:$0xf] %vm649_vm2, %v603_v21  ;;  %v460_v32 = vadd.f32 %v1015_v35, %v392_v28 }
  0x9f   :  { %v476_v33 = vadd.f32 %v1015_v35, %v408_v29  ;;  %v555_v36 = vmax.f32 %v491_v30, 0.0 }
  0xa0   :  { %v571_v37 = vmax.f32 %v507_v31, 0.0  ;;  %v524_v38 = vmax.f32 %v460_v32, 0.0 }
  0xa1   :  { %v540_v39 = vmax.f32 %v476_v33, 0.0  ;;  %v619_v40 = vpack.c.bf16 %v555_v36, %v555_v36 }
  0xa2   :  { %v635_v41 = vpack.c.bf16 %v571_v37, %v571_v37  ;;  %v588_v42 = vpack.c.bf16 %v524_v38, %v524_v38  ;;  %v312_v44 = vpop.f32.mrf.mxu2 }
  0xa3   :  { %v604_v43 = vpack.c.bf16 %v540_v39, %v540_v39  ;;  %v352_v45 = vpop.f32.mrf.mxu3  ;;  %684 = vst.msk [vmem:[%s1405_s4 + $0x88] sm:$0xf] %vm649_vm2, %v619_v40  ;;  %v424_v46 = vmul.f32 %v1010_v34, %v312_v44  ;;  %v235_v48 = vpop.f32.mrf.mxu0 }
  0xa4   :  { %v440_v47 = vmul.f32 %v1010_v34, %v352_v45  ;;  %v275_v49 = vpop.f32.mrf.mxu1  ;;  %700 = vst.msk [vmem:[%s1405_s4 + $0xc8] sm:$0xf] %vm649_vm2, %v635_v41  ;;  %v393_v50 = vmul.f32 %v1010_v34, %v235_v48 }
  0xa5   :  { %v409_v51 = vmul.f32 %v1010_v34, %v275_v49  ;;  %653 = vst.msk [vmem:[%s1405_s4 + $0xc] sm:$0xf] %vm649_vm2, %v588_v42  ;;  %v492_v52 = vadd.f32 %v1015_v35, %v424_v46 }
  0xa6   :  { %v508_v53 = vadd.f32 %v1015_v35, %v440_v47  ;;  %669 = vst.msk [vmem:[%s1405_s4 + $0x4c] sm:$0xf] %vm649_vm2, %v604_v43  ;;  %v461_v54 = vadd.f32 %v1015_v35, %v393_v50 }
  0xa7   :  { %v477_v55 = vadd.f32 %v1015_v35, %v409_v51  ;;  %v556_v56 = vmax.f32 %v492_v52, 0.0 }
  0xa8   :  { %v572_v57 = vmax.f32 %v508_v53, 0.0  ;;  %v525_v58 = vmax.f32 %v461_v54, 0.0 }
  0xa9   :  { %v541_v59 = vmax.f32 %v477_v55, 0.0  ;;  %v620_v60 = vpack.c.bf16 %v556_v56, %v556_v56 }
  0xaa   :  { %v636_v61 = vpack.c.bf16 %v572_v57, %v572_v57  ;;  %v589_v62 = vpack.c.bf16 %v525_v58, %v525_v58  ;;  %v315_v0 = vpop.f32.mrf.mxu2 }
  0xab   :  { %v605_v63 = vpack.c.bf16 %v541_v59, %v541_v59  ;;  %v355_v1 = vpop.f32.mrf.mxu3  ;;  %685 = vst.msk [vmem:[%s1405_s4 + $0x8c] sm:$0xf] %vm649_vm2, %v620_v60  ;;  %v425_v2 = vmul.f32 %v1010_v34, %v315_v0  ;;  %v237_v4 = vpop.f32.mrf.mxu0 }
  0xac   :  { %v441_v3 = vmul.f32 %v1010_v34, %v355_v1  ;;  %v277_v5 = vpop.f32.mrf.mxu1  ;;  %701 = vst.msk [vmem:[%s1405_s4 + $0xcc] sm:$0xf] %vm649_vm2, %v636_v61  ;;  %v394_v6 = vmul.f32 %v1010_v34, %v237_v4 }
  0xad   :  { %v410_v7 = vmul.f32 %v1010_v34, %v277_v5  ;;  %654 = vst.msk [vmem:[%s1405_s4 + $0x10] sm:$0xf] %vm649_vm2, %v589_v62  ;;  %v493_v8 = vadd.f32 %v1015_v35, %v425_v2 }
  0xae   :  { %v509_v9 = vadd.f32 %v1015_v35, %v441_v3  ;;  %670 = vst.msk [vmem:[%s1405_s4 + $0x50] sm:$0xf] %vm649_vm2, %v605_v63  ;;  %v462_v10 = vadd.f32 %v1015_v35, %v394_v6 }
  0xaf   :  { %v478_v11 = vadd.f32 %v1015_v35, %v410_v7  ;;  %v557_v12 = vmax.f32 %v493_v8, 0.0 }
  0xb0   :  { %v573_v13 = vmax.f32 %v509_v9, 0.0  ;;  %v526_v14 = vmax.f32 %v462_v10, 0.0 }
  0xb1   :  { %v542_v15 = vmax.f32 %v478_v11, 0.0  ;;  %v621_v16 = vpack.c.bf16 %v557_v12, %v557_v12 }
  0xb2   :  { %v637_v17 = vpack.c.bf16 %v573_v13, %v573_v13  ;;  %v590_v18 = vpack.c.bf16 %v526_v14, %v526_v14  ;;  %v317_v20 = vpop.f32.mrf.mxu2 }
  0xb3   :  { %v606_v19 = vpack.c.bf16 %v542_v15, %v542_v15  ;;  %v357_v21 = vpop.f32.mrf.mxu3  ;;  %686 = vst.msk [vmem:[%s1405_s4 + $0x90] sm:$0xf] %vm649_vm2, %v621_v16  ;;  %v426_v22 = vmul.f32 %v1010_v34, %v317_v20  ;;  %v240_v24 = vpop.f32.mrf.mxu0 }
  0xb4   :  { %v442_v23 = vmul.f32 %v1010_v34, %v357_v21  ;;  %v280_v25 = vpop.f32.mrf.mxu1  ;;  %702 = vst.msk [vmem:[%s1405_s4 + $0xd0] sm:$0xf] %vm649_vm2, %v637_v17  ;;  %v395_v26 = vmul.f32 %v1010_v34, %v240_v24 }
  0xb5   :  { %v411_v27 = vmul.f32 %v1010_v34, %v280_v25  ;;  %655 = vst.msk [vmem:[%s1405_s4 + $0x14] sm:$0xf] %vm649_vm2, %v590_v18  ;;  %v494_v28 = vadd.f32 %v1015_v35, %v426_v22 }
  0xb6   :  { %v510_v29 = vadd.f32 %v1015_v35, %v442_v23  ;;  %671 = vst.msk [vmem:[%s1405_s4 + $0x54] sm:$0xf] %vm649_vm2, %v606_v19  ;;  %v463_v30 = vadd.f32 %v1015_v35, %v395_v26 }
  0xb7   :  { %v479_v31 = vadd.f32 %v1015_v35, %v411_v27  ;;  %v558_v32 = vmax.f32 %v494_v28, 0.0 }
  0xb8   :  { %v574_v33 = vmax.f32 %v510_v29, 0.0  ;;  %v527_v36 = vmax.f32 %v463_v30, 0.0 }
  0xb9   :  { %v543_v37 = vmax.f32 %v479_v31, 0.0  ;;  %v622_v38 = vpack.c.bf16 %v558_v32, %v558_v32 }
  0xba   :  { %v638_v39 = vpack.c.bf16 %v574_v33, %v574_v33  ;;  %v591_v40 = vpack.c.bf16 %v527_v36, %v527_v36  ;;  %v320_v42 = vpop.f32.mrf.mxu2 }
  0xbb   :  { %v607_v41 = vpack.c.bf16 %v543_v37, %v543_v37  ;;  %v360_v43 = vpop.f32.mrf.mxu3  ;;  %687 = vst.msk [vmem:[%s1405_s4 + $0x94] sm:$0xf] %vm649_vm2, %v622_v38  ;;  %v427_v44 = vmul.f32 %v1010_v34, %v320_v42  ;;  %v242_v46 = vpop.f32.mrf.mxu0 }
  0xbc   :  { %v443_v45 = vmul.f32 %v1010_v34, %v360_v43  ;;  %v282_v47 = vpop.f32.mrf.mxu1  ;;  %703 = vst.msk [vmem:[%s1405_s4 + $0xd4] sm:$0xf] %vm649_vm2, %v638_v39  ;;  %v396_v48 = vmul.f32 %v1010_v34, %v242_v46 }
  0xbd   :  { %v412_v49 = vmul.f32 %v1010_v34, %v282_v47  ;;  %656 = vst.msk [vmem:[%s1405_s4 + $0x18] sm:$0xf] %vm649_vm2, %v591_v40  ;;  %v495_v50 = vadd.f32 %v1015_v35, %v427_v44 }
  0xbe   :  { %v511_v51 = vadd.f32 %v1015_v35, %v443_v45  ;;  %672 = vst.msk [vmem:[%s1405_s4 + $0x58] sm:$0xf] %vm649_vm2, %v607_v41  ;;  %v464_v52 = vadd.f32 %v1015_v35, %v396_v48 }
  0xbf   :  { %v480_v53 = vadd.f32 %v1015_v35, %v412_v49  ;;  %v559_v54 = vmax.f32 %v495_v50, 0.0 }
  0xc0   :  { %v575_v55 = vmax.f32 %v511_v51, 0.0  ;;  %v528_v56 = vmax.f32 %v464_v52, 0.0 }
  0xc1   :  { %v544_v57 = vmax.f32 %v480_v53, 0.0  ;;  %v623_v58 = vpack.c.bf16 %v559_v54, %v559_v54 }
  0xc2   :  { %v639_v59 = vpack.c.bf16 %v575_v55, %v575_v55  ;;  %v592_v60 = vpack.c.bf16 %v528_v56, %v528_v56  ;;  %v322_v62 = vpop.f32.mrf.mxu2 }
  0xc3   :  { %v608_v61 = vpack.c.bf16 %v544_v57, %v544_v57  ;;  %v362_v63 = vpop.f32.mrf.mxu3  ;;  %688 = vst.msk [vmem:[%s1405_s4 + $0x98] sm:$0xf] %vm649_vm2, %v623_v58  ;;  %v428_v0 = vmul.f32 %v1010_v34, %v322_v62  ;;  %v245_v2 = vpop.f32.mrf.mxu0 }
  0xc4   :  { %v444_v1 = vmul.f32 %v1010_v34, %v362_v63  ;;  %v285_v3 = vpop.f32.mrf.mxu1  ;;  %704 = vst.msk [vmem:[%s1405_s4 + $0xd8] sm:$0xf] %vm649_vm2, %v639_v59  ;;  %v397_v4 = vmul.f32 %v1010_v34, %v245_v2 }
  0xc5   :  { %v413_v5 = vmul.f32 %v1010_v34, %v285_v3  ;;  %657 = vst.msk [vmem:[%s1405_s4 + $0x1c] sm:$0xf] %vm649_vm2, %v592_v60  ;;  %v496_v6 = vadd.f32 %v1015_v35, %v428_v0 }
  0xc6   :  { %v512_v7 = vadd.f32 %v1015_v35, %v444_v1  ;;  %673 = vst.msk [vmem:[%s1405_s4 + $0x5c] sm:$0xf] %vm649_vm2, %v608_v61  ;;  %v465_v8 = vadd.f32 %v1015_v35, %v397_v4 }
  0xc7   :  { %v481_v9 = vadd.f32 %v1015_v35, %v413_v5  ;;  %v560_v10 = vmax.f32 %v496_v6, 0.0 }
  0xc8   :  { %v576_v11 = vmax.f32 %v512_v7, 0.0  ;;  %v529_v12 = vmax.f32 %v465_v8, 0.0 }
  0xc9   :  { %v545_v13 = vmax.f32 %v481_v9, 0.0  ;;  %v624_v14 = vpack.c.bf16 %v560_v10, %v560_v10 }
  0xca   :  { %v640_v15 = vpack.c.bf16 %v576_v11, %v576_v11  ;;  %v593_v16 = vpack.c.bf16 %v529_v12, %v529_v12  ;;  %v325_v18 = vpop.f32.mrf.mxu2 }
  0xcb   :  { %v609_v17 = vpack.c.bf16 %v545_v13, %v545_v13  ;;  %v365_v19 = vpop.f32.mrf.mxu3  ;;  %689 = vst.msk [vmem:[%s1405_s4 + $0x9c] sm:$0xf] %vm649_vm2, %v624_v14  ;;  %v429_v20 = vmul.f32 %v1010_v34, %v325_v18  ;;  %v247_v22 = vpop.f32.mrf.mxu0 }
  0xcc   :  { %v445_v21 = vmul.f32 %v1010_v34, %v365_v19  ;;  %v287_v23 = vpop.f32.mrf.mxu1  ;;  %705 = vst.msk [vmem:[%s1405_s4 + $0xdc] sm:$0xf] %vm649_vm2, %v640_v15  ;;  %v398_v24 = vmul.f32 %v1010_v34, %v247_v22 }
  0xcd   :  { %v414_v25 = vmul.f32 %v1010_v34, %v287_v23  ;;  %658 = vst.msk [vmem:[%s1405_s4 + $0x20] sm:$0xf] %vm649_vm2, %v593_v16  ;;  %v497_v26 = vadd.f32 %v1015_v35, %v429_v20 }
  0xce   :  { %v513_v27 = vadd.f32 %v1015_v35, %v445_v21  ;;  %674 = vst.msk [vmem:[%s1405_s4 + $0x60] sm:$0xf] %vm649_vm2, %v609_v17  ;;  %v466_v28 = vadd.f32 %v1015_v35, %v398_v24 }
  0xcf   :  { %v482_v29 = vadd.f32 %v1015_v35, %v414_v25  ;;  %v561_v30 = vmax.f32 %v497_v26, 0.0 }
  0xd0   :  { %v577_v31 = vmax.f32 %v513_v27, 0.0  ;;  %v530_v32 = vmax.f32 %v466_v28, 0.0 }
  0xd1   :  { %v546_v33 = vmax.f32 %v482_v29, 0.0  ;;  %v625_v36 = vpack.c.bf16 %v561_v30, %v561_v30 }
  0xd2   :  { %v641_v37 = vpack.c.bf16 %v577_v31, %v577_v31  ;;  %v594_v38 = vpack.c.bf16 %v530_v32, %v530_v32  ;;  %v327_v40 = vpop.f32.mrf.mxu2 }
  0xd3   :  { %v610_v39 = vpack.c.bf16 %v546_v33, %v546_v33  ;;  %v367_v41 = vpop.f32.mrf.mxu3  ;;  %690 = vst.msk [vmem:[%s1405_s4 + $0xa0] sm:$0xf] %vm649_vm2, %v625_v36  ;;  %v430_v42 = vmul.f32 %v1010_v34, %v327_v40  ;;  %v250_v44 = vpop.f32.mrf.mxu0 }
  0xd4   :  { %v446_v43 = vmul.f32 %v1010_v34, %v367_v41  ;;  %v290_v45 = vpop.f32.mrf.mxu1  ;;  %706 = vst.msk [vmem:[%s1405_s4 + $0xe0] sm:$0xf] %vm649_vm2, %v641_v37  ;;  %v399_v46 = vmul.f32 %v1010_v34, %v250_v44 }
  0xd5   :  { %v415_v47 = vmul.f32 %v1010_v34, %v290_v45  ;;  %659 = vst.msk [vmem:[%s1405_s4 + $0x24] sm:$0xf] %vm649_vm2, %v594_v38  ;;  %v498_v48 = vadd.f32 %v1015_v35, %v430_v42 }
  0xd6   :  { %v514_v49 = vadd.f32 %v1015_v35, %v446_v43  ;;  %675 = vst.msk [vmem:[%s1405_s4 + $0x64] sm:$0xf] %vm649_vm2, %v610_v39  ;;  %v467_v50 = vadd.f32 %v1015_v35, %v399_v46 }
  0xd7   :  { %v483_v51 = vadd.f32 %v1015_v35, %v415_v47  ;;  %v562_v52 = vmax.f32 %v498_v48, 0.0 }
  0xd8   :  { %v578_v53 = vmax.f32 %v514_v49, 0.0  ;;  %v531_v54 = vmax.f32 %v467_v50, 0.0 }
  0xd9   :  { %v547_v55 = vmax.f32 %v483_v51, 0.0  ;;  %v626_v56 = vpack.c.bf16 %v562_v52, %v562_v52 }
  0xda   :  { %v642_v57 = vpack.c.bf16 %v578_v53, %v578_v53  ;;  %v595_v58 = vpack.c.bf16 %v531_v54, %v531_v54  ;;  %v330_v60 = vpop.f32.mrf.mxu2 }
  0xdb   :  { %v611_v59 = vpack.c.bf16 %v547_v55, %v547_v55  ;;  %v370_v61 = vpop.f32.mrf.mxu3  ;;  %691 = vst.msk [vmem:[%s1405_s4 + $0xa4] sm:$0xf] %vm649_vm2, %v626_v56  ;;  %v431_v62 = vmul.f32 %v1010_v34, %v330_v60  ;;  %v252_v0 = vpop.f32.mrf.mxu0 }
  0xdc   :  { %v447_v63 = vmul.f32 %v1010_v34, %v370_v61  ;;  %v292_v1 = vpop.f32.mrf.mxu1  ;;  %707 = vst.msk [vmem:[%s1405_s4 + $0xe4] sm:$0xf] %vm649_vm2, %v642_v57  ;;  %v400_v2 = vmul.f32 %v1010_v34, %v252_v0 }
  0xdd   :  { %v416_v3 = vmul.f32 %v1010_v34, %v292_v1  ;;  %660 = vst.msk [vmem:[%s1405_s4 + $0x28] sm:$0xf] %vm649_vm2, %v595_v58  ;;  %v499_v4 = vadd.f32 %v1015_v35, %v431_v62 }
  0xde   :  { %v515_v5 = vadd.f32 %v1015_v35, %v447_v63  ;;  %676 = vst.msk [vmem:[%s1405_s4 + $0x68] sm:$0xf] %vm649_vm2, %v611_v59  ;;  %v468_v6 = vadd.f32 %v1015_v35, %v400_v2 }
  0xdf   :  { %v484_v7 = vadd.f32 %v1015_v35, %v416_v3  ;;  %v563_v8 = vmax.f32 %v499_v4, 0.0 }
  0xe0   :  { %v579_v9 = vmax.f32 %v515_v5, 0.0  ;;  %v532_v10 = vmax.f32 %v468_v6, 0.0 }
  0xe1   :  { %v548_v11 = vmax.f32 %v484_v7, 0.0  ;;  %v627_v12 = vpack.c.bf16 %v563_v8, %v563_v8 }
  0xe2   :  { %v643_v13 = vpack.c.bf16 %v579_v9, %v579_v9  ;;  %v596_v14 = vpack.c.bf16 %v532_v10, %v532_v10  ;;  %v332_v16 = vpop.f32.mrf.mxu2 }
  0xe3   :  { %v612_v15 = vpack.c.bf16 %v548_v11, %v548_v11  ;;  %v372_v17 = vpop.f32.mrf.mxu3  ;;  %692 = vst.msk [vmem:[%s1405_s4 + $0xa8] sm:$0xf] %vm649_vm2, %v627_v12  ;;  %v432_v18 = vmul.f32 %v1010_v34, %v332_v16  ;;  %v255_v20 = vpop.f32.mrf.mxu0 }
  0xe4   :  { %v448_v19 = vmul.f32 %v1010_v34, %v372_v17  ;;  %v295_v21 = vpop.f32.mrf.mxu1  ;;  %708 = vst.msk [vmem:[%s1405_s4 + $0xe8] sm:$0xf] %vm649_vm2, %v643_v13  ;;  %v401_v22 = vmul.f32 %v1010_v34, %v255_v20 }
  0xe5   :  { %v417_v23 = vmul.f32 %v1010_v34, %v295_v21  ;;  %661 = vst.msk [vmem:[%s1405_s4 + $0x2c] sm:$0xf] %vm649_vm2, %v596_v14  ;;  %v500_v24 = vadd.f32 %v1015_v35, %v432_v18 }
  0xe6   :  { %v516_v25 = vadd.f32 %v1015_v35, %v448_v19  ;;  %677 = vst.msk [vmem:[%s1405_s4 + $0x6c] sm:$0xf] %vm649_vm2, %v612_v15  ;;  %v469_v26 = vadd.f32 %v1015_v35, %v401_v22 }
  0xe7   :  { %v485_v27 = vadd.f32 %v1015_v35, %v417_v23  ;;  %v564_v28 = vmax.f32 %v500_v24, 0.0 }
  0xe8   :  { %v580_v29 = vmax.f32 %v516_v25, 0.0  ;;  %v533_v30 = vmax.f32 %v469_v26, 0.0 }
  0xe9   :  { %v549_v31 = vmax.f32 %v485_v27, 0.0  ;;  %v628_v32 = vpack.c.bf16 %v564_v28, %v564_v28 }
  0xea   :  { %v644_v33 = vpack.c.bf16 %v580_v29, %v580_v29  ;;  %v597_v36 = vpack.c.bf16 %v533_v30, %v533_v30  ;;  %v335_v38 = vpop.f32.mrf.mxu2 }
  0xeb   :  { %v613_v37 = vpack.c.bf16 %v549_v31, %v549_v31  ;;  %v375_v39 = vpop.f32.mrf.mxu3  ;;  %693 = vst.msk [vmem:[%s1405_s4 + $0xac] sm:$0xf] %vm649_vm2, %v628_v32  ;;  %v433_v40 = vmul.f32 %v1010_v34, %v335_v38  ;;  %v257_v42 = vpop.f32.mrf.mxu0 }
  0xec   :  { %v449_v41 = vmul.f32 %v1010_v34, %v375_v39  ;;  %v297_v43 = vpop.f32.mrf.mxu1  ;;  %709 = vst.msk [vmem:[%s1405_s4 + $0xec] sm:$0xf] %vm649_vm2, %v644_v33  ;;  %v402_v44 = vmul.f32 %v1010_v34, %v257_v42 }
  0xed   :  { %v418_v45 = vmul.f32 %v1010_v34, %v297_v43  ;;  %662 = vst.msk [vmem:[%s1405_s4 + $0x30] sm:$0xf] %vm649_vm2, %v597_v36  ;;  %v501_v46 = vadd.f32 %v1015_v35, %v433_v40 }
  0xee   :  { %v517_v47 = vadd.f32 %v1015_v35, %v449_v41  ;;  %678 = vst.msk [vmem:[%s1405_s4 + $0x70] sm:$0xf] %vm649_vm2, %v613_v37  ;;  %v470_v48 = vadd.f32 %v1015_v35, %v402_v44 }
  0xef   :  { %v486_v49 = vadd.f32 %v1015_v35, %v418_v45  ;;  %v565_v50 = vmax.f32 %v501_v46, 0.0 }
  0xf0   :  { %v581_v51 = vmax.f32 %v517_v47, 0.0  ;;  %v534_v52 = vmax.f32 %v470_v48, 0.0 }
  0xf1   :  { %v550_v53 = vmax.f32 %v486_v49, 0.0  ;;  %v629_v54 = vpack.c.bf16 %v565_v50, %v565_v50 }
  0xf2   :  { %v645_v55 = vpack.c.bf16 %v581_v51, %v581_v51  ;;  %v598_v56 = vpack.c.bf16 %v534_v52, %v534_v52  ;;  %v337_v58 = vpop.f32.mrf.mxu2 }
  0xf3   :  { %v614_v57 = vpack.c.bf16 %v550_v53, %v550_v53  ;;  %v377_v59 = vpop.f32.mrf.mxu3  ;;  %694 = vst.msk [vmem:[%s1405_s4 + $0xb0] sm:$0xf] %vm649_vm2, %v629_v54  ;;  %v434_v60 = vmul.f32 %v1010_v34, %v337_v58  ;;  %v260_v62 = vpop.f32.mrf.mxu0 }
  0xf4   :  { %v450_v61 = vmul.f32 %v1010_v34, %v377_v59  ;;  %v300_v63 = vpop.f32.mrf.mxu1  ;;  %710 = vst.msk [vmem:[%s1405_s4 + $0xf0] sm:$0xf] %vm649_vm2, %v645_v55  ;;  %v403_v0 = vmul.f32 %v1010_v34, %v260_v62 }
  0xf5   :  { %v419_v1 = vmul.f32 %v1010_v34, %v300_v63  ;;  %663 = vst.msk [vmem:[%s1405_s4 + $0x34] sm:$0xf] %vm649_vm2, %v598_v56  ;;  %v502_v2 = vadd.f32 %v1015_v35, %v434_v60 }
  0xf6   :  { %v518_v3 = vadd.f32 %v1015_v35, %v450_v61  ;;  %679 = vst.msk [vmem:[%s1405_s4 + $0x74] sm:$0xf] %vm649_vm2, %v614_v57  ;;  %v471_v4 = vadd.f32 %v1015_v35, %v403_v0 }
  0xf7   :  { %v487_v5 = vadd.f32 %v1015_v35, %v419_v1  ;;  %v566_v6 = vmax.f32 %v502_v2, 0.0 }
  0xf8   :  { %v582_v7 = vmax.f32 %v518_v3, 0.0  ;;  %v535_v8 = vmax.f32 %v471_v4, 0.0 }
  0xf9   :  { %v551_v9 = vmax.f32 %v487_v5, 0.0  ;;  %v630_v10 = vpack.c.bf16 %v566_v6, %v566_v6 }
  0xfa   :  { %v646_v11 = vpack.c.bf16 %v582_v7, %v582_v7  ;;  %v599_v12 = vpack.c.bf16 %v535_v8, %v535_v8  ;;  %v340_v14 = vpop.f32.mrf.mxu2 }
  0xfb   :  { %v615_v13 = vpack.c.bf16 %v551_v9, %v551_v9  ;;  %v380_v15 = vpop.f32.mrf.mxu3  ;;  %695 = vst.msk [vmem:[%s1405_s4 + $0xb4] sm:$0xf] %vm649_vm2, %v630_v10  ;;  %v435_v16 = vmul.f32 %v1010_v34, %v340_v14  ;;  %v262_v18 = vpop.f32.mrf.mxu0 }
  0xfc   :  { %v451_v17 = vmul.f32 %v1010_v34, %v380_v15  ;;  %v302_v19 = vpop.f32.mrf.mxu1  ;;  %711 = vst.msk [vmem:[%s1405_s4 + $0xf4] sm:$0xf] %vm649_vm2, %v646_v11  ;;  %v404_v20 = vmul.f32 %v1010_v34, %v262_v18 }
  0xfd   :  { %v420_v21 = vmul.f32 %v1010_v34, %v302_v19  ;;  %664 = vst.msk [vmem:[%s1405_s4 + $0x38] sm:$0xf] %vm649_vm2, %v599_v12  ;;  %v503_v22 = vadd.f32 %v1015_v35, %v435_v16 }
  0xfe   :  { %v519_v23 = vadd.f32 %v1015_v35, %v451_v17  ;;  %680 = vst.msk [vmem:[%s1405_s4 + $0x78] sm:$0xf] %vm649_vm2, %v615_v13  ;;  %v472_v24 = vadd.f32 %v1015_v35, %v404_v20 }
  0xff   :  { %v488_v25 = vadd.f32 %v1015_v35, %v420_v21  ;;  %v567_v26 = vmax.f32 %v503_v22, 0.0 }
 0x100   :  { %v583_v27 = vmax.f32 %v519_v23, 0.0  ;;  %v536_v28 = vmax.f32 %v472_v24, 0.0 }
 0x101   :  { %v552_v29 = vmax.f32 %v488_v25, 0.0  ;;  %v631_v30 = vpack.c.bf16 %v567_v26, %v567_v26 }
 0x102   :  { %v647_v31 = vpack.c.bf16 %v583_v27, %v583_v27  ;;  %v600_v32 = vpack.c.bf16 %v536_v28, %v536_v28  ;;  %v342_v36 = vpop.f32.mrf.mxu2 }
 0x103   :  { %v616_v33 = vpack.c.bf16 %v552_v29, %v552_v29  ;;  %v382_v37 = vpop.f32.mrf.mxu3  ;;  %696 = vst.msk [vmem:[%s1405_s4 + $0xb8] sm:$0xf] %vm649_vm2, %v631_v30  ;;  %v436_v38 = vmul.f32 %v1010_v34, %v342_v36 }
 0x104   :  { %v452_v39 = vmul.f32 %v1010_v34, %v382_v37  ;;  %712 = vst.msk [vmem:[%s1405_s4 + $0xf8] sm:$0xf] %vm649_vm2, %v647_v31 }
 0x105   :  { %665 = vst.msk [vmem:[%s1405_s4 + $0x3c] sm:$0xf] %vm649_vm2, %v600_v32  ;;  %v504_v40 = vadd.f32 %v1015_v35, %v436_v38 }
 0x106   :  { %v520_v41 = vadd.f32 %v1015_v35, %v452_v39  ;;  %681 = vst.msk [vmem:[%s1405_s4 + $0x7c] sm:$0xf] %vm649_vm2, %v616_v33 }
 0x107   :  { %v568_v34 = vmax.f32 %v504_v40, 0.0 }
 0x108   :  { %v584_v42 = vmax.f32 %v520_v41, 0.0 }
 0x109   :  { %v632_v43 = vpack.c.bf16 %v568_v34, %v568_v34 }
 0x10a   :  { %v648_v44 = vpack.c.bf16 %v584_v42, %v584_v42 }
 0x10b   :  { %697 = vst.msk [vmem:[%s1405_s4 + $0xbc] sm:$0xf] %vm649_vm2, %v632_v43 }
 0x10c   :  { %713 = vst.msk [vmem:[%s1405_s4 + $0xfc] sm:$0xf] %vm649_vm2, %v648_v44 }

// kernel: corblock_s_forward.10
= control target key start
LH: loop header
LB: loop body
LE: loop exit
PB: predicated region body
PF: predicated region fallthrough
CT: control target
= control target key end

     0   :  { %vm68_vm0 = vcmask 1043456   ;;  %vm43_vm1 = vcmask 64512   ;;  %vm193_vm2 = vcmask 257024   ;;  %s417_s1 = inlined_call_operand.vmem [shape: bf16[8,32], index: 1, kind: input, shape index: {}]   ;;  %s418_s0 = inlined_call_operand.vmem [shape: f32[128,8], index: 0, kind: input, shape index: {}]   ;;  %s419_s2 = inlined_call_operand.vmem [shape: f32[1,32], index: 2, kind: input, shape index: {}]   ;;  %s420_s3 = inlined_call_operand.vmem [shape: f32[1,32], index: 3, kind: input, shape index: {}]   ;;  %s421_s4 = inlined_call_operand.vmem [shape: bf16[128,32], index: 4, kind: output, shape index: {}]  }
   0x1   :  { %v42_v0 = vld [vmem:[%s417_s1] sm:$0xf]  ;;  %v19_v2 = vld [vmem:[%s418_s0 + $0x8] sm:$0xff]  ;;  %v20_v14 = vld [vmem:[%s418_s0 + $0x10] sm:$0xff] }
   0x2   :  { %v18_v1 = vld [vmem:[%s418_s0] sm:$0xff]  ;;  %v70_v3 = vsel %vm68_vm0, %v42_v0, 0  ;;  %v23_v6 = vld [vmem:[%s418_s0 + $0x28] sm:$0xff]  ;;  %v21_v15 = vld [vmem:[%s418_s0 + $0x18] sm:$0xff] }
   0x3   :  { %v34_v4 = vpack.c.bf16 %v19_v2, %v18_v1  ;;  %v22_v5 = vld [vmem:[%s418_s0 + $0x20] sm:$0xff]  ;;  %79 = vmatpush.bf16.msra.mxu0 %v70_v3  ;;  %222 = vmatpush.bf16.msra.mxu1 %v70_v3  ;;  %v27_v9 = vld [vmem:[%s418_s0 + $0x48] sm:$0xff]  ;;  %v24_v16 = vld [vmem:[%s418_s0 + $0x30] sm:$0xff]  ;;  %v35_v22 = vpack.c.bf16 %v21_v15, %v20_v14 }
   0x4   :  { %v26_v7 = vld [vmem:[%s418_s0 + $0x40] sm:$0xff]  ;;  %v36_v8 = vpack.c.bf16 %v23_v6, %v22_v5  ;;  %v31_v11 = vld [vmem:[%s418_s0 + $0x68] sm:$0xff]  ;;  %223 = vmatpush.bf16.msra.mxu2 %v70_v3  ;;  %224 = vmatpush.bf16.msra.mxu3 %v70_v3  ;;  %v25_v17 = vld [vmem:[%s418_s0 + $0x38] sm:$0xff] }
   0x5   :  { %v30_v10 = vld [vmem:[%s418_s0 + $0x60] sm:$0xff]  ;;  %v38_v12 = vpack.c.bf16 %v27_v9, %v26_v7  ;;  %v28_v18 = vld [vmem:[%s418_s0 + $0x50] sm:$0xff]  ;;  %v29_v19 = vld [vmem:[%s418_s0 + $0x58] sm:$0xff]  ;;  %v37_v23 = vpack.c.bf16 %v25_v17, %v24_v16 }
   0x6   :  { %v40_v13 = vpack.c.bf16 %v31_v11, %v30_v10  ;;  %214 = vmatmul.msk.bf16.vlgmr.msra.gmra.mxu0 %vm43_vm1, %v34_v4  ;;  %216 = vmatmul.msk.bf16.vlgmr.msra.gmra.mxu1 %vm43_vm1, %v36_v8  ;;  %v32_v20 = vld [vmem:[%s418_s0 + $0x70] sm:$0xff]  ;;  %v33_v21 = vld [vmem:[%s418_s0 + $0x78] sm:$0xff]  ;;  %v39_v24 = vpack.c.bf16 %v29_v19, %v28_v18  ;;  %v314_v26 = vld [vmem:[%s419_s2] ss:$0 sm:$0xff] }
   0x7   :  { %218 = vmatmul.msk.bf16.vlgmr.msra.gmra.mxu2 %vm43_vm1, %v38_v12  ;;  %v41_v25 = vpack.c.bf16 %v33_v21, %v32_v20  ;;  %v319_v27 = vld [vmem:[%s420_s3] ss:$0 sm:$0xff] }
   0x8   :  { %220 = vmatmul.msk.bf16.vlgmr.msra.gmra.mxu3 %vm43_vm1, %v40_v13 }
  0x16   :  { %215 = vmatmul.msk.bf16.gmra.mxu0 %vm43_vm1, %v35_v22  ;;  %217 = vmatmul.msk.bf16.gmra.mxu1 %vm43_vm1, %v37_v23 }
  0x17   :  { %219 = vmatmul.msk.bf16.gmra.mxu2 %vm43_vm1, %v39_v24 }
  0x18   :  { %221 = vmatmul.msk.bf16.gmra.mxu3 %vm43_vm1, %v41_v25 }
  0x83   :  { %v81_v28 = vpop.f32.mrf.mxu0  ;;  %v91_v29 = vpop.f32.mrf.mxu1 }
  0x84   :  { %v125_v30 = vmul.f32 %v314_v26, %v81_v28  ;;  %v129_v31 = vmul.f32 %v314_v26, %v91_v29 }
  0x86   :  { %v145_v32 = vadd.f32 %v319_v27, %v125_v30  ;;  %v149_v33 = vadd.f32 %v319_v27, %v129_v31 }
  0x88   :  { %v161_v34 = vmax.f32 %v145_v32, 0.0  ;;  %v165_v35 = vmax.f32 %v149_v33, 0.0 }
  0x8a   :  { %v177_v36 = vpack.c.bf16 %v161_v34, %v161_v34  ;;  %v181_v37 = vpack.c.bf16 %v165_v35, %v165_v35  ;;  %v101_v38 = vpop.f32.mrf.mxu2 }
  0x8b   :  { %v111_v39 = vpop.f32.mrf.mxu3  ;;  %v133_v40 = vmul.f32 %v314_v26, %v101_v38  ;;  %v83_v42 = vpop.f32.mrf.mxu0 }
  0x8c   :  { %v137_v41 = vmul.f32 %v314_v26, %v111_v39  ;;  %v93_v43 = vpop.f32.mrf.mxu1  ;;  %194 = vst.msk [vmem:[%s421_s4] sm:$0xf] %vm193_vm2, %v177_v36  ;;  %v126_v44 = vmul.f32 %v314_v26, %v83_v42 }
  0x8d   :  { %v130_v45 = vmul.f32 %v314_v26, %v93_v43  ;;  %198 = vst.msk [vmem:[%s421_s4 + $0x10] sm:$0xf] %vm193_vm2, %v181_v37  ;;  %v153_v46 = vadd.f32 %v319_v27, %v133_v40 }
  0x8e   :  { %v157_v47 = vadd.f32 %v319_v27, %v137_v41  ;;  %v146_v48 = vadd.f32 %v319_v27, %v126_v44 }
  0x8f   :  { %v150_v49 = vadd.f32 %v319_v27, %v130_v45  ;;  %v169_v50 = vmax.f32 %v153_v46, 0.0 }
  0x90   :  { %v173_v51 = vmax.f32 %v157_v47, 0.0  ;;  %v162_v52 = vmax.f32 %v146_v48, 0.0 }
  0x91   :  { %v166_v53 = vmax.f32 %v150_v49, 0.0  ;;  %v185_v54 = vpack.c.bf16 %v169_v50, %v169_v50 }
  0x92   :  { %v189_v55 = vpack.c.bf16 %v173_v51, %v173_v51  ;;  %v178_v56 = vpack.c.bf16 %v162_v52, %v162_v52  ;;  %v103_v58 = vpop.f32.mrf.mxu2 }
  0x93   :  { %v182_v57 = vpack.c.bf16 %v166_v53, %v166_v53  ;;  %v113_v59 = vpop.f32.mrf.mxu3  ;;  %202 = vst.msk [vmem:[%s421_s4 + $0x20] sm:$0xf] %vm193_vm2, %v185_v54  ;;  %v134_v60 = vmul.f32 %v314_v26, %v103_v58  ;;  %v86_v62 = vpop.f32.mrf.mxu0 }
  0x94   :  { %v138_v61 = vmul.f32 %v314_v26, %v113_v59  ;;  %v96_v63 = vpop.f32.mrf.mxu1  ;;  %206 = vst.msk [vmem:[%s421_s4 + $0x30] sm:$0xf] %vm193_vm2, %v189_v55  ;;  %v127_v0 = vmul.f32 %v314_v26, %v86_v62 }
  0x95   :  { %v131_v1 = vmul.f32 %v314_v26, %v96_v63  ;;  %195 = vst.msk [vmem:[%s421_s4 + $0x4] sm:$0xf] %vm193_vm2, %v178_v56  ;;  %v154_v2 = vadd.f32 %v319_v27, %v134_v60 }
  0x96   :  { %v158_v3 = vadd.f32 %v319_v27, %v138_v61  ;;  %199 = vst.msk [vmem:[%s421_s4 + $0x14] sm:$0xf] %vm193_vm2, %v182_v57  ;;  %v147_v4 = vadd.f32 %v319_v27, %v127_v0 }
  0x97   :  { %v151_v5 = vadd.f32 %v319_v27, %v131_v1  ;;  %v170_v6 = vmax.f32 %v154_v2, 0.0 }
  0x98   :  { %v174_v7 = vmax.f32 %v158_v3, 0.0  ;;  %v163_v8 = vmax.f32 %v147_v4, 0.0 }
  0x99   :  { %v167_v9 = vmax.f32 %v151_v5, 0.0  ;;  %v186_v10 = vpack.c.bf16 %v170_v6, %v170_v6 }
  0x9a   :  { %v190_v11 = vpack.c.bf16 %v174_v7, %v174_v7  ;;  %v179_v12 = vpack.c.bf16 %v163_v8, %v163_v8  ;;  %v106_v14 = vpop.f32.mrf.mxu2 }
  0x9b   :  { %v183_v13 = vpack.c.bf16 %v167_v9, %v167_v9  ;;  %v116_v15 = vpop.f32.mrf.mxu3  ;;  %203 = vst.msk [vmem:[%s421_s4 + $0x24] sm:$0xf] %vm193_vm2, %v186_v10  ;;  %v135_v16 = vmul.f32 %v314_v26, %v106_v14  ;;  %v88_v18 = vpop.f32.mrf.mxu0 }
  0x9c   :  { %v139_v17 = vmul.f32 %v314_v26, %v116_v15  ;;  %v98_v19 = vpop.f32.mrf.mxu1  ;;  %207 = vst.msk [vmem:[%s421_s4 + $0x34] sm:$0xf] %vm193_vm2, %v190_v11  ;;  %v128_v20 = vmul.f32 %v314_v26, %v88_v18 }
  0x9d   :  { %v132_v21 = vmul.f32 %v314_v26, %v98_v19  ;;  %196 = vst.msk [vmem:[%s421_s4 + $0x8] sm:$0xf] %vm193_vm2, %v179_v12  ;;  %v155_v22 = vadd.f32 %v319_v27, %v135_v16 }
  0x9e   :  { %v159_v23 = vadd.f32 %v319_v27, %v139_v17  ;;  %200 = vst.msk [vmem:[%s421_s4 + $0x18] sm:$0xf] %vm193_vm2, %v183_v13  ;;  %v148_v24 = vadd.f32 %v319_v27, %v128_v20 }
  0x9f   :  { %v152_v25 = vadd.f32 %v319_v27, %v132_v21  ;;  %v171_v28 = vmax.f32 %v155_v22, 0.0 }
  0xa0   :  { %v175_v29 = vmax.f32 %v159_v23, 0.0  ;;  %v164_v30 = vmax.f32 %v148_v24, 0.0 }
  0xa1   :  { %v168_v31 = vmax.f32 %v152_v25, 0.0  ;;  %v187_v32 = vpack.c.bf16 %v171_v28, %v171_v28 }
  0xa2   :  { %v191_v33 = vpack.c.bf16 %v175_v29, %v175_v29  ;;  %v180_v34 = vpack.c.bf16 %v164_v30, %v164_v30  ;;  %v108_v36 = vpop.f32.mrf.mxu2 }
  0xa3   :  { %v184_v35 = vpack.c.bf16 %v168_v31, %v168_v31  ;;  %v118_v37 = vpop.f32.mrf.mxu3  ;;  %204 = vst.msk [vmem:[%s421_s4 + $0x28] sm:$0xf] %vm193_vm2, %v187_v32  ;;  %v136_v38 = vmul.f32 %v314_v26, %v108_v36 }
  0xa4   :  { %v140_v39 = vmul.f32 %v314_v26, %v118_v37  ;;  %208 = vst.msk [vmem:[%s421_s4 + $0x38] sm:$0xf] %vm193_vm2, %v191_v33 }
  0xa5   :  { %197 = vst.msk [vmem:[%s421_s4 + $0xc] sm:$0xf] %vm193_vm2, %v180_v34  ;;  %v156_v40 = vadd.f32 %v319_v27, %v136_v38 }
  0xa6   :  { %v160_v41 = vadd.f32 %v319_v27, %v140_v39  ;;  %201 = vst.msk [vmem:[%s421_s4 + $0x1c] sm:$0xf] %vm193_vm2, %v184_v35 }
  0xa7   :  { %v172_v26 = vmax.f32 %v156_v40, 0.0 }
  0xa8   :  { %v176_v42 = vmax.f32 %v160_v41, 0.0 }
  0xa9   :  { %v188_v43 = vpack.c.bf16 %v172_v26, %v172_v26 }
  0xaa   :  { %v192_v44 = vpack.c.bf16 %v176_v42, %v176_v42 }
  0xab   :  { %205 = vst.msk [vmem:[%s421_s4 + $0x2c] sm:$0xf] %vm193_vm2, %v188_v43 }
  0xac   :  { %209 = vst.msk [vmem:[%s421_s4 + $0x3c] sm:$0xf] %vm193_vm2, %v192_v44 }

// kernel: corblock_s_forward.9
= control target key start
LH: loop header
LB: loop body
LE: loop exit
PB: predicated region body
PF: predicated region fallthrough
CT: control target
= control target key end

     0   :  { %s2307_s27 = smov 0   ;;  %s2309_s28 = smov 0   ;;  %s2690_s0 = inlined_call_operand.vmem [shape: bf16[2,4,9,9,32], index: 0, kind: input, shape index: {}]   ;;  %s2691_s1 = inlined_call_operand.vmem [shape: bf16[3,3,32,32], index: 1, kind: input, shape index: {}]   ;;  %s2692_s2 = inlined_call_operand.vmem [shape: f32[1,32], index: 2, kind: input, shape index: {}]   ;;  %s2693_s3 = inlined_call_operand.vmem [shape: f32[1,32], index: 3, kind: input, shape index: {}]   ;;  %s2694_s4 = inlined_call_operand.vmem [shape: bf16[32,8], index: 4, kind: input, shape index: {}]   ;;  %s2695_s5 = inlined_call_operand.vmem [shape: f32[1,8], index: 5, kind: input, shape index: {}]   ;;  %s2696_s6 = inlined_call_operand.vmem [shape: f32[1,8], index: 6, kind: input, shape index: {}]   ;;  %s2697_s7 = inlined_call_operand.vmem [shape: f32[2,8,8,8], index: 7, kind: input, shape index: {}]   ;;  %s2698_s8 = inlined_call_operand.vmem [shape: f32[2,8,8,8], index: 8, kind: output, shape index: {}]  }
   0x1   :  { %s2311_s29 = smov 0  }
   0x2 LB: > { %s30_s30 = sadd.s32 1, %s2256_s28  ;;  %p1831_p0 = scmp.ge.s32.totalorder %s2260_s29, 1  ;;  %s2260_s29 = sphi %s2311_s29, %s18_s29   ;;  %s2256_s28 = sphi %s2309_s28, %s2702_s28   ;;  %s2252_s27 = sphi %s2307_s27, %s2701_s27  }
   0x3   : > { %p32_p1 = scmp.ge.s32.totalorder %s30_s30, 2  ;;  %p293_p2 = scmp.lt.s32.totalorder %s2260_s29, 3 }
   0x5   : > { %s2704_s30 = smov (%p32_p1, %s30_s30), 0  ;;  %p294_p3 = pnand %p1831_p0, %p293_p2 }
   0x6   : > { %p340_p4 = scmp.lt.s32.totalorder (!%p294_p3), %s2252_s27, 1 }
   0x7   : > { %297 = sbr.rel (%p294_p3) target bundleno = 461 (0x1cd), region = 52 }
   0xc   : > { %v2172_v0 = vld [vmem:[%s2691_s1 + $0x18] sm:$0xff]  ;;  %v2166_v1 = vld [vmem:[%s2691_s1 + $0x8] sm:$0xff]  ;;  %v2171_v2 = vld [vmem:[%s2691_s1 + $0x10] sm:$0xff]  ;;  %s2706_s27 = smov (!%p340_p4, %s2252_s27), 1  ;;  %vm430_vm0 = vcmask 261120   ;;  %vm1696_vm4 = vcmask 64512  }
   0xd   : > { %2205 = vmatpush.bf16.msra.mxu2 %v2172_v0  ;;  %2207 = vmatpush.bf16.msra.mxu3 %v2166_v1  ;;  %v2165_v3 = vld [vmem:[%s2691_s1] sm:$0xff]  ;;  %v2174_v4 = vld [vmem:[%s2691_s1 + $0x28] sm:$0xff]  ;;  %s2209_s19 = smul.u32 288, %s2706_s27  ;;  %v2180_v5 = vld [vmem:[%s2691_s1 + $0x38] sm:$0xff]  ;;  %vm561_vm1 = vsmask.f32 3328 }
   0xe   : > { %449 = vmatpush.bf16.msra.mxu0 %v2172_v0  ;;  %522 = vmatpush.bf16.msra.mxu1 %v2166_v1  ;;  %v2186_v6 = vld [vmem:[%s2691_s1 + $0x48] sm:$0xff]  ;;  %v2173_v7 = vld [vmem:[%s2691_s1 + $0x20] sm:$0xff]  ;;  %v2179_v11 = vld [vmem:[%s2691_s1 + $0x30] sm:$0xff]  ;;  %vm562_vm2 = vsmask.f32 7440  ;;  %s2159_s21 = sshll.u32 %s2706_s27, 6 }
   0xf   : > { %s2352_s26 = scalar_lea.vmem %s2690_s0, %s2209_s19  ;;  %v2185_v20 = vld [vmem:[%s2691_s1 + $0x40] sm:$0xff]  ;;  %v2194_v30 = vld [vmem:[%s2691_s1 + $0x68] sm:$0xff]  ;;  %v2200_v31 = vld [vmem:[%s2691_s1 + $0x78] sm:$0xff]  ;;  %s2647_s9 = scalar_lea.vmem %s2697_s7, %s2159_s21 }
  0x10   : > { %v1859_v8 = vld [vmem:[%s2352_s26 + $0x68] sm:$0xf]  ;;  %v2169_v9 = vld [vmem:[%s2352_s26 + $0x6c] sm:$0xf0]  ;;  %v1887_v10 = vld [vmem:[%s2352_s26 + $0x20] sm:$0xf]  ;;  %s2656_s13 = scalar_lea.vmem %s2698_s8, %s2159_s21 }
  0x11   : > { %2206 = vmatpush.bf16.msra.mxu2 %v2171_v2  ;;  %2208 = vmatpush.bf16.msra.mxu3 %v2165_v3  ;;  %v1860_v12 = vor.u32 %v2169_v9, %v1859_v8  ;;  %v2163_v13 = vld [vmem:[%s2352_s26 + $0x24] sm:$0xf0]  ;;  %v2167_v15 = vld [vmem:[%s2352_s26 + $0x4c] sm:$0xf0]  ;;  %v1879_v18 = vld [vmem:[%s2352_s26] sm:$0xf] }
  0x12   : > { %450 = vmatpush.bf16.msra.mxu0 %v2171_v2  ;;  %523 = vmatpush.bf16.msra.mxu1 %v2165_v3  ;;  %v1851_v14 = vld [vmem:[%s2352_s26 + $0x48] sm:$0xf]  ;;  %v1888_v16 = vor.u32 %v2163_v13, %v1887_v10  ;;  %v545_v22 = vld [vmem:[%s2352_s26] sm:$0xf]  ;;  %v1863_v28 = vld [vmem:[%s2352_s26 + $0x78] sm:$0xf] }
  0x13   : > { %v1852_v17 = vor.u32 %v2167_v15, %v1851_v14  ;;  %v2161_v19 = vld [vmem:[%s2352_s26 + $0x4] sm:$0xf0]  ;;  %v565_v24 = vshrl.u32 %v545_v22, 16  ;;  %v568_v25 = vshll.u32 %v545_v22, 16  ;;  %v2170_v29 = vld [vmem:[%s2352_s26 + $0x7c] sm:$0xf0]  ;;  %vm2411_vm3 = vmor %vm561_vm1, %vm562_vm2 }
  0x14   : > { %1875 = vmatmul.msk.bf16.vlgmr.msra.gmra.mxu2 %vm430_vm0, %v1860_v12  ;;  %v1880_v21 = vor.u32 %v2161_v19, %v1879_v18  ;;  %1903 = vmatmul.msk.bf16.vlgmr.msra.gmra.mxu3 %vm430_vm0, %v1888_v16  ;;  %v547_v23 = vld [vmem:[%s2352_s26 + $0x8] sm:$0xf]  ;;  %v1891_v32 = vld [vmem:[%s2352_s26 + $0x30] sm:$0xf]  ;;  %v2164_v33 = vld [vmem:[%s2352_s26 + $0x34] sm:$0xf0]  ;;  %v1864_v49 = vor.u32 %v2170_v29, %v1863_v28 }
  0x15   : > { %723 = vmatpush.bf16.msrb.mxu2 %v2174_v4  ;;  %820 = vmatpush.bf16.msrb.mxu3 %v2180_v5  ;;  %v579_v26 = vshrl.u32 %v547_v23, 16  ;;  %v582_v27 = vshll.u32 %v547_v23, 16  ;;  %v1855_v34 = vld [vmem:[%s2352_s26 + $0x58] sm:$0xf]  ;;  %v2168_v35 = vld [vmem:[%s2352_s26 + $0x5c] sm:$0xf0]  ;;  %v1892_v50 = vor.u32 %v2164_v33, %v1891_v32 }
  0x16   : > { %917 = vmatpush.bf16.msrb.mxu0 %v2186_v6  ;;  %1901 = vmatmul.msk.bf16.vlgmr.msra.gmra.mxu1 %vm430_vm0, %v1880_v21  ;;  %v546_v36 = vld [vmem:[%s2352_s26 + $0x4] sm:$0x1]  ;;  %v567_v37 = vrot.slane %v565_v24, 4  ;;  %v2188_v38 = vld [vmem:[%s2691_s1 + $0x58] sm:$0xff]  ;;  %v570_v39 = vrot.slane %v568_v25, 5  ;;  %v2202_v42 = vld [vmem:[%s2691_s1 + $0x88] sm:$0xff]  ;;  %v1856_v55 = vor.u32 %v2168_v35, %v1855_v34 }
  0x17   : > { %1873 = vmatmul.msk.bf16.vlgmr.msra.gmra.mxu0 %vm430_vm0, %v1852_v17  ;;  %v581_v40 = vrot.slane %v579_v26, 4  ;;  %v584_v41 = vrot.slane %v582_v27, 5  ;;  %v2001_v43 = vld [vmem:[%s2352_s26 + $0x90] sm:$0xf]  ;;  %v548_v45 = vld [vmem:[%s2352_s26 + $0xc] sm:$0x1]  ;;  %1123 = vmatpush.bf16.msrb.mxu1 %v2188_v38 }
  0x18   : > { %v1883_v44 = vld [vmem:[%s2352_s26 + $0x10] sm:$0xf]  ;;  %v2003_v47 = vld [vmem:[%s2352_s26 + $0x98] sm:$0xf]  ;;  %v965_v48 = vshrl.u32 %v2001_v43, 16  ;;  %v968_v53 = vshll.u32 %v2001_v43, 16  ;;  %v571_v60 = vor.u32 %v570_v39, %v567_v37 }
  0x19   : > { %724 = vmatpush.bf16.msrb.mxu2 %v2173_v7  ;;  %821 = vmatpush.bf16.msrb.mxu3 %v2179_v11  ;;  %v2187_v46 = vld [vmem:[%s2691_s1 + $0x50] sm:$0xff]  ;;  %v2004_v52 = vld [vmem:[%s2352_s26 + $0x9c] sm:$0x1]  ;;  %v979_v54 = vshrl.u32 %v2003_v47, 16  ;;  %v2162_v56 = vld [vmem:[%s2352_s26 + $0x14] sm:$0xf0]  ;;  %v585_v61 = vor.u32 %v584_v41, %v581_v40 }
  0x1a   : > { %918 = vmatpush.bf16.msrb.mxu0 %v2185_v20  ;;  %v2002_v51 = vld [vmem:[%s2352_s26 + $0x94] sm:$0x1]  ;;  %v574_v57 = vshll.u32 %v546_v36, 16  ;;  %v967_v58 = vrot.slane %v965_v48, 4  ;;  %v982_v59 = vshll.u32 %v2003_v47, 16  ;;  %v588_v62 = vshll.u32 %v548_v45, 16 }
  0x1b   : > { %v970_v63 = vrot.slane %v968_v53, 5  ;;  %1124 = vmatpush.bf16.msrb.mxu1 %v2187_v46  ;;  %v974_v0 = vshll.u32 %v2002_v51, 16  ;;  %v981_v1 = vrot.slane %v979_v54, 4  ;;  %v988_v3 = vshll.u32 %v2004_v52, 16  ;;  %v549_v7 = vld [vmem:[%s2352_s26 + $0x10] sm:$0xf] }
  0x1c   : > { %v984_v2 = vrot.slane %v982_v59, 5  ;;  %v1884_v4 = vor.u32 %v2162_v56, %v1883_v44  ;;  %v572_v8 = vrot.slane %v571_v60, 4  ;;  %v576_v9 = vrot.slane %v574_v57, 5  ;;  %v551_v12 = vld [vmem:[%s2352_s26 + $0x18] sm:$0xf] }
  0x1d   : > { %1221 = vmatpush.bf16.msra.mxu2 %v2194_v30  ;;  %1318 = vmatpush.bf16.msra.mxu3 %v2200_v31  ;;  %v971_v5 = vor.u32 %v970_v63, %v967_v58  ;;  %v586_v10 = vrot.slane %v585_v61, 4  ;;  %v590_v11 = vrot.slane %v588_v62, 5  ;;  %v976_v14 = vrot.slane %v974_v0, 5  ;;  %v2005_v18 = vld [vmem:[%s2352_s26 + $0xa0] sm:$0xf] }
  0x1e   : > { %1524 = vmatpush.bf16.msra.mxu0 %v2202_v42  ;;  %v985_v6 = vor.u32 %v984_v2, %v981_v1  ;;  %v990_v15 = vrot.slane %v988_v3, 5  ;;  %v593_v16 = vshrl.u32 %v549_v7, 16  ;;  %v596_v17 = vshll.u32 %v549_v7, 16  ;;  %v2007_v19 = vld [vmem:[%s2352_s26 + $0xa8] sm:$0xf] }
  0x1f   : > { %v972_v20 = vrot.slane %v971_v5, 4  ;;  %v607_v22 = vshrl.u32 %v551_v12, 16  ;;  %v610_v23 = vshll.u32 %v551_v12, 16  ;;  %v577_v24 = vsel %vm2411_vm3, %v572_v8, %v576_v9  ;;  %v1935_v32 = vld [vmem:[%s2352_s26 + $0x90] sm:$0xf]  ;;  %v2201_v12 = vld [vmem:[%s2691_s1 + $0x80] sm:$0xff] }
  0x20   : > { %v986_v21 = vrot.slane %v985_v6, 4  ;;  %v591_v25 = vsel %vm2411_vm3, %v586_v10, %v590_v11  ;;  %v993_v26 = vshrl.u32 %v2005_v18, 16  ;;  %v996_v27 = vshll.u32 %v2005_v18, 16  ;;  %v2175_v39 = vld [vmem:[%s2352_s26 + $0x94] sm:$0xf0]  ;;  %v2193_v10 = vld [vmem:[%s2691_s1 + $0x60] sm:$0xff] }
  0x21   : > { %v1007_v28 = vshrl.u32 %v2007_v19, 16  ;;  %v1010_v29 = vshll.u32 %v2007_v19, 16  ;;  %v595_v30 = vrot.slane %v593_v16, 4  ;;  %v598_v31 = vrot.slane %v596_v17, 5  ;;  %v550_v40 = vld [vmem:[%s2352_s26 + $0x14] sm:$0x1]  ;;  %1222 = vmatpush.bf16.msra.mxu2 %v2193_v10 }
  0x22   : > { %v977_v33 = vsel %vm2411_vm3, %v972_v20, %v976_v14  ;;  %v991_v34 = vsel %vm2411_vm3, %v986_v21, %v990_v15  ;;  %v609_v35 = vrot.slane %v607_v22, 4  ;;  %v612_v36 = vrot.slane %v610_v23, 5  ;;  %v552_v41 = vld [vmem:[%s2352_s26 + $0x1c] sm:$0x1]  ;;  %v2006_v42 = vld [vmem:[%s2352_s26 + $0xa4] sm:$0x1]  ;;  %1525 = vmatpush.bf16.msra.mxu0 %v2201_v12 }
  0x23   : > { %v681_v37 = vunpack.c.l.b16 %v577_v24  ;;  %v682_v38 = vunpack.c.l.b16 %v591_v25  ;;  %v995_v43 = vrot.slane %v993_v26, 4  ;;  %v998_v44 = vrot.slane %v996_v27, 5  ;;  %v1975_v47 = vld [vmem:[%s2352_s26 + $0xd8] sm:$0xf]  ;;  %v2181_v48 = vld [vmem:[%s2352_s26 + $0xdc] sm:$0xf0] }
  0x24   : > { %1876 = vmatmul.msk.bf16.gmra.mxu2 %vm430_vm0, %v1864_v49  ;;  %1904 = vmatmul.msk.bf16.gmra.mxu3 %vm430_vm0, %v1892_v50  ;;  %v1009_v45 = vrot.slane %v1007_v28, 4  ;;  %v1012_v46 = vrot.slane %v1010_v29, 5  ;;  %v1081_v49 = vunpack.c.l.b16 %v977_v33  ;;  %v1082_v50 = vunpack.c.l.b16 %v991_v34  ;;  %v2008_v51 = vld [vmem:[%s2352_s26 + $0xac] sm:$0x1]  ;;  %v553_v5 = vld [vmem:[%s2352_s26 + $0x20] sm:$0xf] }
  0x25   : > { %v599_v52 = vor.u32 %v598_v31, %v595_v30  ;;  %v602_v53 = vshll.u32 %v550_v40, 16  ;;  %v613_v54 = vor.u32 %v612_v36, %v609_v35  ;;  %v689_v56 = vpack.c.b16 %v682_v38, %v681_v37  ;;  %v555_v6 = vld [vmem:[%s2352_s26 + $0x28] sm:$0xf]  ;;  %v2199_v11 = vld [vmem:[%s2691_s1 + $0x70] sm:$0xff]  ;;  %v2011_v17 = vld [vmem:[%s2352_s26 + $0xb8] sm:$0xf] }
  0x26   : > { %1902 = vmatmul.msk.bf16.gmra.mxu1 %vm430_vm0, %v1884_v4  ;;  %v1936_v57 = vor.u32 %v2175_v39, %v1935_v32  ;;  %v1002_v58 = vshll.u32 %v2006_v42, 16  ;;  %v1976_v59 = vor.u32 %v2181_v48, %v1975_v47  ;;  %v999_v60 = vor.u32 %v998_v44, %v995_v43  ;;  %1319 = vmatpush.bf16.msra.mxu3 %v2199_v11  ;;  %v2009_v16 = vld [vmem:[%s2352_s26 + $0xb0] sm:$0xf]  ;;  %v1939_v30 = vld [vmem:[%s2352_s26 + $0xa0] sm:$0xf] }
  0x27   : > { %1874 = vmatmul.msk.bf16.gmra.mxu0 %vm430_vm0, %v1856_v55  ;;  %v616_v55 = vshll.u32 %v552_v41, 16  ;;  %v1013_v61 = vor.u32 %v1012_v46, %v1009_v45  ;;  %v1016_v62 = vshll.u32 %v2008_v51, 16  ;;  %v1089_v63 = vpack.c.b16 %v1082_v50, %v1081_v49  ;;  %v554_v31 = vld [vmem:[%s2352_s26 + $0x24] sm:$0x1]  ;;  %v2176_v36 = vld [vmem:[%s2352_s26 + $0xa4] sm:$0xf0] }
  0x28   : > { %v600_v0 = vrot.slane %v599_v52, 4  ;;  %v604_v1 = vrot.slane %v602_v53, 5  ;;  %v614_v2 = vrot.slane %v613_v54, 4  ;;  %v1004_v4 = vrot.slane %v1002_v58, 5  ;;  %v1979_v37 = vld [vmem:[%s2352_s26 + $0xe8] sm:$0xf] }
  0x29   : > { %v618_v3 = vrot.slane %v616_v55, 5  ;;  %v1000_v7 = vrot.slane %v999_v60, 4  ;;  %v1014_v8 = vrot.slane %v1013_v61, 4  ;;  %v1018_v9 = vrot.slane %v1016_v62, 5  ;;  %v556_v40 = vld [vmem:[%s2352_s26 + $0x2c] sm:$0x1] }
  0x2a   : > { %v605_v14 = vsel %vm2411_vm3, %v600_v0, %v604_v1  ;;  %v621_v18 = vshrl.u32 %v553_v5, 16  ;;  %v624_v19 = vshll.u32 %v553_v5, 16  ;;  %v635_v20 = vshrl.u32 %v555_v6, 16  ;;  %v2182_v41 = vld [vmem:[%s2352_s26 + $0xec] sm:$0xf0] }
  0x2b   : > { %v619_v15 = vsel %vm2411_vm3, %v614_v2, %v618_v3  ;;  %v638_v21 = vshll.u32 %v555_v6, 16  ;;  %v1005_v22 = vsel %vm2411_vm3, %v1000_v7, %v1004_v4  ;;  %v1019_v23 = vsel %vm2411_vm3, %v1014_v8, %v1018_v9  ;;  %v2010_v47 = vld [vmem:[%s2352_s26 + $0xb4] sm:$0x1]  ;;  %v2012_v48 = vld [vmem:[%s2352_s26 + $0xbc] sm:$0x1] }
  0x2c   : > { %v1021_v24 = vshrl.u32 %v2009_v16, 16  ;;  %v1024_v25 = vshll.u32 %v2009_v16, 16  ;;  %v1035_v26 = vshrl.u32 %v2011_v17, 16  ;;  %v1038_v27 = vshll.u32 %v2011_v17, 16  ;;  %v557_v0 = vld [vmem:[%s2352_s26 + $0x30] sm:$0xf] }
  0x2d   : > { %v683_v28 = vunpack.c.l.b16 %v605_v14  ;;  %v684_v29 = vunpack.c.l.b16 %v619_v15  ;;  %v623_v32 = vrot.slane %v621_v18, 4  ;;  %v626_v33 = vrot.slane %v624_v19, 5  ;;  %v559_v5 = vld [vmem:[%s2352_s26 + $0x38] sm:$0xf]  ;;  %v2013_v8 = vld [vmem:[%s2352_s26 + $0xc0] sm:$0xf] }
  0x2e   : > { %v637_v34 = vrot.slane %v635_v20, 4  ;;  %v640_v35 = vrot.slane %v638_v21, 5  ;;  %v1083_v38 = vunpack.c.l.b16 %v1005_v22  ;;  %v1084_v39 = vunpack.c.l.b16 %v1019_v23  ;;  %v2015_v9 = vld [vmem:[%s2352_s26 + $0xc8] sm:$0xf]  ;;  %v1943_v23 = vld [vmem:[%s2352_s26 + $0xb0] sm:$0xf] }
  0x2f   : > { %v1023_v42 = vrot.slane %v1021_v24, 4  ;;  %v1026_v43 = vrot.slane %v1024_v25, 5  ;;  %v1037_v44 = vrot.slane %v1035_v26, 4  ;;  %v1040_v45 = vrot.slane %v1038_v27, 5  ;;  %v2177_v24 = vld [vmem:[%s2352_s26 + $0xb4] sm:$0xf0] }
  0x30   : > { %v630_v46 = vshll.u32 %v554_v31, 16  ;;  %v690_v49 = vpack.c.b16 %v684_v29, %v683_v28  ;;  %v627_v50 = vor.u32 %v626_v33, %v623_v32  ;;  %v641_v51 = vor.u32 %v640_v35, %v637_v34  ;;  %v1983_v25 = vld [vmem:[%s2352_s26 + $0xf8] sm:$0xf]  ;;  %v2183_v26 = vld [vmem:[%s2352_s26 + $0xfc] sm:$0xf0] }
  0x31   : > { %v644_v52 = vshll.u32 %v556_v40, 16  ;;  %v1940_v53 = vor.u32 %v2176_v36, %v1939_v30  ;;  %v1980_v54 = vor.u32 %v2182_v41, %v1979_v37  ;;  %v1090_v55 = vpack.c.b16 %v1084_v39, %v1083_v38  ;;  %v558_v33 = vld [vmem:[%s2352_s26 + $0x34] sm:$0x1]  ;;  %v560_v34 = vld [vmem:[%s2352_s26 + $0x3c] sm:$0x1] }
  0x32   : > { %v1041_v58 = vor.u32 %v1040_v45, %v1037_v44  ;;  %v628_v60 = vrot.slane %v627_v50, 4  ;;  %v632_v61 = vrot.slane %v630_v46, 5  ;;  %v642_v62 = vrot.slane %v641_v51, 4 }
  0x33   : > { %v649_v10 = vshrl.u32 %v557_v0, 16  ;;  %v652_v11 = vshll.u32 %v557_v0, 16  ;;  %v663_v12 = vshrl.u32 %v559_v5, 16  ;;  %v666_v14 = vshll.u32 %v559_v5, 16 }
  0x34   : > { %1917 = vmatmul.msk.bf16.vlgmr.msrb.gmra.mxu2 %vm430_vm0, %v689_v56  ;;  %1957 = vmatmul.msk.bf16.vlgmr.msrb.gmra.mxu3 %vm430_vm0, %v1936_v57  ;;  %v1027_v56 = vor.u32 %v1026_v43, %v1023_v42  ;;  %v1030_v57 = vshll.u32 %v2010_v47, 16  ;;  %v1042_v3 = vrot.slane %v1041_v58, 4  ;;  %v633_v6 = vsel %vm2411_vm3, %v628_v60, %v632_v61  ;;  %v2014_v42 = vld [vmem:[%s2352_s26 + $0xc4] sm:$0x1]  ;;  %v2016_v43 = vld [vmem:[%s2352_s26 + $0xcc] sm:$0x1] }
  0x35   : > { %v1049_v17 = vshrl.u32 %v2013_v8, 16  ;;  %v1052_v18 = vshll.u32 %v2013_v8, 16  ;;  %v1063_v19 = vshrl.u32 %v2015_v9, 16  ;;  %v1066_v20 = vshll.u32 %v2015_v9, 16  ;;  %v1947_v9 = vld [vmem:[%s2352_s26 + $0xc0] sm:$0xf] }
  0x36   : > { %2029 = vmatmul.msk.bf16.vlgmr.msrb.gmra.mxu1 %vm430_vm0, %v1089_v63  ;;  %v646_v63 = vrot.slane %v644_v52, 5  ;;  %v1028_v1 = vrot.slane %v1027_v56, 4  ;;  %v1032_v2 = vrot.slane %v1030_v57, 5  ;;  %v685_v21 = vunpack.c.l.b16 %v633_v6  ;;  %v2113_v57 = vld [vmem:[%s2352_s26 + $0x8] sm:$0xf] }
  0x37   : > { %1997 = vmatmul.msk.bf16.vlgmr.msrb.gmra.mxu0 %vm430_vm0, %v1976_v59  ;;  %v1044_v59 = vshll.u32 %v2012_v48, 16  ;;  %v651_v27 = vrot.slane %v649_v10, 4  ;;  %v654_v28 = vrot.slane %v652_v11, 5  ;;  %v665_v29 = vrot.slane %v663_v12, 4  ;;  %v2178_v10 = vld [vmem:[%s2352_s26 + $0xc4] sm:$0xf0] }
  0x38   : > { %v647_v7 = vsel %vm2411_vm3, %v642_v62, %v646_v63  ;;  %v1033_v15 = vsel %vm2411_vm3, %v1028_v1, %v1032_v2  ;;  %v668_v30 = vrot.slane %v666_v14, 5  ;;  %v1051_v35 = vrot.slane %v1049_v17, 4  ;;  %v2115_v62 = vld [vmem:[%s2352_s26 + $0x10] sm:$0xf]  ;;  %v1987_v14 = vld [vmem:[%s2352_s26 + $0x108] sm:$0xf] }
  0x39   : > { %v1046_v4 = vrot.slane %v1044_v59, 5  ;;  %v686_v22 = vunpack.c.l.b16 %v647_v7  ;;  %v1085_v31 = vunpack.c.l.b16 %v1033_v15  ;;  %v1054_v36 = vrot.slane %v1052_v18, 5  ;;  %v2184_v15 = vld [vmem:[%s2352_s26 + $0x10c] sm:$0xf0] }
  0x3a   : > { %v1065_v37 = vrot.slane %v1063_v19, 4  ;;  %v1068_v38 = vrot.slane %v1066_v20, 5  ;;  %v1944_v40 = vor.u32 %v2177_v24, %v1943_v23  ;;  %v1984_v41 = vor.u32 %v2183_v26, %v1983_v25  ;;  %v2114_v20 = vld [vmem:[%s2352_s26 + $0xc] sm:$0x1] }
  0x3b   : > { %v1047_v16 = vsel %vm2411_vm3, %v1042_v3, %v1046_v4  ;;  %v691_v39 = vpack.c.b16 %v686_v22, %v685_v21  ;;  %v655_v44 = vor.u32 %v654_v28, %v651_v27  ;;  %v658_v45 = vshll.u32 %v558_v33, 16  ;;  %v2116_v21 = vld [vmem:[%s2352_s26 + $0x14] sm:$0x1] }
  0x3c   : > { %v1086_v32 = vunpack.c.l.b16 %v1047_v16  ;;  %v669_v46 = vor.u32 %v668_v30, %v665_v29  ;;  %v672_v47 = vshll.u32 %v560_v34, 16  ;;  %v1058_v50 = vshll.u32 %v2014_v42, 16  ;;  %v2117_v30 = vld [vmem:[%s2352_s26 + $0x18] sm:$0xf]  ;;  %v2047_v42 = vld [vmem:[%s2352_s26 + $0x8] sm:$0xf] }
  0x3d   : > { %v1069_v51 = vor.u32 %v1068_v38, %v1065_v37  ;;  %v1072_v52 = vshll.u32 %v2016_v43, 16  ;;  %v1366_v1 = vshrl.u32 %v2113_v57, 16  ;;  %v1369_v2 = vshll.u32 %v2113_v57, 16  ;;  %v2189_v43 = vld [vmem:[%s2352_s26 + $0xc] sm:$0xf0] }
  0x3e   : > { %v1091_v48 = vpack.c.b16 %v1086_v32, %v1085_v31  ;;  %v674_v56 = vrot.slane %v672_v47, 5  ;;  %v1060_v59 = vrot.slane %v1058_v50, 5  ;;  %v1380_v3 = vshrl.u32 %v2115_v62, 16  ;;  %v2119_v31 = vld [vmem:[%s2352_s26 + $0x20] sm:$0xf] }
  0x3f   : > { %v1070_v60 = vrot.slane %v1069_v51, 4  ;;  %v1074_v61 = vrot.slane %v1072_v52, 5  ;;  %v1383_v4 = vshll.u32 %v2115_v62, 16  ;;  %v1368_v11 = vrot.slane %v1366_v1, 4  ;;  %v2118_v50 = vld [vmem:[%s2352_s26 + $0x1c] sm:$0x1] }
  0x40   : > { %v1371_v12 = vrot.slane %v1369_v2, 5  ;;  %v1382_v18 = vrot.slane %v1380_v3, 4  ;;  %v1948_v23 = vor.u32 %v2178_v10, %v1947_v9  ;;  %v1988_v24 = vor.u32 %v2184_v15, %v1987_v14  ;;  %v2120_v51 = vld [vmem:[%s2352_s26 + $0x24] sm:$0x1]  ;;  %v2087_v52 = vld [vmem:[%s2352_s26 + $0x50] sm:$0xf] }
  0x41   : > { %v1075_v6 = vsel %vm2411_vm3, %v1070_v60, %v1074_v61  ;;  %v1385_v19 = vrot.slane %v1383_v4, 5  ;;  %v1375_v27 = vshll.u32 %v2114_v20, 16  ;;  %v1389_v29 = vshll.u32 %v2116_v21, 16  ;;  %v2121_v1 = vld [vmem:[%s2352_s26 + $0x28] sm:$0xf] }
  0x42   : > { %v1088_v17 = vunpack.c.l.b16 %v1075_v6  ;;  %v1372_v25 = vor.u32 %v1371_v12, %v1368_v11  ;;  %v1397_v37 = vshll.u32 %v2117_v30, 16  ;;  %v1408_v38 = vshrl.u32 %v2119_v31, 16  ;;  %v2123_v2 = vld [vmem:[%s2352_s26 + $0x30] sm:$0xf]  ;;  %v2051_v9 = vld [vmem:[%s2352_s26 + $0x18] sm:$0xf] }
  0x43   : > { %v1386_v28 = vor.u32 %v1385_v19, %v1382_v18  ;;  %v1377_v33 = vrot.slane %v1375_v27, 5  ;;  %v1425_v6 = vshll.u32 %v2121_v1, 16  ;;  %v2190_v10 = vld [vmem:[%s2352_s26 + $0x1c] sm:$0xf0]  ;;  %v2196_v15 = vld [vmem:[%s2352_s26 + $0x64] sm:$0xf0] }
  0x44   : > { %1918 = vmatmul.msk.bf16.gmra.mxu2 %vm430_vm0, %v690_v49  ;;  %1958 = vmatmul.msk.bf16.gmra.mxu3 %vm430_vm0, %v1940_v53  ;;  %v1055_v49 = vor.u32 %v1054_v36, %v1051_v35  ;;  %v656_v53 = vrot.slane %v655_v44, 4  ;;  %v1373_v32 = vrot.slane %v1372_v25, 4  ;;  %v1391_v35 = vrot.slane %v1389_v29, 5  ;;  %v2091_v11 = vld [vmem:[%s2352_s26 + $0x60] sm:$0xf] }
  0x45   : > { %v1387_v34 = vrot.slane %v1386_v28, 4  ;;  %v1394_v36 = vshrl.u32 %v2117_v30, 16  ;;  %v2122_v20 = vld [vmem:[%s2352_s26 + $0x2c] sm:$0x1]  ;;  %v2124_v21 = vld [vmem:[%s2352_s26 + $0x34] sm:$0x1] }
  0x46   : > { %2030 = vmatmul.msk.bf16.gmra.mxu1 %vm430_vm0, %v1090_v55  ;;  %v670_v55 = vrot.slane %v669_v46, 4  ;;  %v1056_v58 = vrot.slane %v1055_v49, 4  ;;  %v1410_v46 = vrot.slane %v1408_v38, 4  ;;  %v1445_v28 = vshll.u32 %v2124_v21, 16 }
  0x47   : > { %1998 = vmatmul.msk.bf16.gmra.mxu0 %vm430_vm0, %v1980_v54  ;;  %v660_v54 = vrot.slane %v658_v45, 5  ;;  %v1396_v44 = vrot.slane %v1394_v36, 4  ;;  %v1399_v45 = vrot.slane %v1397_v37, 5 }
  0x48   : > { %v675_v0 = vsel %vm2411_vm3, %v670_v55, %v674_v56  ;;  %v1061_v5 = vsel %vm2411_vm3, %v1056_v58, %v1060_v59  ;;  %v1403_v56 = vshll.u32 %v2118_v50, 16  ;;  %v1417_v58 = vshll.u32 %v2120_v51, 16  ;;  %v2126_v51 = vld [vmem:[%s2352_s26 + $0x3c] sm:$0x1] }
  0x49   : > { %v661_v63 = vsel %vm2411_vm3, %v656_v53, %v660_v54  ;;  %v688_v8 = vunpack.c.l.b16 %v675_v0  ;;  %v1087_v16 = vunpack.c.l.b16 %v1061_v5  ;;  %v2195_v53 = vld [vmem:[%s2352_s26 + $0x54] sm:$0xf0]  ;;  %v2048_v54 = vor.u32 %v2189_v43, %v2047_v42  ;;  %v2191_v42 = vld [vmem:[%s2352_s26 + $0x2c] sm:$0xf0] }
  0x4a   : > { %v687_v7 = vunpack.c.l.b16 %v661_v63  ;;  %v1400_v55 = vor.u32 %v1399_v45, %v1396_v44  ;;  %v2088_v59 = vor.u32 %v2195_v53, %v2087_v52  ;;  %v1405_v62 = vrot.slane %v1403_v56, 5  ;;  %v2095_v43 = vld [vmem:[%s2352_s26 + $0x70] sm:$0xf]  ;;  %v2128_v52 = vld [vmem:[%s2352_s26 + $0x44] sm:$0x1] }
  0x4b   : > { %v1092_v26 = vpack.c.b16 %v1088_v17, %v1087_v16  ;;  %v1419_v0 = vrot.slane %v1417_v58, 5  ;;  %v1422_v5 = vshrl.u32 %v2121_v1, 16  ;;  %v1427_v17 = vrot.slane %v1425_v6, 5 }
  0x4c   : > { %v692_v22 = vpack.c.b16 %v688_v8, %v687_v7  ;;  %v1401_v61 = vrot.slane %v1400_v55, 4  ;;  %v1436_v7 = vshrl.u32 %v2123_v2, 16  ;;  %v1439_v8 = vshll.u32 %v2123_v2, 16 }
  0x4d   : > { %v1424_v16 = vrot.slane %v1422_v5, 4  ;;  %v1459_v58 = vshll.u32 %v2126_v51, 16 }
  0x4e   : > { %v1406_v3 = vsel %vm2411_vm3, %v1401_v61, %v1405_v62  ;;  %v1438_v18 = vrot.slane %v1436_v7, 4  ;;  %v1441_v19 = vrot.slane %v1439_v8, 5  ;;  %v2059_v7 = vld [vmem:[%s2352_s26 + $0x38] sm:$0xf]  ;;  %v2192_v8 = vld [vmem:[%s2352_s26 + $0x3c] sm:$0xf0] }
  0x4f   : > { %v1484_v12 = vunpack.c.l.b16 %v1406_v3  ;;  %v1428_v25 = vor.u32 %v1427_v17, %v1424_v16  ;;  %v1461_v62 = vrot.slane %v1459_v58, 5  ;;  %v2060_v16 = vor.u32 %v2192_v8, %v2059_v7 }
  0x50   : > { %v1442_v27 = vor.u32 %v1441_v19, %v1438_v18 }
  0x51   : > { %v1429_v29 = vrot.slane %v1428_v25, 4 }
  0x54   : > { %1919 = vmatmul.msk.bf16.gmra.mxu2 %vm430_vm0, %v691_v39  ;;  %1959 = vmatmul.msk.bf16.gmra.mxu3 %vm430_vm0, %v1944_v40  ;;  %v1411_v39 = vshll.u32 %v2119_v31, 16  ;;  %v1378_v40 = vsel %vm2411_vm3, %v1373_v32, %v1377_v33  ;;  %v1443_v31 = vrot.slane %v1442_v27, 4  ;;  %v1447_v32 = vrot.slane %v1445_v28, 5  ;;  %v2125_v33 = vld [vmem:[%s2352_s26 + $0x38] sm:$0xf] }
  0x55   : > { %v1450_v37 = vshrl.u32 %v2125_v33, 16  ;;  %v1453_v38 = vshll.u32 %v2125_v33, 16 }
  0x56   : > { %2031 = vmatmul.msk.bf16.gmra.mxu1 %vm430_vm0, %v1091_v48  ;;  %v1413_v47 = vrot.slane %v1411_v39, 5  ;;  %v1482_v48 = vunpack.c.l.b16 %v1378_v40  ;;  %v1448_v36 = vsel %vm2411_vm3, %v1443_v31, %v1447_v32 }
  0x57   : > { %1999 = vmatmul.msk.bf16.gmra.mxu0 %vm430_vm0, %v1984_v41  ;;  %v1392_v41 = vsel %vm2411_vm3, %v1387_v34, %v1391_v35  ;;  %v2127_v34 = vld [vmem:[%s2352_s26 + $0x40] sm:$0xf]  ;;  %v1487_v45 = vunpack.c.l.b16 %v1448_v36 }
  0x58   : > { %v1483_v49 = vunpack.c.l.b16 %v1392_v41  ;;  %v1414_v57 = vor.u32 %v1413_v47, %v1410_v46  ;;  %v1464_v39 = vshrl.u32 %v2127_v34, 16  ;;  %v1467_v40 = vshll.u32 %v2127_v34, 16  ;;  %v2055_v41 = vld [vmem:[%s2352_s26 + $0x28] sm:$0xf]  ;;  %v2197_v46 = vld [vmem:[%s2352_s26 + $0x74] sm:$0xf0] }
  0x59   : > { %v1452_v47 = vrot.slane %v1450_v37, 4  ;;  %v2056_v53 = vor.u32 %v2191_v42, %v2055_v41 }
  0x5a   : > { %v1490_v60 = vpack.c.b16 %v1483_v49, %v1482_v48  ;;  %v1415_v63 = vrot.slane %v1414_v57, 4  ;;  %v1455_v48 = vrot.slane %v1453_v38, 5  ;;  %v1466_v49 = vrot.slane %v1464_v39, 4 }
  0x5b   : > { %v1469_v50 = vrot.slane %v1467_v40, 5 }
  0x5c   : > { %v1420_v4 = vsel %vm2411_vm3, %v1415_v63, %v1419_v0  ;;  %v1456_v57 = vor.u32 %v1455_v48, %v1452_v47 }
  0x5d   : > { %v1485_v14 = vunpack.c.l.b16 %v1420_v4 }
  0x5e   : > { %v1457_v61 = vrot.slane %v1456_v57, 4 }
  0x60   : > { %v1462_v5 = vsel %vm2411_vm3, %v1457_v61, %v1461_v62 }
  0x64   : > { %1920 = vmatmul.msk.bf16.gmra.mxu2 %vm430_vm0, %v692_v22  ;;  %1960 = vmatmul.msk.bf16.gmra.mxu3 %vm430_vm0, %v1948_v23  ;;  %v2052_v22 = vor.u32 %v2190_v10, %v2051_v9  ;;  %v2092_v23 = vor.u32 %v2196_v15, %v2091_v11  ;;  %v1488_v9 = vunpack.c.l.b16 %v1462_v5  ;;  %v2099_v11 = vld [vmem:[%s2352_s26 + $0x80] sm:$0xf] }
  0x66   : > { %2032 = vmatmul.msk.bf16.gmra.mxu1 %vm430_vm0, %v1092_v26  ;;  %v1431_v26 = vshll.u32 %v2122_v20, 16 }
  0x67   : > { %2000 = vmatmul.msk.bf16.gmra.mxu0 %vm430_vm0, %v1988_v24  ;;  %v1491_v24 = vpack.c.b16 %v1485_v14, %v1484_v12  ;;  %v2198_v12 = vld [vmem:[%s2352_s26 + $0x84] sm:$0xf0] }
  0x68   : > { %v1433_v30 = vrot.slane %v1431_v26, 5  ;;  %v2100_v18 = vor.u32 %v2198_v12, %v2099_v11 }
  0x6a   : > { %v1434_v35 = vsel %vm2411_vm3, %v1429_v29, %v1433_v30 }
  0x6b   : > { %v1486_v44 = vunpack.c.l.b16 %v1434_v35 }
  0x6d   : > { %v1492_v55 = vpack.c.b16 %v1487_v45, %v1486_v44 }
  0x74   : > { %2069 = vmatmul.msk.bf16.vlgmr.msra.gmra.mxu2 %vm430_vm0, %v2048_v54  ;;  %2109 = vmatmul.msk.bf16.vlgmr.msra.gmra.mxu3 %vm430_vm0, %v2088_v59  ;;  %v2096_v54 = vor.u32 %v2197_v46, %v2095_v43  ;;  %v1470_v59 = vor.u32 %v1469_v50, %v1466_v49  ;;  %v2203_v49 = vld [vmem:[%s2694_s4] sm:$0xff] }
  0x76   : > { %v1471_v63 = vrot.slane %v1470_v59, 4 }
  0x77   : > { %2141 = vmatmul.msk.bf16.vlgmr.msra.gmra.mxu0 %vm430_vm0, %v1490_v60  ;;  %v1473_v60 = vshll.u32 %v2128_v52, 16 }
  0x79   : > { %v1475_v0 = vrot.slane %v1473_v60, 5 }
  0x7b   : > { %v1476_v6 = vsel %vm2411_vm3, %v1471_v63, %v1475_v0 }
  0x7c   : > { %v1489_v10 = vunpack.c.l.b16 %v1476_v6 }
  0x7e   : > { %v1493_v19 = vpack.c.b16 %v1489_v10, %v1488_v9 }
  0x84   : > { %2070 = vmatmul.msk.bf16.gmra.mxu2 %vm430_vm0, %v2052_v22  ;;  %2110 = vmatmul.msk.bf16.gmra.mxu3 %vm430_vm0, %v2092_v23 }
  0x87   : > { %2142 = vmatmul.msk.bf16.gmra.mxu0 %vm430_vm0, %v1491_v24  ;;  %v2204_v24 = vld [vmem:[%s2694_s4 + $0x8] sm:$0xff] }
  0x88   : > { %1625 = vmatpush.bf16.msra.mxu1 %v2204_v24 }
  0x8c   : > { %1626 = vmatpush.bf16.msra.mxu1 %v2203_v49 }
  0x93   : > { %v525_v27 = vpop.f32.mrf.mxu1 }
  0x94   : > { %v452_v56 = vpop.f32.mrf.mxu0  ;;  %2071 = vmatmul.msk.bf16.gmra.mxu2 %vm430_vm0, %v2056_v53  ;;  %2111 = vmatmul.msk.bf16.gmra.mxu3 %vm430_vm0, %v2096_v54 }
  0x95   : > { %v526_v30 = vadd.f32 %v525_v27, %v452_v56 }
  0x97   : > { %2143 = vmatmul.msk.bf16.gmra.mxu0 %vm430_vm0, %v1492_v55  ;;  %v462_v1 = vpop.f32.mrf.mxu2  ;;  %v535_v2 = vpop.f32.mrf.mxu3 }
  0x98   : > { %v536_v3 = vadd.f32 %v535_v2, %v462_v1 }
  0x9b   : > { %v527_v36 = vpop.f32.mrf.mxu1 }
  0x9c   : > { %v2560_v4 = vpop.f32.mrf.mxu0 }
  0x9d   : > { %v528_v9 = vadd.f32 %v527_v36, %v2560_v4 }
  0x9f   : > { %v464_v14 = vpop.f32.mrf.mxu2  ;;  %v537_v15 = vpop.f32.mrf.mxu3 }
  0xa0   : > { %v2570_v17 = vadd.f32 %v537_v15, %v464_v14 }
  0xa3   : > { %v530_v41 = vpop.f32.mrf.mxu1 }
  0xa4   : > { %v457_v20 = vpop.f32.mrf.mxu0  ;;  %2072 = vmatmul.msk.bf16.gmra.mxu2 %vm430_vm0, %v2060_v16  ;;  %2112 = vmatmul.msk.bf16.gmra.mxu3 %vm430_vm0, %v2100_v18 }
  0xa5   : > { %v531_v42 = vadd.f32 %v530_v41, %v457_v20 }
  0xa7   : > { %2144 = vmatmul.msk.bf16.gmra.mxu0 %vm430_vm0, %v1493_v19  ;;  %v467_v13 = vpop.f32.mrf.mxu2  ;;  %v540_v21 = vpop.f32.mrf.mxu3 }
  0xa8   : > { %v541_v22 = vadd.f32 %v540_v21, %v467_v13 }
  0xab   : > { %v532_v59 = vpop.f32.mrf.mxu1 }
  0xac   : > { %v2575_v23 = vpop.f32.mrf.mxu0 }
  0xad   : > { %v533_v27 = vadd.f32 %v532_v59, %v2575_v23 }
  0xaf   : > { %v469_v25 = vpop.f32.mrf.mxu2  ;;  %v542_v26 = vpop.f32.mrf.mxu3 }
  0xb0   : > { %v2580_v28 = vadd.f32 %v542_v26, %v469_v25  ;;  %v2603_v26 = vld [vmem:[%s2692_s2] ss:$0 sm:$0xff] }
  0xb3   : > { %v1126_v63 = vpop.f32.mrf.mxu1 }
  0xb4   : > { %v920_v29 = vpop.f32.mrf.mxu0 }
  0xb7   : > { %v726_v31 = vpop.f32.mrf.mxu2  ;;  %v823_v33 = vpop.f32.mrf.mxu3 }
  0xb8   : > { %v746_v32 = vadd.f32 %v726_v31, %v526_v30 }
  0xba   : > { %v843_v34 = vadd.f32 %v823_v33, %v746_v32  ;;  %v2610_v33 = vld [vmem:[%s2693_s3] ss:$0 sm:$0xff] }
  0xbc   : > { %v922_v35 = vpop.f32.mrf.mxu0  ;;  %v940_v37 = vadd.f32 %v920_v29, %v843_v34 }
  0xbe   : > { %v1146_v14 = vadd.f32 %v1126_v63, %v940_v37 }
  0xbf   : > { %v728_v38 = vpop.f32.mrf.mxu2  ;;  %v825_v39 = vpop.f32.mrf.mxu3 }
  0xc0   : > { %v747_v11 = vadd.f32 %v728_v38, %v528_v9 }
  0xc2   : > { %v844_v15 = vadd.f32 %v825_v39, %v747_v11 }
  0xc4   : > { %v925_v40 = vpop.f32.mrf.mxu0  ;;  %v941_v13 = vadd.f32 %v922_v35, %v844_v15 }
  0xc7   : > { %v731_v43 = vpop.f32.mrf.mxu2  ;;  %v828_v45 = vpop.f32.mrf.mxu3 }
  0xc8   : > { %v748_v44 = vadd.f32 %v731_v43, %v531_v42 }
  0xca   : > { %v845_v46 = vadd.f32 %v828_v45, %v748_v44 }
  0xcc   : > { %v927_v47 = vpop.f32.mrf.mxu0  ;;  %v942_v48 = vadd.f32 %v925_v40, %v845_v46 }
  0xcf   : > { %v733_v50 = vpop.f32.mrf.mxu2  ;;  %v830_v51 = vpop.f32.mrf.mxu3 }
  0xd0   : > { %v749_v31 = vadd.f32 %v733_v50, %v533_v27 }
  0xd2   : > { %v846_v39 = vadd.f32 %v830_v51, %v749_v31 }
  0xd4   : > { %v930_v52 = vpop.f32.mrf.mxu0  ;;  %v943_v45 = vadd.f32 %v927_v47, %v846_v39 }
  0xd7   : > { %v736_v53 = vpop.f32.mrf.mxu2  ;;  %v833_v55 = vpop.f32.mrf.mxu3 }
  0xd8   : > { %v750_v54 = vadd.f32 %v736_v53, %v536_v3  ;;  %v1128_v3 = vpop.f32.mrf.mxu1 }
  0xd9   : > { %v1147_v24 = vadd.f32 %v1128_v3, %v941_v13 }
  0xda   : > { %v847_v56 = vadd.f32 %v833_v55, %v750_v54 }
  0xdc   : > { %v2585_v57 = vpop.f32.mrf.mxu0  ;;  %v2587_v58 = vadd.f32 %v930_v52, %v847_v56 }
  0xdf   : > { %v738_v60 = vpop.f32.mrf.mxu2  ;;  %v2589_v61 = vpop.f32.mrf.mxu3 }
  0xe0   : > { %v1131_v20 = vpop.f32.mrf.mxu1 }
  0xe1   : > { %v1148_v38 = vadd.f32 %v1131_v20, %v942_v48 }
  0xe4   : > { %v935_v62 = vpop.f32.mrf.mxu0 }
  0xe7   : > { %v741_v0 = vpop.f32.mrf.mxu2  ;;  %v838_v2 = vpop.f32.mrf.mxu3 }
  0xe8   : > { %v752_v1 = vadd.f32 %v741_v0, %v541_v22  ;;  %v1133_v36 = vpop.f32.mrf.mxu1 }
  0xe9   : > { %v1149_v55 = vadd.f32 %v1133_v36, %v943_v45 }
  0xea   : > { %v849_v5 = vadd.f32 %v838_v2, %v752_v1 }
  0xec   : > { %v2591_v6 = vpop.f32.mrf.mxu0  ;;  %v2593_v7 = vadd.f32 %v935_v62, %v849_v5  ;;  %v751_v62 = vadd.f32 %v738_v60, %v2570_v17 }
  0xee   : > { %v848_v5 = vadd.f32 %v2589_v61, %v751_v62  ;;  %v1672_v62 = vld [vmem:[%s2647_s9] sm:$0xff] }
  0xef   : > { %v2595_v8 = vpop.f32.mrf.mxu2  ;;  %v2598_v10 = vpop.f32.mrf.mxu3 }
  0xf0   : > { %v1136_v54 = vpop.f32.mrf.mxu1  ;;  %v945_v17 = vadd.f32 %v2585_v57, %v848_v5  ;;  %v1673_v5 = vld [vmem:[%s2647_s9 + $0x8] sm:$0xff] }
  0xf1   : > { %v1150_v2 = vadd.f32 %v1136_v54, %v2587_v58 }
  0xf4   : > { %v1527_v12 = vpop.f32.mrf.mxu0 }
  0xf7   : > { %v1224_v16 = vpop.f32.mrf.mxu2  ;;  %v1321_v19 = vpop.f32.mrf.mxu3 }
  0xf8   : > { %v1244_v18 = vadd.f32 %v1224_v16, %v1146_v14  ;;  %v1138_v11 = vpop.f32.mrf.mxu1 }
  0xf9   : > { %v1151_v13 = vadd.f32 %v1138_v11, %v945_v17 }
  0xfa   : > { %v1341_v21 = vadd.f32 %v1321_v19, %v1244_v18 }
  0xfc   : > { %v1529_v22 = vpop.f32.mrf.mxu0  ;;  %v1547_v25 = vadd.f32 %v1527_v12, %v1341_v21 }
  0xfe   : > { %v1559_v32 = vmul.f32 %v2603_v26, %v1547_v25 }
  0xff   : > { %v1226_v4 = vpop.f32.mrf.mxu2  ;;  %v1323_v30 = vpop.f32.mrf.mxu3 }
 0x100   : > { %v1245_v29 = vadd.f32 %v1226_v4, %v1147_v24  ;;  %v1571_v40 = vadd.f32 %v2610_v33, %v1559_v32  ;;  %v1141_v25 = vpop.f32.mrf.mxu1  ;;  %v753_v4 = vadd.f32 %v2595_v8, %v2580_v28 }
 0x102   : > { %v1342_v34 = vadd.f32 %v1323_v30, %v1245_v29  ;;  %v1579_v46 = vmax.f32 %v1571_v40, 0.0  ;;  %v1152_v30 = vadd.f32 %v1141_v25, %v2593_v7  ;;  %v850_v31 = vadd.f32 %v2598_v10, %v753_v4 }
 0x104   : > { %v1532_v35 = vpop.f32.mrf.mxu0  ;;  %v1548_v37 = vadd.f32 %v1529_v22, %v1342_v34  ;;  %v947_v28 = vadd.f32 %v2591_v6, %v850_v31 }
 0x106   : > { %v1560_v23 = vmul.f32 %v2603_v26, %v1548_v37 }
 0x107   : > { %v1229_v41 = vpop.f32.mrf.mxu2  ;;  %v1326_v44 = vpop.f32.mrf.mxu3 }
 0x108   : > { %v1572_v42 = vadd.f32 %v2610_v33, %v1560_v23  ;;  %v1246_v43 = vadd.f32 %v1229_v41, %v1148_v38  ;;  %v1143_v41 = vpop.f32.mrf.mxu1 }
 0x109   : > { %v1153_v7 = vadd.f32 %v1143_v41, %v947_v28 }
 0x10a   : > { %v1580_v49 = vmax.f32 %v1572_v42, 0.0  ;;  %v1343_v50 = vadd.f32 %v1326_v44, %v1246_v43 }
 0x10c   : > { %v1534_v52 = vpop.f32.mrf.mxu0  ;;  %v1587_v53 = vpack.c.bf16 %v1580_v49, %v1579_v46  ;;  %v1549_v56 = vadd.f32 %v1532_v35, %v1343_v50 }
 0x10e   : > { %2153 = vmatmul.msk.bf16.vlgmr.msra.gmra.mxu1 %vm430_vm0, %v1587_v53  ;;  %v1561_v63 = vmul.f32 %v2603_v26, %v1549_v56 }
 0x10f   : > { %v1231_v48 = vpop.f32.mrf.mxu2  ;;  %v1328_v59 = vpop.f32.mrf.mxu3 }
 0x110   : > { %v1247_v51 = vadd.f32 %v1231_v48, %v1149_v55  ;;  %v1573_v9 = vadd.f32 %v2610_v33, %v1561_v63 }
 0x112   : > { %v1344_v0 = vadd.f32 %v1328_v59, %v1247_v51  ;;  %v1581_v18 = vmax.f32 %v1573_v9, 0.0  ;;  %v2236_v51 = vld [vmem:[%s2695_s5] ss:$0 sm:$0xff] }
 0x114   : > { %v1550_v1 = vadd.f32 %v1534_v52, %v1344_v0  ;;  %v1537_v47 = vpop.f32.mrf.mxu0 }
 0x116   : > { %v1562_v3 = vmul.f32 %v2603_v26, %v1550_v1 }
 0x117   : > { %v1234_v12 = vpop.f32.mrf.mxu2  ;;  %v1331_v15 = vpop.f32.mrf.mxu3 }
 0x118   : > { %v1248_v14 = vadd.f32 %v1234_v12, %v1150_v2  ;;  %v1574_v16 = vadd.f32 %v2610_v33, %v1562_v3 }
 0x11a   : > { %v1345_v60 = vadd.f32 %v1331_v15, %v1248_v14  ;;  %v1582_v19 = vmax.f32 %v1574_v16, 0.0  ;;  %v1674_v15 = vld [vmem:[%s2647_s9 + $0x10] sm:$0xff] }
 0x11c   : > { %v1588_v20 = vpack.c.bf16 %v1582_v19, %v1581_v18  ;;  %v1551_v58 = vadd.f32 %v1537_v47, %v1345_v60  ;;  %v1539_v61 = vpop.f32.mrf.mxu0 }
 0x11e   : > { %2154 = vmatmul.msk.bf16.gmra.mxu1 %vm430_vm0, %v1588_v20  ;;  %v1563_v27 = vmul.f32 %v2603_v26, %v1551_v58  ;;  %v1675_v20 = vld [vmem:[%s2647_s9 + $0x18] sm:$0xff] }
 0x11f   : > { %v1236_v21 = vpop.f32.mrf.mxu2  ;;  %v1333_v24 = vpop.f32.mrf.mxu3 }
 0x120   : > { %v1249_v22 = vadd.f32 %v1236_v21, %v1151_v13  ;;  %v1575_v34 = vadd.f32 %v2610_v33, %v1563_v27 }
 0x122   : > { %v1346_v29 = vadd.f32 %v1333_v24, %v1249_v22  ;;  %v1583_v40 = vmax.f32 %v1575_v34, 0.0  ;;  %v1676_v24 = vld [vmem:[%s2647_s9 + $0x20] sm:$0xff] }
 0x124   : > { %v1552_v57 = vadd.f32 %v1539_v61, %v1346_v29  ;;  %v1542_v39 = vpop.f32.mrf.mxu0 }
 0x126   : > { %v1564_v32 = vmul.f32 %v2603_v26, %v1552_v57 }
 0x127   : > { %v1239_v35 = vpop.f32.mrf.mxu2  ;;  %v1336_v37 = vpop.f32.mrf.mxu3 }
 0x128   : > { %v1250_v36 = vadd.f32 %v1239_v35, %v1152_v30  ;;  %v1576_v38 = vadd.f32 %v2610_v33, %v1564_v32  ;;  %v1677_v30 = vld [vmem:[%s2647_s9 + $0x28] sm:$0xff] }
 0x12a   : > { %v1347_v8 = vadd.f32 %v1336_v37, %v1250_v36  ;;  %v1584_v23 = vmax.f32 %v1576_v38, 0.0  ;;  %v1678_v37 = vld [vmem:[%s2647_s9 + $0x30] sm:$0xff] }
 0x12c   : > { %v1589_v42 = vpack.c.bf16 %v1584_v23, %v1583_v40  ;;  %v1553_v43 = vadd.f32 %v1542_v39, %v1347_v8  ;;  %v1544_v50 = vpop.f32.mrf.mxu0  ;;  %v1679_v23 = vld [vmem:[%s2647_s9 + $0x38] sm:$0xff] }
 0x12e   : > { %2155 = vmatmul.msk.bf16.gmra.mxu1 %vm430_vm0, %v1589_v42  ;;  %v1565_v46 = vmul.f32 %v2603_v26, %v1553_v43 }
 0x12f   : > { %v1241_v10 = vpop.f32.mrf.mxu2  ;;  %v1338_v45 = vpop.f32.mrf.mxu3 }
 0x130   : > { %v1251_v44 = vadd.f32 %v1241_v10, %v1153_v7  ;;  %v1577_v53 = vadd.f32 %v2610_v33, %v1565_v46 }
 0x132   : > { %v1348_v49 = vadd.f32 %v1338_v45, %v1251_v44  ;;  %v1585_v55 = vmax.f32 %v1577_v53, 0.0 }
 0x134   : > { %v1554_v52 = vadd.f32 %v1544_v50, %v1348_v49 }
 0x136   : > { %v1566_v6 = vmul.f32 %v2603_v26, %v1554_v52  ;;  %v2237_v26 = vld [vmem:[%s2696_s6] ss:$0 sm:$0xff] }
 0x138   : > { %v1578_v54 = vadd.f32 %v2610_v33, %v1566_v6 }
 0x13a   : > { %v1586_v56 = vmax.f32 %v1578_v54, 0.0 }
 0x13c   : > { %v1590_v48 = vpack.c.bf16 %v1586_v56, %v1585_v55 }
 0x13e   : > { %2156 = vmatmul.msk.bf16.gmra.mxu1 %vm430_vm0, %v1590_v48 }
 0x18b   : > { %v1628_v33 = vpop.f32.mrf.mxu1 }
 0x18c   : > { %v1652_v59 = vmul.f32 %v2236_v51, %v1628_v33 }
 0x18e   : > { %v1664_v63 = vadd.f32 %v2237_v26, %v1652_v59 }
 0x190   : > { %v1680_v0 = vadd.f32 %v1672_v62, %v1664_v63 }
 0x192   : > { %v1688_v1 = vmax.f32 %v1680_v0, 0.0 }
 0x193   : > { %v1630_v47 = vpop.f32.mrf.mxu1 }
 0x194   : > { %1697 = vst.msk [vmem:[%s2656_s13] sm:$0xff] %vm1696_vm4, %v1688_v1  ;;  %v1653_v2 = vmul.f32 %v2236_v51, %v1630_v47 }
 0x196   : > { %v1665_v3 = vadd.f32 %v2237_v26, %v1653_v2 }
 0x198   : > { %v1681_v9 = vadd.f32 %v1673_v5, %v1665_v3 }
 0x19a   : > { %v1689_v11 = vmax.f32 %v1681_v9, 0.0 }
 0x19b   : > { %v1633_v12 = vpop.f32.mrf.mxu1 }
 0x19c   : > { %1698 = vst.msk [vmem:[%s2656_s13 + $0x8] sm:$0xff] %vm1696_vm4, %v1689_v11  ;;  %v1654_v14 = vmul.f32 %v2236_v51, %v1633_v12 }
 0x19e   : > { %v1666_v16 = vadd.f32 %v2237_v26, %v1654_v14 }
 0x1a0   : > { %v1682_v17 = vadd.f32 %v1674_v15, %v1666_v16 }
 0x1a2   : > { %v1690_v60 = vmax.f32 %v1682_v17, 0.0 }
 0x1a3   : > { %v1635_v18 = vpop.f32.mrf.mxu1 }
 0x1a4   : > { %1699 = vst.msk [vmem:[%s2656_s13 + $0x10] sm:$0xff] %vm1696_vm4, %v1690_v60  ;;  %v1655_v19 = vmul.f32 %v2236_v51, %v1635_v18 }
 0x1a6   : > { %v1667_v13 = vadd.f32 %v2237_v26, %v1655_v19 }
 0x1a8   : > { %v1683_v58 = vadd.f32 %v1675_v20, %v1667_v13 }
 0x1aa   : > { %v1691_v61 = vmax.f32 %v1683_v58, 0.0 }
 0x1ab   : > { %v1638_v21 = vpop.f32.mrf.mxu1 }
 0x1ac   : > { %1700 = vst.msk [vmem:[%s2656_s13 + $0x18] sm:$0xff] %vm1696_vm4, %v1691_v61  ;;  %v1656_v22 = vmul.f32 %v2236_v51, %v1638_v21 }
 0x1ae   : > { %v1668_v25 = vadd.f32 %v2237_v26, %v1656_v22 }
 0x1b0   : > { %v1684_v4 = vadd.f32 %v1676_v24, %v1668_v25 }
 0x1b2   : > { %v1692_v27 = vmax.f32 %v1684_v4, 0.0 }
 0x1b3   : > { %v1640_v29 = vpop.f32.mrf.mxu1 }
 0x1b4   : > { %1701 = vst.msk [vmem:[%s2656_s13 + $0x20] sm:$0xff] %vm1696_vm4, %v1692_v27  ;;  %v1657_v57 = vmul.f32 %v2236_v51, %v1640_v29 }
 0x1b6   : > { %v1669_v31 = vadd.f32 %v2237_v26, %v1657_v57 }
 0x1b8   : > { %v1685_v32 = vadd.f32 %v1677_v30, %v1669_v31 }
 0x1ba   : > { %v1693_v34 = vmax.f32 %v1685_v32, 0.0 }
 0x1bb   : > { %v1643_v35 = vpop.f32.mrf.mxu1 }
 0x1bc   : > { %1702 = vst.msk [vmem:[%s2656_s13 + $0x28] sm:$0xff] %vm1696_vm4, %v1693_v34  ;;  %v1658_v36 = vmul.f32 %v2236_v51, %v1643_v35 }
 0x1be   : > { %v1670_v38 = vadd.f32 %v2237_v26, %v1658_v36 }
 0x1c0   : > { %v1686_v39 = vadd.f32 %v1678_v37, %v1670_v38 }
 0x1c2   : > { %v1694_v28 = vmax.f32 %v1686_v39, 0.0 }
 0x1c3   : > { %v1645_v8 = vpop.f32.mrf.mxu1 }
 0x1c4   : > { %1703 = vst.msk [vmem:[%s2656_s13 + $0x30] sm:$0xff] %vm1696_vm4, %v1694_v28  ;;  %v1659_v40 = vmul.f32 %v2236_v51, %v1645_v8 }
 0x1c6   : > { %v1671_v41 = vadd.f32 %v2237_v26, %v1659_v40 }
 0x1c8   : > { %v1687_v42 = vadd.f32 %v1679_v23, %v1671_v41 }
 0x1ca   : > { %v1695_v7 = vmax.f32 %v1687_v42, 0.0 }
 0x1cc   : > { %1704 = vst.msk [vmem:[%s2656_s13 + $0x38] sm:$0xff] %vm1696_vm4, %v1695_v7 }
 0x1cd PF: > { %s18_s29 = sadd.s32 1, %s2260_s29   ;;  %s2701_s27 = smov %s2256_s28 }
 0x1ce   : > { %p15_p5 = scmp.ge.s32.totalorder %s18_s29, 4   ;;  %s2702_s28 = smov %s2704_s30 }
 0x1d0   :  { %17 = sbr.rel (!%p15_p5) target bundleno = 2 (0x2), region = 99 }

// kernel: corblock_s_forward.11
= control target key start
LH: loop header
LB: loop body
LE: loop exit
PB: predicated region body
PF: predicated region fallthrough
CT: control target
= control target key end

     0   :  { %s2357_s27 = smov 0   ;;  %s2359_s28 = smov 0   ;;  %s2857_s0 = inlined_call_operand.vmem [shape: bf16[2,1,10,10,32], index: 0, kind: input, shape index: {}]   ;;  %s2858_s1 = inlined_call_operand.vmem [shape: bf16[3,3,32,32], index: 1, kind: input, shape index: {}]   ;;  %s2859_s2 = inlined_call_operand.vmem [shape: f32[1,32], index: 2, kind: input, shape index: {}]   ;;  %s2860_s3 = inlined_call_operand.vmem [shape: f32[1,32], index: 3, kind: input, shape index: {}]   ;;  %s2861_s4 = inlined_call_operand.vmem [shape: bf16[32,8], index: 4, kind: input, shape index: {}]   ;;  %s2862_s5 = inlined_call_operand.vmem [shape: f32[1,8], index: 5, kind: input, shape index: {}]   ;;  %s2863_s6 = inlined_call_operand.vmem [shape: f32[1,8], index: 6, kind: input, shape index: {}]   ;;  %s2864_s7 = inlined_call_operand.vmem [shape: f32[2,8,8,8], index: 7, kind: input, shape index: {}]   ;;  %s2865_s8 = inlined_call_operand.vmem [shape: f32[2,8,8,8], index: 8, kind: output, shape index: {}]  }
   0x1   :  { %s2361_s29 = smov 0  }
   0x2 LB: > { %s30_s30 = sadd.s32 1, %s2306_s28  ;;  %p1925_p0 = scmp.ge.s32.totalorder %s2310_s29, 1  ;;  %s2310_s29 = sphi %s2361_s29, %s18_s29   ;;  %s2306_s28 = sphi %s2359_s28, %s2871_s28   ;;  %s2302_s27 = sphi %s2357_s27, %s2870_s27  }
   0x3   : > { %p32_p1 = scmp.ge.s32.totalorder %s30_s30, 2  ;;  %p293_p2 = scmp.lt.s32.totalorder %s2310_s29, 3 }
   0x5   : > { %s2873_s30 = smov (%p32_p1, %s30_s30), 0  ;;  %p294_p3 = pnand %p1925_p0, %p293_p2 }
   0x6   : > { %p340_p4 = scmp.lt.s32.totalorder (!%p294_p3), %s2302_s27, 1 }
   0x7   : > { %297 = sbr.rel (%p294_p3) target bundleno = 473 (0x1d9), region = 52 }
   0xc   : > { %v2228_v0 = vld [vmem:[%s2858_s1 + $0x8] sm:$0xff]  ;;  %v2230_v1 = vld [vmem:[%s2858_s1 + $0x18] sm:$0xff]  ;;  %v2227_v2 = vld [vmem:[%s2858_s1] sm:$0xff]  ;;  %s2875_s27 = smov (!%p340_p4, %s2302_s27), 1  ;;  %vm534_vm0 = vcmask 261120   ;;  %vm673_vm4 = vcmask 1042432  }
   0xd   : > { %2257 = vmatpush.bf16.msra.mxu3 %v2228_v0  ;;  %2255 = vmatpush.bf16.msra.mxu2 %v2230_v1  ;;  %v2229_v3 = vld [vmem:[%s2858_s1 + $0x10] sm:$0xff]  ;;  %s2259_s17 = smul.u32 80, %s2875_s27  ;;  %v2232_v4 = vld [vmem:[%s2858_s1 + $0x28] sm:$0xff]  ;;  %v2238_v5 = vld [vmem:[%s2858_s1 + $0x38] sm:$0xff]  ;;  %vm390_vm1 = vsmask.f32 3328 }
   0xe   : > { %553 = vmatpush.bf16.msra.mxu0 %v2230_v1  ;;  %626 = vmatpush.bf16.msra.mxu1 %v2228_v0  ;;  %v2240_v6 = vld [vmem:[%s2858_s1 + $0x48] sm:$0xff]  ;;  %vm391_vm2 = vsmask.f32 7440  ;;  %v2231_v38 = vld [vmem:[%s2858_s1 + $0x20] sm:$0xff]  ;;  %v2237_v45 = vld [vmem:[%s2858_s1 + $0x30] sm:$0xff]  ;;  %vm674_vm5 = vcmask 1046532  }
   0xf   : > { %s2402_s26 = scalar_lea.vmem %s2857_s0, %s2259_s17  ;;  %vm2433_vm3 = vmor %vm390_vm1, %vm391_vm2  ;;  %v2239_v54 = vld [vmem:[%s2858_s1 + $0x40] sm:$0xff]  ;;  %s2221_s21 = sshll.u32 %s2875_s27, 6  ;;  %vm1803_vm7 = vcmask 64512  }
  0x10   : > { %v1957_v7 = vld [vmem:[%s2402_s26 + $0x20] sm:$0xf]  ;;  %v2225_v8 = vld [vmem:[%s2402_s26 + $0x24] sm:$0xf0]  ;;  %v2409_v12 = vld [vmem:[%s2402_s26 + $0x24] sm:$0x1]  ;;  %s2814_s9 = scalar_lea.vmem %s2864_s7, %s2221_s21  ;;  %s2823_s13 = scalar_lea.vmem %s2865_s8, %s2221_s21 }
  0x11   : > { %2258 = vmatpush.bf16.msra.mxu3 %v2227_v2  ;;  %2256 = vmatpush.bf16.msra.mxu2 %v2229_v3  ;;  %v374_v9 = vld [vmem:[%s2402_s26 + $0x20] sm:$0xf]  ;;  %v1958_v10 = vor.u32 %v2225_v8, %v1957_v7  ;;  %v375_v11 = vld [vmem:[%s2402_s26 + $0x28] sm:$0xf]  ;;  %v2412_v13 = vld [vmem:[%s2402_s26 + $0x2c] sm:$0x1] }
  0x12   : > { %554 = vmatpush.bf16.msra.mxu0 %v2229_v3  ;;  %627 = vmatpush.bf16.msra.mxu1 %v2227_v2  ;;  %v450_v14 = vshrl.u32 %v374_v9, 16  ;;  %v453_v15 = vshll.u32 %v374_v9, 16  ;;  %v459_v16 = vshll.u32 %v2409_v12, 16  ;;  %v464_v17 = vshrl.u32 %v375_v11, 16  ;;  %v370_v18 = vld [vmem:[%s2402_s26] sm:$0xf]  ;;  %vm2517_vm6 = vmor %vm673_vm4, %vm674_vm5 }
  0x13   : > { %v467_v19 = vshll.u32 %v375_v11, 16  ;;  %v473_v20 = vshll.u32 %v2412_v13, 16  ;;  %v371_v21 = vld [vmem:[%s2402_s26 + $0x8] sm:$0xf]  ;;  %v2420_v22 = vld [vmem:[%s2402_s26 + $0x4] sm:$0x1] }
  0x14   : > { %1973 = vmatmul.msk.bf16.vlgmr.msra.gmra.mxu3 %vm534_vm0, %v1958_v10  ;;  %v452_v23 = vrot.slane %v450_v14, 4  ;;  %v455_v24 = vrot.slane %v453_v15, 5  ;;  %v461_v25 = vrot.slane %v459_v16, 5  ;;  %v466_v26 = vrot.slane %v464_v17, 4  ;;  %v2423_v27 = vld [vmem:[%s2402_s26 + $0xc] sm:$0x1] }
  0x15   : > { %755 = vmatpush.bf16.msrb.mxu2 %v2232_v4  ;;  %853 = vmatpush.bf16.msrb.mxu3 %v2238_v5  ;;  %v469_v28 = vrot.slane %v467_v19, 5  ;;  %v475_v29 = vrot.slane %v473_v20, 5  ;;  %v394_v30 = vshrl.u32 %v370_v18, 16  ;;  %v397_v31 = vshll.u32 %v370_v18, 16  ;;  %v1949_v32 = vld [vmem:[%s2402_s26] sm:$0xf] }
  0x16   : > { %1059 = vmatpush.bf16.msrb.mxu0 %v2240_v6  ;;  %v456_v33 = vor.u32 %v455_v24, %v452_v23  ;;  %v403_v34 = vshll.u32 %v2420_v22, 16  ;;  %v408_v35 = vshrl.u32 %v371_v21, 16  ;;  %v411_v36 = vshll.u32 %v371_v21, 16  ;;  %v2223_v37 = vld [vmem:[%s2402_s26 + $0x4] sm:$0xf0] }
  0x17   : > { %v470_v40 = vor.u32 %v469_v28, %v466_v26  ;;  %v396_v41 = vrot.slane %v394_v30, 4  ;;  %v399_v42 = vrot.slane %v397_v31, 5  ;;  %v417_v43 = vshll.u32 %v2423_v27, 16  ;;  %v1961_v44 = vld [vmem:[%s2402_s26 + $0x30] sm:$0xf] }
  0x18   : > { %v457_v46 = vrot.slane %v456_v33, 4  ;;  %v410_v47 = vrot.slane %v408_v35, 4  ;;  %v413_v48 = vrot.slane %v411_v36, 5  ;;  %v2226_v49 = vld [vmem:[%s2402_s26 + $0x34] sm:$0xf0]  ;;  %v405_v52 = vrot.slane %v403_v34, 5 }
  0x19   : > { %756 = vmatpush.bf16.msrb.mxu2 %v2231_v38  ;;  %v471_v50 = vrot.slane %v470_v40, 4  ;;  %v400_v51 = vor.u32 %v399_v42, %v396_v41  ;;  %v376_v53 = vld [vmem:[%s2402_s26 + $0x30] sm:$0xf]  ;;  %854 = vmatpush.bf16.msrb.mxu3 %v2237_v45  ;;  %v419_v57 = vrot.slane %v417_v43, 5  ;;  %v1950_v58 = vor.u32 %v2223_v37, %v1949_v32  ;;  %v377_v59 = vld [vmem:[%s2402_s26 + $0x38] sm:$0xf] }
  0x1a   : > { %v462_v55 = vsel %vm2433_vm3, %v457_v46, %v461_v25  ;;  %v414_v56 = vor.u32 %v413_v48, %v410_v47  ;;  %v2451_v60 = vld [vmem:[%s2402_s26 + $0x34] sm:$0x1]  ;;  %v1962_v0 = vor.u32 %v2226_v49, %v1961_v44  ;;  %1060 = vmatpush.bf16.msrb.mxu0 %v2239_v54  ;;  %v2457_v3 = vld [vmem:[%s2402_s26 + $0x3c] sm:$0x1]  ;;  %v478_v4 = vshrl.u32 %v376_v53, 16  ;;  %v2248_v38 = vld [vmem:[%s2858_s1 + $0x68] sm:$0xff] }
  0x1b   : > { %v476_v61 = vsel %vm2433_vm3, %v471_v50, %v475_v29  ;;  %v514_v62 = vunpack.c.l.b16 %v462_v55  ;;  %v401_v63 = vrot.slane %v400_v51, 4  ;;  %1971 = vmatmul.msk.bf16.vlgmr.msra.gmra.mxu1 %vm534_vm0, %v1950_v58  ;;  %v481_v5 = vshll.u32 %v376_v53, 16  ;;  %v372_v10 = vld [vmem:[%s2402_s26 + $0x10] sm:$0xf]  ;;  %v373_v17 = vld [vmem:[%s2402_s26 + $0x18] sm:$0xf] }
  0x1c   : > { %v515_v1 = vunpack.c.l.b16 %v476_v61  ;;  %v415_v2 = vrot.slane %v414_v56, 4  ;;  %v487_v7 = vshll.u32 %v2451_v60, 16  ;;  %v492_v8 = vshrl.u32 %v377_v59, 16  ;;  %v2467_v18 = vld [vmem:[%s2402_s26 + $0x14] sm:$0x1]  ;;  %v2242_v53 = vld [vmem:[%s2858_s1 + $0x58] sm:$0xff] }
  0x1d   : > { %v406_v6 = vsel %vm2433_vm3, %v401_v63, %v405_v52  ;;  %v495_v9 = vshll.u32 %v377_v59, 16  ;;  %v480_v16 = vrot.slane %v478_v4, 4  ;;  %v483_v20 = vrot.slane %v481_v5, 5  ;;  %v2472_v31 = vld [vmem:[%s2402_s26 + $0x1c] sm:$0x1]  ;;  %v2252_v56 = vld [vmem:[%s2858_s1 + $0x88] sm:$0xff]  ;;  %1193 = vmatpush.bf16.msrb.mxu1 %v2242_v53 }
  0x1e   : > { %v520_v11 = vpack.c.b16 %v515_v1, %v514_v62  ;;  %v420_v14 = vsel %vm2433_vm3, %v415_v2, %v419_v57  ;;  %v510_v15 = vunpack.c.l.b16 %v406_v6  ;;  %v489_v21 = vrot.slane %v487_v7, 5  ;;  %v1953_v43 = vld [vmem:[%s2402_s26 + $0x10] sm:$0xf]  ;;  %v2224_v48 = vld [vmem:[%s2402_s26 + $0x14] sm:$0xf0] }
  0x1f   : > { %v511_v19 = vunpack.c.l.b16 %v420_v14  ;;  %v494_v23 = vrot.slane %v492_v8, 4  ;;  %v497_v24 = vrot.slane %v495_v9, 5  ;;  %v501_v25 = vshll.u32 %v2457_v3, 16  ;;  %v2039_v51 = vld [vmem:[%s2402_s26 + $0x8] sm:$0xf]  ;;  %v2250_v52 = vld [vmem:[%s2858_s1 + $0x78] sm:$0xff] }
  0x20   : > { %1945 = vmatmul.msk.bf16.vlgmr.msra.gmra.mxu2 %vm534_vm0, %v520_v11  ;;  %v422_v26 = vshrl.u32 %v372_v10, 16  ;;  %v425_v28 = vshll.u32 %v372_v10, 16  ;;  %v484_v30 = vor.u32 %v483_v20, %v480_v16  ;;  %v431_v32 = vshll.u32 %v2467_v18, 16  ;;  %1497 = vmatpush.bf16.msra.mxu3 %v2250_v52  ;;  %v2241_v62 = vld [vmem:[%s2858_s1 + $0x50] sm:$0xff]  ;;  %v2013_v7 = vld [vmem:[%s2402_s26 + $0x8] sm:$0xf] }
  0x21   : > { %v518_v29 = vpack.c.b16 %v511_v19, %v510_v15  ;;  %v436_v33 = vshrl.u32 %v373_v17, 16  ;;  %v498_v34 = vor.u32 %v497_v24, %v494_v23  ;;  %v503_v35 = vrot.slane %v501_v25, 5  ;;  %1291 = vmatpush.bf16.msra.mxu2 %v2248_v38  ;;  %v2041_v1 = vld [vmem:[%s2402_s26 + $0x10] sm:$0xf]  ;;  %v649_v10 = vld [vmem:[%s2402_s26] sm:$0xe]  ;;  %1194 = vmatpush.bf16.msrb.mxu1 %v2241_v62 }
  0x22   : > { %v424_v36 = vrot.slane %v422_v26, 4  ;;  %v427_v37 = vrot.slane %v425_v28, 5  ;;  %v485_v40 = vrot.slane %v484_v30, 4  ;;  %v439_v42 = vshll.u32 %v373_v17, 16  ;;  %v2233_v8 = vld [vmem:[%s2402_s26 + $0xc] sm:$0xf0] }
  0x23   : > { %1943 = vmatmul.msk.bf16.vlgmr.msra.gmra.mxu0 %vm534_vm0, %v518_v29  ;;  %v438_v41 = vrot.slane %v436_v33, 4  ;;  %v499_v44 = vrot.slane %v498_v34, 4  ;;  %v433_v46 = vrot.slane %v431_v32, 5  ;;  %v445_v47 = vshll.u32 %v2472_v31, 16  ;;  %v650_v11 = vld [vmem:[%s2402_s26 + $0x8] sm:$0xe] }
  0x24   : > { %1974 = vmatmul.msk.bf16.gmra.mxu3 %vm534_vm0, %v1962_v0  ;;  %v428_v45 = vor.u32 %v427_v37, %v424_v36  ;;  %v490_v49 = vsel %vm2433_vm3, %v485_v40, %v489_v21  ;;  %v441_v50 = vrot.slane %v439_v42, 5  ;;  %v1954_v61 = vor.u32 %v2224_v48, %v1953_v43  ;;  %1631 = vmatpush.bf16.msra.mxu0 %v2252_v56  ;;  %v2040_v19 = vld [vmem:[%s2402_s26 + $0xc] sm:$0x1]  ;;  %v2071_v24 = vld [vmem:[%s2402_s26 + $0x8] sm:$0xe] }
  0x25   : > { %v504_v54 = vsel %vm2433_vm3, %v499_v44, %v503_v35  ;;  %v516_v57 = vunpack.c.l.b16 %v490_v49  ;;  %v447_v59 = vrot.slane %v445_v47, 5  ;;  %v901_v2 = vshrl.u32 %v2039_v51, 16  ;;  %v2072_v25 = vld [vmem:[%s2402_s26 + $0x10] sm:$0xe] }
  0x26   : > { %v429_v55 = vrot.slane %v428_v45, 4  ;;  %v442_v58 = vor.u32 %v441_v50, %v438_v41  ;;  %v517_v63 = vunpack.c.l.b16 %v504_v54  ;;  %v904_v4 = vshll.u32 %v2039_v51, 16  ;;  %v2043_v50 = vld [vmem:[%s2402_s26 + $0x18] sm:$0xf]  ;;  %v651_v62 = vld [vmem:[%s2402_s26 + $0x10] sm:$0xe] }
  0x27   : > { %v678_v5 = vrot.slane %v2420_v22, 5  ;;  %v903_v14 = vrot.slane %v901_v2, 4  ;;  %v682_v16 = vrot.slane %v2423_v27, 5  ;;  %v915_v20 = vshrl.u32 %v2041_v1, 16  ;;  %v2042_v27 = vld [vmem:[%s2402_s26 + $0x14] sm:$0x1] }
  0x28   : > { %v434_v0 = vsel %vm2433_vm3, %v429_v55, %v433_v46  ;;  %v443_v6 = vrot.slane %v442_v58, 4  ;;  %v906_v15 = vrot.slane %v904_v4, 5  ;;  %v521_v22 = vpack.c.b16 %v517_v63, %v516_v57  ;;  %v2045_v55 = vld [vmem:[%s2402_s26 + $0x20] sm:$0xf]  ;;  %v2017_v58 = vld [vmem:[%s2402_s26 + $0x18] sm:$0xf] }
  0x29   : > { %v512_v9 = vunpack.c.l.b16 %v434_v0  ;;  %v918_v23 = vshll.u32 %v2041_v1, 16  ;;  %v2014_v26 = vor.u32 %v2233_v8, %v2013_v7  ;;  %v1975_v28 = vrot.slane %v649_v10, 9  ;;  %v653_v4 = vld [vmem:[%s2402_s26 + $0x20] sm:$0xe]  ;;  %v654_v7 = vld [vmem:[%s2402_s26 + $0x28] sm:$0xe] }
  0x2a   : > { %v448_v17 = vsel %vm2433_vm3, %v443_v6, %v447_v59  ;;  %v1976_v29 = vrot.slane %v650_v11, 9  ;;  %v917_v30 = vrot.slane %v915_v20, 4  ;;  %v907_v33 = vor.u32 %v906_v15, %v903_v14  ;;  %v652_v11 = vld [vmem:[%s2402_s26 + $0x18] sm:$0xe] }
  0x2b   : > { %v513_v21 = vunpack.c.l.b16 %v448_v17  ;;  %1972 = vmatmul.msk.bf16.gmra.mxu1 %vm534_vm0, %v1954_v61  ;;  %v910_v34 = vshll.u32 %v2040_v19, 16  ;;  %v920_v35 = vrot.slane %v918_v23, 5  ;;  %v2079_v37 = vrot.slane %v2071_v24, 9  ;;  %v2234_v61 = vld [vmem:[%s2402_s26 + $0x1c] sm:$0xf0] }
  0x2c   : > { %v1116_v38 = vrot.slane %v2040_v19, 5  ;;  %v2080_v40 = vrot.slane %v2072_v25, 9  ;;  %v1120_v41 = vrot.slane %v2042_v27, 5  ;;  %v924_v43 = vshll.u32 %v2042_v27, 16  ;;  %v2073_v15 = vld [vmem:[%s2402_s26 + $0x18] sm:$0xe] }
  0x2d   : > { %v519_v32 = vpack.c.b16 %v513_v21, %v512_v9  ;;  %v921_v42 = vor.u32 %v920_v35, %v917_v30  ;;  %v679_v46 = vsel %vm2517_vm6, %v1975_v28, %v678_v5  ;;  %v683_v47 = vsel %vm2517_vm6, %v1976_v29, %v682_v16  ;;  %v2074_v19 = vld [vmem:[%s2402_s26 + $0x20] sm:$0xe]  ;;  %v2044_v23 = vld [vmem:[%s2402_s26 + $0x1c] sm:$0x1]  ;;  %v2046_v27 = vld [vmem:[%s2402_s26 + $0x24] sm:$0x1] }
  0x2e   : > { %v1117_v44 = vsel %vm2517_vm6, %v2079_v37, %v1116_v38  ;;  %v1121_v45 = vsel %vm2517_vm6, %v2080_v40, %v1120_v41  ;;  %v908_v48 = vrot.slane %v907_v33, 4  ;;  %v912_v49 = vrot.slane %v910_v34, 5 }
  0x2f   : > { %v922_v51 = vrot.slane %v921_v42, 4  ;;  %v926_v52 = vrot.slane %v924_v43, 5  ;;  %v1151_v53 = vunpack.c.l.b16 %v1117_v44  ;;  %v1152_v54 = vunpack.c.l.b16 %v1121_v45 }
  0x30   : > { %1946 = vmatmul.msk.bf16.gmra.mxu2 %vm534_vm0, %v521_v22  ;;  %v713_v56 = vunpack.c.l.b16 %v679_v46  ;;  %v714_v57 = vunpack.c.l.b16 %v683_v47  ;;  %v913_v59 = vsel %vm2433_vm3, %v908_v48, %v912_v49  ;;  %v929_v63 = vshrl.u32 %v2043_v50, 16  ;;  %v2247_v46 = vld [vmem:[%s2858_s1 + $0x60] sm:$0xff] }
  0x31   : > { %v932_v0 = vshll.u32 %v2043_v50, 16  ;;  %v943_v1 = vshrl.u32 %v2045_v55, 16  ;;  %v946_v2 = vshll.u32 %v2045_v55, 16  ;;  %v927_v5 = vsel %vm2433_vm3, %v922_v51, %v926_v52  ;;  %1292 = vmatpush.bf16.msra.mxu2 %v2247_v46  ;;  %v2249_v55 = vld [vmem:[%s2858_s1 + $0x70] sm:$0xff] }
  0x32   : > { %v1159_v6 = vpack.c.b16 %v1152_v54, %v1151_v53  ;;  %v721_v8 = vpack.c.b16 %v714_v57, %v713_v56  ;;  %v1017_v9 = vunpack.c.l.b16 %v913_v59  ;;  %v2018_v10 = vor.u32 %v2234_v61, %v2017_v58  ;;  %v2047_v54 = vld [vmem:[%s2402_s26 + $0x28] sm:$0xf]  ;;  %v2251_v56 = vld [vmem:[%s2858_s1 + $0x80] sm:$0xff]  ;;  %v2049_v61 = vld [vmem:[%s2402_s26 + $0x30] sm:$0xf]  ;;  %1498 = vmatpush.bf16.msra.mxu3 %v2249_v55 }
  0x33   : > { %1944 = vmatmul.msk.bf16.gmra.mxu0 %vm534_vm0, %v519_v32  ;;  %v1977_v14 = vrot.slane %v651_v62, 9  ;;  %v931_v16 = vrot.slane %v929_v63, 4  ;;  %v934_v17 = vrot.slane %v932_v0, 5  ;;  %v1979_v20 = vrot.slane %v653_v4, 9  ;;  %v655_v62 = vld [vmem:[%s2402_s26 + $0x30] sm:$0xe] }
  0x34   : > { %2035 = vmatmul.msk.bf16.vlgmr.msrb.gmra.mxu3 %vm534_vm0, %v2014_v26  ;;  %v694_v22 = vrot.slane %v2409_v12, 5  ;;  %v1018_v21 = vunpack.c.l.b16 %v927_v5  ;;  %v945_v24 = vrot.slane %v943_v1, 4  ;;  %v948_v25 = vrot.slane %v946_v2, 5  ;;  %1632 = vmatpush.bf16.msra.mxu0 %v2251_v56  ;;  %v656_v63 = vld [vmem:[%s2402_s26 + $0x38] sm:$0xe] }
  0x35   : > { %v1980_v26 = vrot.slane %v654_v7, 9  ;;  %v686_v28 = vrot.slane %v2467_v18, 5  ;;  %v1978_v29 = vrot.slane %v652_v11, 9  ;;  %v2081_v30 = vrot.slane %v2073_v15, 9  ;;  %v2075_v15 = vld [vmem:[%s2402_s26 + $0x28] sm:$0xe] }
  0x36   : > { %v695_v32 = vsel %vm2517_vm6, %v1979_v20, %v694_v22  ;;  %v1124_v33 = vrot.slane %v2044_v23, 5  ;;  %v2082_v34 = vrot.slane %v2074_v19, 9  ;;  %v1128_v35 = vrot.slane %v2046_v27, 5  ;;  %v2021_v19 = vld [vmem:[%s2402_s26 + $0x28] sm:$0xf] }
  0x37   : > { %v698_v12 = vrot.slane %v2412_v13, 5  ;;  %v690_v37 = vrot.slane %v2472_v31, 5  ;;  %v935_v38 = vor.u32 %v934_v17, %v931_v16  ;;  %v938_v40 = vshll.u32 %v2044_v23, 16  ;;  %v2076_v20 = vld [vmem:[%s2402_s26 + $0x30] sm:$0xe] }
  0x38   : > { %v717_v41 = vunpack.c.l.b16 %v695_v32  ;;  %v1025_v42 = vpack.c.b16 %v1018_v21, %v1017_v9  ;;  %v949_v43 = vor.u32 %v948_v25, %v945_v24  ;;  %v952_v44 = vshll.u32 %v2046_v27, 16  ;;  %v2048_v24 = vld [vmem:[%s2402_s26 + $0x2c] sm:$0x1]  ;;  %v2145_v55 = vld [vmem:[%s2402_s26 + $0x18] sm:$0xf] }
  0x39   : > { %v699_v18 = vsel %vm2517_vm6, %v1980_v26, %v698_v12  ;;  %v1125_v13 = vsel %vm2517_vm6, %v2081_v30, %v1124_v33  ;;  %v1129_v31 = vsel %vm2517_vm6, %v2082_v34, %v1128_v35  ;;  %v687_v47 = vsel %vm2517_vm6, %v1977_v14, %v686_v28 }
  0x3a   : > { %v718_v45 = vunpack.c.l.b16 %v699_v18  ;;  %v936_v48 = vrot.slane %v935_v38, 4  ;;  %v940_v49 = vrot.slane %v938_v40, 5  ;;  %v691_v51 = vsel %vm2517_vm6, %v1978_v29, %v690_v37 }
  0x3b   : > { %2099 = vmatmul.msk.bf16.vlgmr.msrb.gmra.mxu1 %vm534_vm0, %v1159_v6  ;;  %v950_v52 = vrot.slane %v949_v43, 4  ;;  %v954_v53 = vrot.slane %v952_v44, 5  ;;  %v1153_v57 = vunpack.c.l.b16 %v1125_v13  ;;  %v1154_v58 = vunpack.c.l.b16 %v1129_v31  ;;  %v2053_v31 = vld [vmem:[%s2402_s26 + $0x40] sm:$0xf] }
  0x3c   : > { %v2567_v50 = vpack.c.b16 %v718_v45, %v717_v41  ;;  %v715_v59 = vunpack.c.l.b16 %v687_v47  ;;  %v716_v0 = vunpack.c.l.b16 %v691_v51  ;;  %v941_v1 = vsel %vm2433_vm3, %v936_v48, %v940_v49  ;;  %v2051_v45 = vld [vmem:[%s2402_s26 + $0x38] sm:$0xf] }
  0x3d   : > { %v957_v2 = vshrl.u32 %v2047_v54, 16  ;;  %v960_v4 = vshll.u32 %v2047_v54, 16  ;;  %v955_v5 = vsel %vm2433_vm3, %v950_v52, %v954_v53  ;;  %v1981_v6 = vrot.slane %v655_v62, 9  ;;  %v2143_v52 = vld [vmem:[%s2402_s26 + $0x10] sm:$0xf] }
  0x3e   : > { %v702_v7 = vrot.slane %v2451_v60, 5  ;;  %v1160_v9 = vpack.c.b16 %v1154_v58, %v1153_v57  ;;  %v974_v11 = vshll.u32 %v2049_v61, 16  ;;  %v706_v14 = vrot.slane %v2457_v3, 5  ;;  %v2235_v60 = vld [vmem:[%s2402_s26 + $0x2c] sm:$0xf0] }
  0x3f   : > { %v1019_v17 = vunpack.c.l.b16 %v941_v1  ;;  %v1020_v23 = vunpack.c.l.b16 %v955_v5  ;;  %v959_v25 = vrot.slane %v957_v2, 4  ;;  %v962_v26 = vrot.slane %v960_v4, 5  ;;  %v2050_v3 = vld [vmem:[%s2402_s26 + $0x34] sm:$0x1]  ;;  %v2025_v5 = vld [vmem:[%s2402_s26 + $0x38] sm:$0xf] }
  0x40   : > { %1995 = vmatmul.msk.bf16.vlgmr.msrb.gmra.mxu2 %vm534_vm0, %v721_v8  ;;  %v1982_v8 = vrot.slane %v656_v63, 9  ;;  %v703_v16 = vsel %vm2517_vm6, %v1981_v6, %v702_v7  ;;  %v722_v29 = vpack.c.b16 %v716_v0, %v715_v59  ;;  %v976_v30 = vrot.slane %v974_v11, 5 }
  0x41   : > { %v719_v21 = vunpack.c.l.b16 %v703_v16  ;;  %v2083_v32 = vrot.slane %v2075_v15, 9  ;;  %v1132_v33 = vrot.slane %v2048_v24, 5  ;;  %v2084_v34 = vrot.slane %v2076_v20, 9  ;;  %v2054_v15 = vld [vmem:[%s2402_s26 + $0x44] sm:$0x1] }
  0x42   : > { %v707_v22 = vsel %vm2517_vm6, %v1982_v8, %v706_v14  ;;  %v1136_v35 = vrot.slane %v2050_v3, 5  ;;  %v1026_v37 = vpack.c.b16 %v1020_v23, %v1019_v17  ;;  %v2022_v38 = vor.u32 %v2235_v60, %v2021_v19  ;;  %v2077_v8 = vld [vmem:[%s2402_s26 + $0x38] sm:$0xe]  ;;  %v2052_v14 = vld [vmem:[%s2402_s26 + $0x3c] sm:$0x1] }
  0x43   : > { %2067 = vmatmul.msk.bf16.vlgmr.msrb.gmra.mxu0 %vm534_vm0, %v1025_v42  ;;  %v720_v28 = vunpack.c.l.b16 %v707_v22  ;;  %v963_v40 = vor.u32 %v962_v26, %v959_v25  ;;  %v966_v41 = vshll.u32 %v2048_v24, 16  ;;  %v980_v43 = vshll.u32 %v2050_v3, 16  ;;  %v2236_v19 = vld [vmem:[%s2402_s26 + $0x3c] sm:$0xf0]  ;;  %v2625_v20 = vld [vmem:[%s2402_s26 + $0x14] sm:$0x1] }
  0x44   : > { %2036 = vmatmul.msk.bf16.gmra.mxu3 %vm534_vm0, %v2018_v10  ;;  %v971_v10 = vshrl.u32 %v2049_v61, 16  ;;  %v1133_v44 = vsel %vm2517_vm6, %v2083_v32, %v1132_v33  ;;  %v1137_v18 = vsel %vm2517_vm6, %v2084_v34, %v1136_v35  ;;  %v985_v53 = vshrl.u32 %v2051_v45, 16  ;;  %v2628_v23 = vld [vmem:[%s2402_s26 + $0x1c] sm:$0x1] }
  0x45   : > { %v2600_v12 = vpack.c.b16 %v720_v28, %v719_v21  ;;  %v964_v46 = vrot.slane %v963_v40, 4  ;;  %v968_v13 = vrot.slane %v966_v41, 5  ;;  %v982_v48 = vrot.slane %v980_v43, 5 }
  0x46   : > { %v973_v27 = vrot.slane %v971_v10, 4  ;;  %v1155_v49 = vunpack.c.l.b16 %v1133_v44  ;;  %v1156_v51 = vunpack.c.l.b16 %v1137_v18  ;;  %v988_v54 = vshll.u32 %v2051_v45, 16 }
  0x47   : > { %v999_v56 = vshrl.u32 %v2053_v31, 16  ;;  %v1002_v57 = vshll.u32 %v2053_v31, 16  ;;  %v969_v58 = vsel %vm2433_vm3, %v964_v46, %v968_v13  ;;  %v1339_v59 = vshrl.u32 %v2143_v52, 16  ;;  %v2149_v46 = vld [vmem:[%s2402_s26 + $0x28] sm:$0xf] }
  0x48   : > { %v977_v42 = vor.u32 %v976_v30, %v973_v27  ;;  %v1342_v61 = vshll.u32 %v2143_v52, 16  ;;  %v1161_v63 = vpack.c.b16 %v1156_v51, %v1155_v49  ;;  %v1353_v0 = vshrl.u32 %v2145_v55, 16 }
  0x49   : > { %v1356_v1 = vshll.u32 %v2145_v55, 16  ;;  %v987_v2 = vrot.slane %v985_v53, 4  ;;  %v990_v4 = vrot.slane %v988_v54, 5  ;;  %v1001_v6 = vrot.slane %v999_v56, 4 }
  0x4a   : > { %v978_v47 = vrot.slane %v977_v42, 4  ;;  %v1004_v7 = vrot.slane %v1002_v57, 5  ;;  %v1021_v10 = vunpack.c.l.b16 %v969_v58  ;;  %v1341_v16 = vrot.slane %v1339_v59, 4 }
  0x4b   : > { %2100 = vmatmul.msk.bf16.gmra.mxu1 %vm534_vm0, %v1160_v9  ;;  %v2078_v9 = vld [vmem:[%s2402_s26 + $0x40] sm:$0xe]  ;;  %v1344_v17 = vrot.slane %v1342_v61, 5  ;;  %v1355_v22 = vrot.slane %v1353_v0, 4  ;;  %v1358_v21 = vrot.slane %v1356_v1, 5  ;;  %v2085_v60 = vrot.slane %v2077_v8, 9 }
  0x4c   : > { %v983_v62 = vsel %vm2433_vm3, %v978_v47, %v982_v48  ;;  %v1140_v24 = vrot.slane %v2052_v14, 5  ;;  %v2086_v25 = vrot.slane %v2078_v9, 9  ;;  %v1144_v26 = vrot.slane %v2054_v15, 5  ;;  %v2176_v8 = vld [vmem:[%s2402_s26 + $0x18] sm:$0xe] }
  0x4d   : > { %v1022_v11 = vunpack.c.l.b16 %v983_v62  ;;  %v991_v28 = vor.u32 %v990_v4, %v987_v2  ;;  %v1005_v3 = vor.u32 %v1004_v7, %v1001_v6  ;;  %v1008_v27 = vshll.u32 %v2054_v15, 16  ;;  %v2654_v6 = vld [vmem:[%s2402_s26 + $0x2c] sm:$0x1]  ;;  %v2175_v7 = vld [vmem:[%s2402_s26 + $0x10] sm:$0xe] }
  0x4e   : > { %v2026_v32 = vor.u32 %v2236_v19, %v2025_v5  ;;  %v1345_v33 = vor.u32 %v1344_v17, %v1341_v16  ;;  %v1348_v34 = vshll.u32 %v2625_v20, 16  ;;  %v1359_v35 = vor.u32 %v1358_v21, %v1355_v22  ;;  %v2651_v5 = vld [vmem:[%s2402_s26 + $0x24] sm:$0x1] }
  0x4f   : > { %v1027_v30 = vpack.c.b16 %v1022_v11, %v1021_v10  ;;  %v1145_v40 = vsel %vm2517_vm6, %v2086_v25, %v1144_v26  ;;  %v992_v41 = vrot.slane %v991_v28, 4  ;;  %v1006_v43 = vrot.slane %v1005_v3, 4  ;;  %v2151_v28 = vld [vmem:[%s2402_s26 + $0x30] sm:$0xf] }
  0x50   : > { %1996 = vmatmul.msk.bf16.gmra.mxu2 %vm534_vm0, %v722_v29  ;;  %v994_v29 = vshll.u32 %v2052_v14, 16  ;;  %v1010_v44 = vrot.slane %v1008_v27, 5  ;;  %v1346_v18 = vrot.slane %v1345_v33, 4  ;;  %v1350_v45 = vrot.slane %v1348_v34, 5  ;;  %v2117_v34 = vld [vmem:[%s2402_s26 + $0x10] sm:$0xf] }
  0x51   : > { %v1360_v13 = vrot.slane %v1359_v35, 4  ;;  %v1158_v48 = vunpack.c.l.b16 %v1145_v40  ;;  %v1381_v52 = vshrl.u32 %v2149_v46, 16  ;;  %v1384_v53 = vshll.u32 %v2149_v46, 16  ;;  %v2243_v35 = vld [vmem:[%s2402_s26 + $0x14] sm:$0xf0] }
  0x52   : > { %v996_v42 = vrot.slane %v994_v29, 5  ;;  %v1011_v55 = vsel %vm2433_vm3, %v1006_v43, %v1010_v44  ;;  %v1351_v56 = vsel %vm2433_vm3, %v1346_v18, %v1350_v45  ;;  %v1376_v10 = vshll.u32 %v2651_v5, 16  ;;  %v2153_v29 = vld [vmem:[%s2402_s26 + $0x38] sm:$0xf]  ;;  %v2683_v46 = vld [vmem:[%s2402_s26 + $0x3c] sm:$0x1] }
  0x53   : > { %2068 = vmatmul.msk.bf16.gmra.mxu0 %vm534_vm0, %v1026_v37  ;;  %v1362_v37 = vshll.u32 %v2628_v23, 16  ;;  %v1383_v62 = vrot.slane %v1381_v52, 4  ;;  %v1024_v1 = vunpack.c.l.b16 %v1011_v55  ;;  %v1455_v2 = vunpack.c.l.b16 %v1351_v56 }
  0x54   : > { %2037 = vmatmul.msk.bf16.gmra.mxu3 %vm534_vm0, %v2022_v38  ;;  %v1141_v38 = vsel %vm2517_vm6, %v2085_v60, %v1140_v24  ;;  %v997_v54 = vsel %vm2433_vm3, %v992_v41, %v996_v42  ;;  %v1390_v14 = vshll.u32 %v2654_v6, 16  ;;  %v2183_v17 = vrot.slane %v2175_v7, 9 }
  0x55   : > { %v1364_v31 = vrot.slane %v1362_v37, 5  ;;  %v1157_v47 = vunpack.c.l.b16 %v1141_v38  ;;  %v1023_v0 = vunpack.c.l.b16 %v997_v54  ;;  %v1554_v19 = vrot.slane %v2625_v20, 5 }
  0x56   : > { %v2184_v22 = vrot.slane %v2176_v8, 9  ;;  %v1558_v21 = vrot.slane %v2628_v23, 5  ;;  %v1378_v24 = vrot.slane %v1376_v10, 5  ;;  %v1392_v26 = vrot.slane %v1390_v14, 5 }
  0x57   : > { %v1365_v57 = vsel %vm2433_vm3, %v1360_v13, %v1364_v31  ;;  %v1162_v58 = vpack.c.b16 %v1158_v48, %v1157_v47  ;;  %v1028_v15 = vpack.c.b16 %v1024_v1, %v1023_v0  ;;  %v1395_v27 = vshrl.u32 %v2151_v28, 16  ;;  %v2177_v47 = vld [vmem:[%s2402_s26 + $0x20] sm:$0xe]  ;;  %v2178_v48 = vld [vmem:[%s2402_s26 + $0x28] sm:$0xe] }
  0x58   : > { %v1456_v4 = vunpack.c.l.b16 %v1365_v57  ;;  %v1559_v20 = vsel %vm2517_vm6, %v2184_v22, %v1558_v21  ;;  %v1412_v33 = vshll.u32 %v2153_v29, 16  ;;  %v2118_v45 = vor.u32 %v2243_v35, %v2117_v34  ;;  %v2157_v0 = vld [vmem:[%s2402_s26 + $0x48] sm:$0xf]  ;;  %v2121_v1 = vld [vmem:[%s2402_s26 + $0x20] sm:$0xf] }
  0x59   : > { %v1590_v38 = vunpack.c.l.b16 %v1559_v20  ;;  %v1397_v42 = vrot.slane %v1395_v27, 4  ;;  %v2185_v54 = vrot.slane %v2177_v47, 9  ;;  %v1562_v55 = vrot.slane %v2651_v5, 5  ;;  %v2180_v20 = vld [vmem:[%s2402_s26 + $0x38] sm:$0xe] }
  0x5a   : > { %v1463_v16 = vpack.c.b16 %v1456_v4, %v1455_v2  ;;  %v1414_v18 = vrot.slane %v1412_v33, 5  ;;  %v2186_v56 = vrot.slane %v2178_v48, 9  ;;  %v1566_v57 = vrot.slane %v2654_v6, 5  ;;  %v2244_v2 = vld [vmem:[%s2402_s26 + $0x24] sm:$0xf0] }
  0x5b   : > { %2101 = vmatmul.msk.bf16.gmra.mxu1 %vm534_vm0, %v1161_v63  ;;  %v1386_v63 = vrot.slane %v1384_v53, 5  ;;  %v1418_v53 = vshll.u32 %v2683_v46, 16  ;;  %v1563_v4 = vsel %vm2517_vm6, %v2185_v54, %v1562_v55  ;;  %v1437_v10 = vshrl.u32 %v2157_v0, 16  ;;  %v2181_v55 = vld [vmem:[%s2402_s26 + $0x40] sm:$0xe] }
  0x5c   : > { %v1567_v5 = vsel %vm2517_vm6, %v2186_v56, %v1566_v57  ;;  %v2122_v14 = vor.u32 %v2244_v2, %v2121_v1  ;;  %v2188_v34 = vrot.slane %v2180_v20, 9  ;;  %v1574_v35 = vrot.slane %v2683_v46, 5  ;;  %v2245_v46 = vld [vmem:[%s2402_s26 + $0x34] sm:$0xf0]  ;;  %v2182_v56 = vld [vmem:[%s2402_s26 + $0x48] sm:$0xe] }
  0x5d   : > { %v1387_v11 = vor.u32 %v1386_v63, %v1383_v62  ;;  %v1420_v62 = vrot.slane %v1418_v53, 5  ;;  %v2155_v63 = vld [vmem:[%s2402_s26 + $0x40] sm:$0xf]  ;;  %v2189_v57 = vrot.slane %v2181_v55, 9 }
  0x5e   : > { %v1423_v8 = vshrl.u32 %v2155_v63, 16 }
  0x5f   : > { %v1388_v25 = vrot.slane %v1387_v11, 4  ;;  %v1440_v11 = vshll.u32 %v2157_v0, 16 }
  0x60   : > { %1997 = vmatmul.msk.bf16.gmra.mxu2 %vm534_vm0, %v2567_v50  ;;  %v2147_v50 = vld [vmem:[%s2402_s26 + $0x20] sm:$0xf]  ;;  %v1425_v22 = vrot.slane %v1423_v8, 4 }
  0x61   : > { %v1367_v49 = vshrl.u32 %v2147_v50, 16  ;;  %v1370_v51 = vshll.u32 %v2147_v50, 16  ;;  %v1393_v3 = vsel %vm2433_vm3, %v1388_v25, %v1392_v26  ;;  %v2680_v50 = vld [vmem:[%s2402_s26 + $0x34] sm:$0x1]  ;;  %v2156_v25 = vld [vmem:[%s2402_s26 + $0x44] sm:$0x1] }
  0x62   : > { %v1458_v41 = vunpack.c.l.b16 %v1393_v3  ;;  %v2158_v26 = vld [vmem:[%s2402_s26 + $0x4c] sm:$0x1]  ;;  %v1432_v3 = vshll.u32 %v2156_v25, 16  ;;  %v1570_v33 = vrot.slane %v2680_v50, 5 }
  0x63   : > { %2069 = vmatmul.msk.bf16.gmra.mxu0 %vm534_vm0, %v1027_v30  ;;  %v1369_v59 = vrot.slane %v1367_v49, 4  ;;  %v1372_v61 = vrot.slane %v1370_v51, 5  ;;  %v1398_v30 = vshll.u32 %v2151_v28, 16  ;;  %v1404_v51 = vshll.u32 %v2680_v50, 16  ;;  %v2125_v50 = vld [vmem:[%s2402_s26 + $0x30] sm:$0xf] }
  0x64   : > { %2038 = vmatmul.msk.bf16.gmra.mxu3 %vm534_vm0, %v2026_v32  ;;  %v1409_v32 = vshrl.u32 %v2153_v29, 16 }
  0x65   : > { %v1373_v9 = vor.u32 %v1372_v61, %v1369_v59  ;;  %v1400_v43 = vrot.slane %v1398_v30, 5  ;;  %v1406_v59 = vrot.slane %v1404_v51, 5  ;;  %v1446_v30 = vshll.u32 %v2158_v26, 16 }
  0x66   : > { %v1411_v44 = vrot.slane %v1409_v32, 4 }
  0x67   : > { %v1374_v60 = vrot.slane %v1373_v9, 4  ;;  %v1401_v49 = vor.u32 %v1400_v43, %v1397_v42  ;;  %v1426_v9 = vshll.u32 %v2155_v63, 16 }
  0x68   : > { %v1415_v52 = vor.u32 %v1414_v18, %v1411_v44  ;;  %v1575_v44 = vsel %vm2517_vm6, %v2188_v34, %v1574_v35 }
  0x69   : > { %v1379_v23 = vsel %vm2433_vm3, %v1374_v60, %v1378_v24  ;;  %v1428_v21 = vrot.slane %v1426_v9, 5  ;;  %v1439_v60 = vrot.slane %v1437_v10, 4  ;;  %v1442_v24 = vrot.slane %v1440_v11, 5 }
  0x6a   : > { %v1457_v40 = vunpack.c.l.b16 %v1379_v23  ;;  %v1416_v61 = vrot.slane %v1415_v52, 4 }
  0x6b   : > { %2102 = vmatmul.msk.bf16.gmra.mxu1 %vm534_vm0, %v1162_v58  ;;  %v1402_v58 = vrot.slane %v1401_v49, 4  ;;  %v1429_v23 = vor.u32 %v1428_v21, %v1425_v22  ;;  %v1443_v27 = vor.u32 %v1442_v24, %v1439_v60  ;;  %v2126_v49 = vor.u32 %v2245_v46, %v2125_v50  ;;  %v2254_v22 = vld [vmem:[%s2861_s4 + $0x8] sm:$0xff] }
  0x6c   : > { %v1464_v31 = vpack.c.b16 %v1458_v41, %v1457_v40  ;;  %v1421_v7 = vsel %vm2433_vm3, %v1416_v61, %v1420_v62  ;;  %v1448_v41 = vrot.slane %v1446_v30, 5  ;;  %v2190_v61 = vrot.slane %v2182_v56, 9  ;;  %1732 = vmatpush.bf16.msra.mxu1 %v2254_v22 }
  0x6d   : > { %v1407_v6 = vsel %vm2433_vm3, %v1402_v58, %v1406_v59  ;;  %v1444_v40 = vrot.slane %v1443_v27, 4  ;;  %v1578_v59 = vrot.slane %v2156_v25, 5  ;;  %v1582_v62 = vrot.slane %v2158_v26, 5 }
  0x6f   : > { %v1579_v1 = vsel %vm2517_vm6, %v2189_v57, %v1578_v59  ;;  %v1583_v2 = vsel %vm2517_vm6, %v2190_v61, %v1582_v62 }
  0x70   : > { %1998 = vmatmul.msk.bf16.gmra.mxu2 %vm534_vm0, %v2600_v12  ;;  %v1555_v12 = vsel %vm2517_vm6, %v2183_v17, %v1554_v19  ;;  %v1459_v17 = vunpack.c.l.b16 %v1407_v6  ;;  %v1460_v19 = vunpack.c.l.b16 %v1421_v7  ;;  %v1595_v7 = vunpack.c.l.b16 %v1579_v1 }
  0x71   : > { %v1589_v37 = vunpack.c.l.b16 %v1555_v12  ;;  %v2179_v12 = vld [vmem:[%s2402_s26 + $0x30] sm:$0xe]  ;;  %v1596_v8 = vunpack.c.l.b16 %v1583_v2 }
  0x72   : > { %v1465_v29 = vpack.c.b16 %v1460_v19, %v1459_v17  ;;  %v2187_v32 = vrot.slane %v2179_v12, 9 }
  0x73   : > { %2070 = vmatmul.msk.bf16.gmra.mxu0 %vm534_vm0, %v1028_v15  ;;  %v1597_v13 = vpack.c.b16 %v1590_v38, %v1589_v37  ;;  %v1591_v15 = vunpack.c.l.b16 %v1563_v4  ;;  %v1430_v37 = vrot.slane %v1429_v23, 4  ;;  %v1434_v38 = vrot.slane %v1432_v3, 5  ;;  %v2129_v4 = vld [vmem:[%s2402_s26 + $0x40] sm:$0xf] }
  0x74   : > { %2171 = vmatmul.msk.bf16.vlgmr.msra.gmra.mxu3 %vm534_vm0, %v1463_v16  ;;  %v1592_v16 = vunpack.c.l.b16 %v1567_v5  ;;  %v1571_v43 = vsel %vm2517_vm6, %v2187_v32, %v1570_v33  ;;  %v2246_v5 = vld [vmem:[%s2402_s26 + $0x44] sm:$0xf0] }
  0x75   : > { %v1435_v18 = vsel %vm2433_vm3, %v1430_v37, %v1434_v38  ;;  %v2130_v10 = vor.u32 %v2246_v5, %v2129_v4 }
  0x76   : > { %v1598_v28 = vpack.c.b16 %v1592_v16, %v1591_v15  ;;  %v1461_v47 = vunpack.c.l.b16 %v1435_v18  ;;  %v2253_v18 = vld [vmem:[%s2861_s4] sm:$0xff] }
  0x77   : > { %1733 = vmatpush.bf16.msra.mxu1 %v2253_v18 }
  0x80   : > { %2139 = vmatmul.msk.bf16.vlgmr.msra.gmra.mxu2 %vm534_vm0, %v2118_v45  ;;  %v1449_v45 = vsel %vm2433_vm3, %v1444_v40, %v1448_v41 }
  0x81   : > { %v1462_v48 = vunpack.c.l.b16 %v1449_v45 }
  0x83   : > { %2203 = vmatmul.msk.bf16.vlgmr.msra.gmra.mxu0 %vm534_vm0, %v1597_v13  ;;  %v1593_v13 = vunpack.c.l.b16 %v1571_v43  ;;  %v1466_v53 = vpack.c.b16 %v1462_v48, %v1461_v47 }
  0x84   : > { %2172 = vmatmul.msk.bf16.gmra.mxu3 %vm534_vm0, %v1464_v31  ;;  %v1594_v31 = vunpack.c.l.b16 %v1575_v44 }
  0x86   : > { %v1599_v52 = vpack.c.b16 %v1594_v31, %v1593_v13 }
  0x90   : > { %2140 = vmatmul.msk.bf16.gmra.mxu2 %vm534_vm0, %v2122_v14  ;;  %v1600_v14 = vpack.c.b16 %v1596_v8, %v1595_v7 }
  0x93   : > { %2204 = vmatmul.msk.bf16.gmra.mxu0 %vm534_vm0, %v1598_v28 }
  0x94   : > { %2173 = vmatmul.msk.bf16.gmra.mxu3 %vm534_vm0, %v1465_v29 }
  0x97   : > { %v639_v42 = vpop.f32.mrf.mxu3 }
  0x98   : > { %v629_v24 = vpop.f32.mrf.mxu1 }
  0x9f   : > { %v641_v51 = vpop.f32.mrf.mxu3 }
  0xa0   : > { %v556_v54 = vpop.f32.mrf.mxu0  ;;  %2141 = vmatmul.msk.bf16.gmra.mxu2 %vm534_vm0, %v2126_v49  ;;  %v631_v3 = vpop.f32.mrf.mxu1 }
  0xa1   : > { %v630_v28 = vadd.f32 %v629_v24, %v556_v54 }
  0xa3   : > { %2205 = vmatmul.msk.bf16.gmra.mxu0 %vm534_vm0, %v1599_v52  ;;  %v566_v39 = vpop.f32.mrf.mxu2 }
  0xa4   : > { %2174 = vmatmul.msk.bf16.gmra.mxu3 %vm534_vm0, %v1466_v53  ;;  %v640_v58 = vadd.f32 %v639_v42, %v566_v39 }
  0xa7   : > { %v644_v63 = vpop.f32.mrf.mxu3 }
  0xa8   : > { %v2730_v0 = vpop.f32.mrf.mxu0  ;;  %v634_v35 = vpop.f32.mrf.mxu1 }
  0xa9   : > { %v632_v2 = vadd.f32 %v631_v3, %v2730_v0 }
  0xab   : > { %v568_v6 = vpop.f32.mrf.mxu2 }
  0xac   : > { %v2738_v9 = vadd.f32 %v641_v51, %v568_v6 }
  0xaf   : > { %v646_v11 = vpop.f32.mrf.mxu3 }
  0xb0   : > { %v561_v15 = vpop.f32.mrf.mxu0  ;;  %2142 = vmatmul.msk.bf16.gmra.mxu2 %vm534_vm0, %v2130_v10  ;;  %v636_v52 = vpop.f32.mrf.mxu1 }
  0xb1   : > { %v635_v37 = vadd.f32 %v634_v35, %v561_v15 }
  0xb3   : > { %2206 = vmatmul.msk.bf16.gmra.mxu0 %vm534_vm0, %v1600_v14  ;;  %v571_v16 = vpop.f32.mrf.mxu2 }
  0xb4   : > { %v645_v17 = vadd.f32 %v644_v63, %v571_v16 }
  0xb7   : > { %v856_v19 = vpop.f32.mrf.mxu3 }
  0xb8   : > { %v2742_v36 = vpop.f32.mrf.mxu0  ;;  %v1196_v56 = vpop.f32.mrf.mxu1 }
  0xbb   : > { %v573_v21 = vpop.f32.mrf.mxu2 }
  0xbc   : > { %v2747_v60 = vadd.f32 %v646_v11, %v573_v21  ;;  %v2770_v21 = vld [vmem:[%s2859_s2] ss:$0 sm:$0xff] }
  0xbf   : > { %v858_v25 = vpop.f32.mrf.mxu3 }
  0xc0   : > { %v1062_v26 = vpop.f32.mrf.mxu0 }
  0xc3   : > { %v758_v29 = vpop.f32.mrf.mxu2 }
  0xc4   : > { %v778_v12 = vadd.f32 %v758_v29, %v630_v28 }
  0xc6   : > { %v876_v20 = vadd.f32 %v856_v19, %v778_v12  ;;  %v2777_v12 = vld [vmem:[%s2860_s3] ss:$0 sm:$0xff] }
  0xc7   : > { %v861_v23 = vpop.f32.mrf.mxu3 }
  0xc8   : > { %v1064_v27 = vpop.f32.mrf.mxu0  ;;  %v1082_v30 = vadd.f32 %v1062_v26, %v876_v20  ;;  %v637_v26 = vadd.f32 %v636_v52, %v2742_v36 }
  0xca   : > { %v1216_v7 = vadd.f32 %v1196_v56, %v1082_v30 }
  0xcb   : > { %v760_v32 = vpop.f32.mrf.mxu2 }
  0xcc   : > { %v779_v4 = vadd.f32 %v760_v32, %v632_v2 }
  0xce   : > { %v877_v8 = vadd.f32 %v858_v25, %v779_v4 }
  0xcf   : > { %v863_v33 = vpop.f32.mrf.mxu3 }
  0xd0   : > { %v1067_v34 = vpop.f32.mrf.mxu0  ;;  %v1083_v15 = vadd.f32 %v1064_v27, %v877_v8 }
  0xd3   : > { %v763_v38 = vpop.f32.mrf.mxu2 }
  0xd4   : > { %v780_v40 = vadd.f32 %v763_v38, %v635_v37 }
  0xd6   : > { %v878_v41 = vadd.f32 %v861_v23, %v780_v40 }
  0xd7   : > { %v866_v42 = vpop.f32.mrf.mxu3 }
  0xd8   : > { %v1069_v43 = vpop.f32.mrf.mxu0  ;;  %v1084_v44 = vadd.f32 %v1067_v34, %v878_v41 }
  0xdb   : > { %v765_v45 = vpop.f32.mrf.mxu2 }
  0xdc   : > { %v781_v29 = vadd.f32 %v765_v45, %v637_v26 }
  0xde   : > { %v879_v32 = vadd.f32 %v863_v33, %v781_v29 }
  0xdf   : > { %v2752_v50 = vpop.f32.mrf.mxu3 }
  0xe0   : > { %v1072_v46 = vpop.f32.mrf.mxu0  ;;  %v1085_v41 = vadd.f32 %v1069_v43, %v879_v32 }
  0xe3   : > { %v768_v13 = vpop.f32.mrf.mxu2 }
  0xe4   : > { %v782_v31 = vadd.f32 %v768_v13, %v640_v58  ;;  %v1198_v58 = vpop.f32.mrf.mxu1 }
  0xe5   : > { %v1217_v19 = vadd.f32 %v1198_v58, %v1083_v15 }
  0xe6   : > { %v880_v47 = vadd.f32 %v866_v42, %v782_v31 }
  0xe7   : > { %v871_v48 = vpop.f32.mrf.mxu3 }
  0xe8   : > { %v2754_v49 = vpop.f32.mrf.mxu0  ;;  %v2756_v51 = vadd.f32 %v1072_v46, %v880_v47 }
  0xeb   : > { %v770_v53 = vpop.f32.mrf.mxu2 }
  0xec   : > { %v1201_v14 = vpop.f32.mrf.mxu1  ;;  %v783_v52 = vadd.f32 %v770_v53, %v2738_v9 }
  0xed   : > { %v1218_v30 = vadd.f32 %v1201_v14, %v1084_v44 }
  0xef   : > { %v2758_v54 = vpop.f32.mrf.mxu3 }
  0xf0   : > { %v1077_v55 = vpop.f32.mrf.mxu0 }
  0xf3   : > { %v773_v39 = vpop.f32.mrf.mxu2 }
  0xf4   : > { %v784_v57 = vadd.f32 %v773_v39, %v645_v17  ;;  %v1203_v23 = vpop.f32.mrf.mxu1 }
  0xf5   : > { %v1219_v47 = vadd.f32 %v1203_v23, %v1085_v41 }
  0xf6   : > { %v882_v59 = vadd.f32 %v871_v48, %v784_v57 }
  0xf7   : > { %v1500_v61 = vpop.f32.mrf.mxu3 }
  0xf8   : > { %v2760_v62 = vpop.f32.mrf.mxu0  ;;  %v2762_v63 = vadd.f32 %v1077_v55, %v882_v59 }
  0xfb   : > { %v2764_v1 = vpop.f32.mrf.mxu2 }
  0xfc   : > { %v1206_v31 = vpop.f32.mrf.mxu1 }
  0xfd   : > { %v1220_v59 = vadd.f32 %v1206_v31, %v2756_v51 }
  0xff   : > { %v1502_v6 = vpop.f32.mrf.mxu3 }
 0x100   : > { %v1634_v5 = vpop.f32.mrf.mxu0 }
 0x103   : > { %v1294_v10 = vpop.f32.mrf.mxu2 }
 0x104   : > { %v1314_v11 = vadd.f32 %v1294_v10, %v1216_v7  ;;  %v1208_v4 = vpop.f32.mrf.mxu1 }
 0x106   : > { %v1520_v16 = vadd.f32 %v1500_v61, %v1314_v11  ;;  %v881_v61 = vadd.f32 %v2752_v50, %v783_v52  ;;  %v1779_v52 = vld [vmem:[%s2814_s9] sm:$0xff] }
 0x107   : > { %v1505_v0 = vpop.f32.mrf.mxu3 }
 0x108   : > { %v1636_v17 = vpop.f32.mrf.mxu0  ;;  %v1654_v22 = vadd.f32 %v1634_v5, %v1520_v16  ;;  %v1087_v9 = vadd.f32 %v2754_v49, %v881_v61 }
 0x10a   : > { %v1666_v25 = vmul.f32 %v2770_v21, %v1654_v22  ;;  %v1221_v15 = vadd.f32 %v1208_v4, %v1087_v9  ;;  %v785_v22 = vadd.f32 %v2764_v1, %v2747_v60 }
 0x10b   : > { %v1296_v24 = vpop.f32.mrf.mxu2 }
 0x10c   : > { %v1315_v28 = vadd.f32 %v1296_v24, %v1217_v19  ;;  %v1678_v34 = vadd.f32 %v2777_v12, %v1666_v25  ;;  %v1211_v19 = vpop.f32.mrf.mxu1 }
 0x10d   : > { %v1222_v26 = vadd.f32 %v1211_v19, %v2762_v63 }
 0x10e   : > { %v1521_v20 = vadd.f32 %v1502_v6, %v1315_v28  ;;  %v1686_v42 = vmax.f32 %v1678_v34, 0.0  ;;  %v883_v28 = vadd.f32 %v2758_v54, %v785_v22 }
 0x10f   : > { %v1507_v40 = vpop.f32.mrf.mxu3 }
 0x110   : > { %v1655_v3 = vadd.f32 %v1636_v17, %v1521_v20  ;;  %v1639_v27 = vpop.f32.mrf.mxu0  ;;  %v1089_v60 = vadd.f32 %v2760_v62, %v883_v28 }
 0x112   : > { %v1667_v35 = vmul.f32 %v2770_v21, %v1655_v3 }
 0x113   : > { %v1299_v36 = vpop.f32.mrf.mxu2 }
 0x114   : > { %v1679_v37 = vadd.f32 %v2777_v12, %v1667_v35  ;;  %v1316_v38 = vadd.f32 %v1299_v36, %v1218_v30  ;;  %v1213_v35 = vpop.f32.mrf.mxu1 }
 0x115   : > { %v1223_v63 = vadd.f32 %v1213_v35, %v1089_v60 }
 0x116   : > { %v1687_v18 = vmax.f32 %v1679_v37, 0.0  ;;  %v1522_v45 = vadd.f32 %v1505_v0, %v1316_v38 }
 0x117   : > { %v1510_v39 = vpop.f32.mrf.mxu3 }
 0x118   : > { %v1694_v46 = vpack.c.bf16 %v1687_v18, %v1686_v42  ;;  %v1641_v13 = vpop.f32.mrf.mxu0  ;;  %v1656_v48 = vadd.f32 %v1639_v27, %v1522_v45 }
 0x11a   : > { %2215 = vmatmul.msk.bf16.vlgmr.msra.gmra.mxu1 %vm534_vm0, %v1694_v46  ;;  %v1668_v55 = vmul.f32 %v2770_v21, %v1656_v48 }
 0x11b   : > { %v1301_v33 = vpop.f32.mrf.mxu2 }
 0x11c   : > { %v1317_v44 = vadd.f32 %v1301_v33, %v1219_v47  ;;  %v1680_v2 = vadd.f32 %v2777_v12, %v1668_v55  ;;  %v2286_v33 = vld [vmem:[%s2862_s5] ss:$0 sm:$0xff] }
 0x11e   : > { %v1523_v56 = vadd.f32 %v1507_v40, %v1317_v44  ;;  %v1688_v8 = vmax.f32 %v1680_v2, 0.0 }
 0x11f   : > { %v1512_v14 = vpop.f32.mrf.mxu3 }
 0x120   : > { %v1657_v57 = vadd.f32 %v1641_v13, %v1523_v56  ;;  %v1644_v43 = vpop.f32.mrf.mxu0 }
 0x122   : > { %v1669_v58 = vmul.f32 %v2770_v21, %v1657_v57 }
 0x123   : > { %v1304_v5 = vpop.f32.mrf.mxu2 }
 0x124   : > { %v1318_v6 = vadd.f32 %v1304_v5, %v1220_v59  ;;  %v1681_v7 = vadd.f32 %v2777_v12, %v1669_v58  ;;  %v1780_v59 = vld [vmem:[%s2814_s9 + $0x8] sm:$0xff] }
 0x126   : > { %v1524_v53 = vadd.f32 %v1510_v39, %v1318_v6  ;;  %v1689_v10 = vmax.f32 %v1681_v7, 0.0  ;;  %v1781_v6 = vld [vmem:[%s2814_s9 + $0x10] sm:$0xff] }
 0x127   : > { %v1515_v20 = vpop.f32.mrf.mxu3 }
 0x128   : > { %v1695_v11 = vpack.c.bf16 %v1689_v10, %v1688_v8  ;;  %v1658_v51 = vadd.f32 %v1644_v43, %v1524_v53  ;;  %v1646_v50 = vpop.f32.mrf.mxu0 }
 0x12a   : > { %2216 = vmatmul.msk.bf16.gmra.mxu1 %vm534_vm0, %v1695_v11  ;;  %v1670_v24 = vmul.f32 %v2770_v21, %v1658_v51  ;;  %v1782_v11 = vld [vmem:[%s2814_s9 + $0x18] sm:$0xff] }
 0x12b   : > { %v1306_v16 = vpop.f32.mrf.mxu2 }
 0x12c   : > { %v1319_v17 = vadd.f32 %v1306_v16, %v1221_v15  ;;  %v1682_v25 = vadd.f32 %v2777_v12, %v1670_v24 }
 0x12e   : > { %v1525_v0 = vadd.f32 %v1512_v14, %v1319_v17  ;;  %v1690_v32 = vmax.f32 %v1682_v25, 0.0  ;;  %v1783_v17 = vld [vmem:[%s2814_s9 + $0x20] sm:$0xff] }
 0x12f   : > { %v1517_v40 = vpop.f32.mrf.mxu3 }
 0x130   : > { %v1659_v49 = vadd.f32 %v1646_v50, %v1525_v0  ;;  %v1649_v30 = vpop.f32.mrf.mxu0 }
 0x132   : > { %v1671_v29 = vmul.f32 %v2770_v21, %v1659_v49 }
 0x133   : > { %v1309_v23 = vpop.f32.mrf.mxu2 }
 0x134   : > { %v1320_v3 = vadd.f32 %v1309_v23, %v1222_v26  ;;  %v1683_v27 = vadd.f32 %v2777_v12, %v1671_v29  ;;  %v1784_v26 = vld [vmem:[%s2814_s9 + $0x28] sm:$0xff] }
 0x136   : > { %v1526_v1 = vadd.f32 %v1515_v20, %v1320_v3  ;;  %v1691_v34 = vmax.f32 %v1683_v27, 0.0  ;;  %v1785_v3 = vld [vmem:[%s2814_s9 + $0x30] sm:$0xff] }
 0x138   : > { %v1696_v36 = vpack.c.bf16 %v1691_v34, %v1690_v32  ;;  %v1660_v37 = vadd.f32 %v1649_v30, %v1526_v1  ;;  %v1651_v18 = vpop.f32.mrf.mxu0  ;;  %v1786_v34 = vld [vmem:[%s2814_s9 + $0x38] sm:$0xff] }
 0x13a   : > { %2217 = vmatmul.msk.bf16.gmra.mxu1 %vm534_vm0, %v1696_v36  ;;  %v1672_v41 = vmul.f32 %v2770_v21, %v1660_v37 }
 0x13b   : > { %v1311_v54 = vpop.f32.mrf.mxu2 }
 0x13c   : > { %v1321_v38 = vadd.f32 %v1311_v54, %v1223_v63  ;;  %v1684_v46 = vadd.f32 %v2777_v12, %v1672_v41 }
 0x13e   : > { %v1527_v42 = vadd.f32 %v1517_v40, %v1321_v38  ;;  %v1692_v31 = vmax.f32 %v1684_v46, 0.0 }
 0x140   : > { %v1661_v45 = vadd.f32 %v1651_v18, %v1527_v42 }
 0x142   : > { %v1673_v62 = vmul.f32 %v2770_v21, %v1661_v45  ;;  %v2287_v21 = vld [vmem:[%s2863_s6] ss:$0 sm:$0xff] }
 0x144   : > { %v1685_v13 = vadd.f32 %v2777_v12, %v1673_v62 }
 0x146   : > { %v1693_v47 = vmax.f32 %v1685_v13, 0.0 }
 0x148   : > { %v1697_v48 = vpack.c.bf16 %v1693_v47, %v1692_v31 }
 0x14a   : > { %2218 = vmatmul.msk.bf16.gmra.mxu1 %vm534_vm0, %v1697_v48 }
 0x197   : > { %v1735_v12 = vpop.f32.mrf.mxu1 }
 0x198   : > { %v1759_v44 = vmul.f32 %v2286_v33, %v1735_v12 }
 0x19a   : > { %v1771_v55 = vadd.f32 %v2287_v21, %v1759_v44 }
 0x19c   : > { %v1787_v56 = vadd.f32 %v1779_v52, %v1771_v55 }
 0x19e   : > { %v1795_v39 = vmax.f32 %v1787_v56, 0.0 }
 0x19f   : > { %v1737_v57 = vpop.f32.mrf.mxu1 }
 0x1a0   : > { %1804 = vst.msk [vmem:[%s2823_s13] sm:$0xff] %vm1803_vm7, %v1795_v39  ;;  %v1760_v43 = vmul.f32 %v2286_v33, %v1737_v57 }
 0x1a2   : > { %v1772_v61 = vadd.f32 %v2287_v21, %v1760_v43 }
 0x1a4   : > { %v1788_v58 = vadd.f32 %v1780_v59, %v1772_v61 }
 0x1a6   : > { %v1796_v2 = vmax.f32 %v1788_v58, 0.0 }
 0x1a7   : > { %v1740_v4 = vpop.f32.mrf.mxu1 }
 0x1a8   : > { %1805 = vst.msk [vmem:[%s2823_s13 + $0x8] sm:$0xff] %vm1803_vm7, %v1796_v2  ;;  %v1761_v5 = vmul.f32 %v2286_v33, %v1740_v4 }
 0x1aa   : > { %v1773_v7 = vadd.f32 %v2287_v21, %v1761_v5 }
 0x1ac   : > { %v1789_v9 = vadd.f32 %v1781_v6, %v1773_v7 }
 0x1ae   : > { %v1797_v53 = vmax.f32 %v1789_v9, 0.0 }
 0x1af   : > { %v1742_v8 = vpop.f32.mrf.mxu1 }
 0x1b0   : > { %1806 = vst.msk [vmem:[%s2823_s13 + $0x10] sm:$0xff] %vm1803_vm7, %v1797_v53  ;;  %v1762_v10 = vmul.f32 %v2286_v33, %v1742_v8 }
 0x1b2   : > { %v1774_v14 = vadd.f32 %v2287_v21, %v1762_v10 }
 0x1b4   : > { %v1790_v15 = vadd.f32 %v1782_v11, %v1774_v14 }
 0x1b6   : > { %v1798_v51 = vmax.f32 %v1790_v15, 0.0 }
 0x1b7   : > { %v1745_v50 = vpop.f32.mrf.mxu1 }
 0x1b8   : > { %1807 = vst.msk [vmem:[%s2823_s13 + $0x18] sm:$0xff] %vm1803_vm7, %v1798_v51  ;;  %v1763_v16 = vmul.f32 %v2286_v33, %v1745_v50 }
 0x1ba   : > { %v1775_v19 = vadd.f32 %v2287_v21, %v1763_v16 }
 0x1bc   : > { %v1791_v22 = vadd.f32 %v1783_v17, %v1775_v19 }
 0x1be   : > { %v1799_v24 = vmax.f32 %v1791_v22, 0.0 }
 0x1bf   : > { %v1747_v0 = vpop.f32.mrf.mxu1 }
 0x1c0   : > { %1808 = vst.msk [vmem:[%s2823_s13 + $0x20] sm:$0xff] %vm1803_vm7, %v1799_v24  ;;  %v1764_v49 = vmul.f32 %v2286_v33, %v1747_v0 }
 0x1c2   : > { %v1776_v28 = vadd.f32 %v2287_v21, %v1764_v49 }
 0x1c4   : > { %v1792_v29 = vadd.f32 %v1784_v26, %v1776_v28 }
 0x1c6   : > { %v1800_v25 = vmax.f32 %v1792_v29, 0.0 }
 0x1c7   : > { %v1750_v20 = vpop.f32.mrf.mxu1 }
 0x1c8   : > { %1809 = vst.msk [vmem:[%s2823_s13 + $0x28] sm:$0xff] %vm1803_vm7, %v1800_v25  ;;  %v1765_v23 = vmul.f32 %v2286_v33, %v1750_v20 }
 0x1ca   : > { %v1777_v27 = vadd.f32 %v2287_v21, %v1765_v23 }
 0x1cc   : > { %v1793_v30 = vadd.f32 %v1785_v3, %v1777_v27 }
 0x1ce   : > { %v1801_v60 = vmax.f32 %v1793_v30, 0.0 }
 0x1cf   : > { %v1752_v1 = vpop.f32.mrf.mxu1 }
 0x1d0   : > { %1810 = vst.msk [vmem:[%s2823_s13 + $0x30] sm:$0xff] %vm1803_vm7, %v1801_v60  ;;  %v1766_v32 = vmul.f32 %v2286_v33, %v1752_v1 }
 0x1d2   : > { %v1778_v35 = vadd.f32 %v2287_v21, %v1766_v32 }
 0x1d4   : > { %v1794_v36 = vadd.f32 %v1786_v34, %v1778_v35 }
 0x1d6   : > { %v1802_v63 = vmax.f32 %v1794_v36, 0.0 }
 0x1d8   : > { %1811 = vst.msk [vmem:[%s2823_s13 + $0x38] sm:$0xff] %vm1803_vm7, %v1802_v63 }
 0x1d9 PF: > { %s18_s29 = sadd.s32 1, %s2310_s29   ;;  %s2870_s27 = smov %s2306_s28 }
 0x1da   : > { %p15_p5 = scmp.ge.s32.totalorder %s18_s29, 4   ;;  %s2871_s28 = smov %s2873_s30 }
 0x1dc   :  { %17 = sbr.rel (!%p15_p5) target bundleno = 2 (0x2), region = 96 }

</bundles_post_ra>
